<compile_context>
chip_gen: v5e
topology: v5e:2x2
jax: 0.10.0
libtpu: 0.0.40
codegen_flags: <defaults>
</compile_context>

<pallas_src>
import math

import jax
import jax.numpy as jnp
from jax.experimental import pallas as pl
from jax.experimental.pallas import tpu as pltpu


# ----------------------------------------------------------------------------
# Helpers
# ----------------------------------------------------------------------------
def _round_up(x, m):
    return ((x + m - 1) // m) * m


def _softplus(x):
    # Matches torch.nn.Softplus(beta=1, threshold=20), without transient inf.
    return jnp.where(x > 20.0, x, jnp.log1p(jnp.exp(jnp.minimum(x, 20.0))))


def _pad_cols(w, to):
    return jnp.pad(w, ((0, 0), (0, to - w.shape[1])))


def _pad_rows(w, to):
    return jnp.pad(w, ((0, to - w.shape[0]), (0, 0)))


# ----------------------------------------------------------------------------
# Fused Euler-trajectory kernel (z-carry form)
# ----------------------------------------------------------------------------
def make_fused_ode_kernel(n_steps, n_merged, n_extra, extra_is_g, hf_pad):
    """out[0] = y0; out[i+1] = out[i] + h_cat_i @ wl_dt + bl_dt, with the
    recurrence carried on a = y @ W1 + b1 via a += h_cat @ W + c."""

    def kernel(*refs):
        y0_ref, a0_ref = refs[0], refs[1]           # (B, D) f32, (B, H) f32
        idx = 2
        merged = [(refs[idx + 2 * i], refs[idx + 2 * i + 1])
                  for i in range(n_merged)]          # block-diag mids (bf16, f32)
        idx += 2 * n_merged
        extra = [(refs[idx + 2 * i], refs[idx + 2 * i + 1])
                 for i in range(n_extra)]            # longer-branch mids
        idx += 2 * n_extra
        wl_ref, bl_ref, W_ref, c_ref = refs[idx:idx + 4]
        out_ref = refs[idx + 4]                      # VMEM (n_times, B, D)

        y = y0_ref[...]
        a = a0_ref[...]
        nb = y.shape[0]

        # Hoist bias loads + broadcasts out of the time loop.
        merged_b = [jnp.broadcast_to(b_ref[...], (nb, b_ref.shape[1]))
                    for _, b_ref in merged]
        extra_b = [jnp.broadcast_to(b_ref[...], (nb, b_ref.shape[1]))
                   for _, b_ref in extra]
        bl = jnp.broadcast_to(bl_ref[...], (nb, bl_ref.shape[1]))
        c = jnp.broadcast_to(c_ref[...], (nb, c_ref.shape[1]))

        out_ref[0] = y

        # Statically unrolled time loop (n_steps small and known at trace
        # time): full scheduler visibility, weights stay resident in VMEM.
        for step in range(n_steps):
            h = jnp.tanh(a)                          # merged first layer

            # Block-diagonally merged mid layers (func || g in one matmul).
            for (w_ref, _), bv in zip(merged, merged_b):
                h = _softplus(
                    jnp.dot(h.astype(w_ref.dtype), w_ref[...],
                            preferred_element_type=jnp.float32) + bv)

            # Remaining mid layers of the deeper branch (lane-aligned slice).
            if n_extra:
                if extra_is_g:
                    h_keep, h_x = h[:, :hf_pad], h[:, hf_pad:]
                else:
                    h_x, h_keep = h[:, :hf_pad], h[:, hf_pad:]
                for (w_ref, _), bv in zip(extra, extra_b):
                    h_x = _softplus(
                        jnp.dot(h_x.astype(w_ref.dtype), w_ref[...],
                                preferred_element_type=jnp.float32) + bv)
                h = jnp.concatenate(
                    [h_keep, h_x] if extra_is_g else [h_x, h_keep], axis=-1)

            hb = h.astype(wl_ref.dtype)

            # Trajectory update (dt and the f - g subtraction are folded into
            # wl/bl); narrow N=D matmul, off the serial recurrence.
            y = y + jnp.dot(hb, wl_ref[...],
                            preferred_element_type=jnp.float32) + bl

            # Recurrence: a_{i+1} = a_i + h @ (dt*wl@W1) + dt*bl@W1, one
            # 256-aligned matmul on the critical path.
            a = a + jnp.dot(hb, W_ref[...],
                            preferred_element_type=jnp.float32) + c

            out_ref[step + 1] = y.astype(out_ref.dtype)

    return kernel


# ----------------------------------------------------------------------------
# Parameter merging / padding (done once, in the jitted wrapper)
# ----------------------------------------------------------------------------
def prepare_fused_params(func_params, g_params, dt, lane=128,
                         mxu_dtype=jnp.bfloat16):
    (wf1, bf1) = func_params[0]
    (wg1, bg1) = g_params[0]
    func_rest, g_rest = func_params[1:], g_params[1:]
    func_mid, (wf_last, bf_last) = func_rest[:-1], func_rest[-1]
    g_mid, (wg_last, bg_last) = g_rest[:-1], g_rest[-1]

    hf, hg = wf1.shape[1], wg1.shape[1]
    hf_pad, hg_pad = _round_up(hf, lane), _round_up(hg, lane)

    # Merged first layer (only used in the wrapper to build a0, kept f32).
    w1 = jnp.concatenate([_pad_cols(wf1, hf_pad), _pad_cols(wg1, hg_pad)], axis=1)
    b1 = jnp.concatenate([_pad_cols(bf1, hf_pad), _pad_cols(bg1, hg_pad)], axis=1)

    # Zero-padded mid layers (padded rows are zero -> padded activation lanes
    # never contaminate real outputs).
    func_mid_p = [(_pad_cols(_pad_rows(w, hf_pad), hf_pad), _pad_cols(b, hf_pad))
                  for (w, b) in func_mid]
    g_mid_p = [(_pad_cols(_pad_rows(w, hg_pad), hg_pad), _pad_cols(b, hg_pad))
               for (w, b) in g_mid]

    # Block-diagonal merge of the common mid-layer prefix.
    n_merge = min(len(func_mid_p), len(g_mid_p))
    merged = []
    for i in range(n_merge):
        wf, bf = func_mid_p[i]
        wg, bg = g_mid_p[i]
        top = jnp.concatenate([wf, jnp.zeros((hf_pad, hg_pad), wf.dtype)], axis=1)
        bot = jnp.concatenate([jnp.zeros((hg_pad, hf_pad), wg.dtype), wg], axis=1)
        merged.append((jnp.concatenate([top, bot], axis=0).astype(mxu_dtype),
                       jnp.concatenate([bf, bg], axis=1)))

    extra_is_g = len(g_mid_p) >= len(func_mid_p)
    extra_src = g_mid_p[n_merge:] if extra_is_g else func_mid_p[n_merge:]
    extra = [(w.astype(mxu_dtype), b) for (w, b) in extra_src]

    # Merged last layer with the f - g subtraction AND dt folded in.
    wl = jnp.concatenate([_pad_rows(wf_last, hf_pad),
                          -_pad_rows(wg_last, hg_pad)], axis=0) * dt
    bl = (bf_last - bg_last) * dt

    # Recurrence weights for the z-carry: a_{i+1} = a_i + h @ W + c.
    W = wl @ w1
    c = bl @ w1

    return dict(w1=w1, b1=b1, merged=merged, extra=extra, extra_is_g=extra_is_g,
                wl=wl.astype(mxu_dtype), bl=bl, W=W.astype(mxu_dtype), c=c,
                hf_pad=hf_pad)


# ----------------------------------------------------------------------------
# Wrapper: one pallas_call for the whole trajectory
# ----------------------------------------------------------------------------
@jax.jit
def neural_ode_mlp_forward(y0, t, func_params, g_params):
    """Equivalent of NeuralODE_MLP.forward(y0, t) -> (len(t), B, D)."""
    n_times = t.shape[0]
    n_steps = n_times - 1
    batch, d = y0.shape
    # Matches the reference: dt = t[1] - t[0] reused every step (uniform grid).
    dt = (t[1] - t[0]).astype(jnp.float32)

    p = prepare_fused_params(func_params, g_params, dt)

    # First-layer pre-activation carried across steps (includes b1).
    a0 = y0 @ p["w1"] + p["b1"]

    flat = [y0, a0]
    for w, b in p["merged"]:
        flat += [w, b]
    for w, b in p["extra"]:
        flat += [w, b]
    flat += [p["wl"], p["bl"], p["W"], p["c"]]

    kernel = make_fused_ode_kernel(n_steps, len(p["merged"]), len(p["extra"]),
                                   p["extra_is_g"], p["hf_pad"])

    return pl.pallas_call(
        kernel,
        out_shape=jax.ShapeDtypeStruct((n_times, batch, d), y0.dtype),
        in_specs=[pl.BlockSpec(memory_space=pltpu.MemorySpace.VMEM)] * len(flat),
        out_specs=pl.BlockSpec(memory_space=pltpu.MemorySpace.VMEM),
    )(*flat)


# ----------------------------------------------------------------------------
# Deterministic parameter init (PyTorch nn.Linear default: U(-1/sqrt(in), ..))
# ----------------------------------------------------------------------------
def init_linear(key, in_dim, out_dim):
    k_w, k_b = jax.random.split(key)
    bound = 1.0 / math.sqrt(in_dim)
    w = jax.random.uniform(k_w, (in_dim, out_dim), jnp.float32, -bound, bound)
    b = jax.random.uniform(k_b, (1, out_dim), jnp.float32, -bound, bound)
    return w, b


def init_mlp(key, input_dim, hidden_dim, num_layers):
    """MLP / ODEFunc param list: num_layers + 1 linears (pre-transposed)."""
    dims = [input_dim, hidden_dim] + [hidden_dim] * (num_layers - 1) + [input_dim]
    params = []
    keys = jax.random.split(key, len(dims) - 1)
    for k, din, dout in zip(keys, dims[:-1], dims[1:]):
        params.append(init_linear(k, din, dout))
    return params


# ----------------------------------------------------------------------------
# Pure-JAX f32 reference (unmerged params) for a sanity check
# ----------------------------------------------------------------------------
def _mlp_ref(y, params):
    h = y
    n = len(params)
    for i, (w, b) in enumerate(params):
        h = h @ w + b
        if i == 0 and n > 1:
            h = jnp.tanh(h)
        elif i < n - 1:
            h = _softplus(h)
    return h


def neural_ode_mlp_ref(y0, t, func_params, g_params):
    dt = t[1] - t[0]
    ys = [y0]
    y = y0
    for _ in range(t.shape[0] - 1):
        u = _mlp_ref(y, g_params)
        f = _mlp_ref(y, func_params)
        y = y + (f - u) * dt
        ys.append(y)
    return jnp.stack(ys)


# ----------------------------------------------------------------------------
# Main
# ----------------------------------------------------------------------------
if __name__ == "__main__":
    # NeuralODE_MLP(input_dim, hidden_dim, num_layers) with the defaults
    # hidden_dim_mlp=128, num_layers_mlp=4.
    input_dim = 16
    hidden_dim = 32
    num_layers = 2
    hidden_dim_mlp = 128
    num_layers_mlp = 4

    batch = 8
    n_times = 8

    key = jax.random.PRNGKey(0)
    k_func, k_g, k_y0 = jax.random.split(key, 3)

    func_params = init_mlp(k_func, input_dim, hidden_dim, num_layers)
    g_params = init_mlp(k_g, input_dim, hidden_dim_mlp, num_layers_mlp)

    y0 = jax.random.normal(k_y0, (batch, input_dim), jnp.float32)
    t = jnp.linspace(0.0, 1.0, n_times).astype(jnp.float32)

    out = neural_ode_mlp_forward(y0, t, func_params, g_params)
    out = jax.block_until_ready(out)

    ref = neural_ode_mlp_ref(y0, t, func_params, g_params)
    assert out.shape == (n_times, batch, input_dim), out.shape
    # bf16 MXU operands accumulate ~1e-2-level error over the 7-step
    # recurrence, so the tolerance is loosened vs a pure-f32 kernel.
    err = float(jnp.max(jnp.abs(out - ref)))
    assert err < 5e-2, err

    print("KERNEL_OK")
</pallas_src>

<mosaic_0001>
module attributes {stable_mosaic.version = 11 : i64} {
  func.func @kernel(%arg0: memref<8x16xf32, #tpu.memory_space<vmem>>, %arg1: memref<8x256xf32, #tpu.memory_space<vmem>>, %arg2: memref<256x256xbf16, #tpu.memory_space<vmem>>, %arg3: memref<1x256xf32, #tpu.memory_space<vmem>>, %arg4: memref<128x128xbf16, #tpu.memory_space<vmem>>, %arg5: memref<1x128xf32, #tpu.memory_space<vmem>>, %arg6: memref<128x128xbf16, #tpu.memory_space<vmem>>, %arg7: memref<1x128xf32, #tpu.memory_space<vmem>>, %arg8: memref<256x16xbf16, #tpu.memory_space<vmem>>, %arg9: memref<1x16xf32, #tpu.memory_space<vmem>>, %arg10: memref<256x256xbf16, #tpu.memory_space<vmem>>, %arg11: memref<1x256xf32, #tpu.memory_space<vmem>>, %arg12: memref<8x8x16xf32, #tpu.memory_space<vmem>>) attributes {dimension_semantics = [], scalar_prefetch = 0 : i64, scratch_operands = 0 : i64, tpu.core_type = #tpu.core_type<tc>} {
    %c0 = arith.constant 0 : index
    %c0_0 = arith.constant 0 : index
    %0 = vector.load %arg0[%c0, %c0_0] : memref<8x16xf32, #tpu.memory_space<vmem>>, vector<8x16xf32>
    %c0_1 = arith.constant 0 : index
    %c0_2 = arith.constant 0 : index
    %1 = vector.load %arg1[%c0_1, %c0_2] : memref<8x256xf32, #tpu.memory_space<vmem>>, vector<8x256xf32>
    %c0_3 = arith.constant 0 : index
    %c0_4 = arith.constant 0 : index
    %2 = vector.load %arg3[%c0_3, %c0_4] : memref<1x256xf32, #tpu.memory_space<vmem>>, vector<1x256xf32>
    %3 = vector.shape_cast %2 : vector<1x256xf32> to vector<1x256xf32>
    %4 = vector.broadcast %3 : vector<1x256xf32> to vector<8x256xf32>
    %c0_5 = arith.constant 0 : index
    %c0_6 = arith.constant 0 : index
    %5 = vector.load %arg5[%c0_5, %c0_6] : memref<1x128xf32, #tpu.memory_space<vmem>>, vector<1x128xf32>
    %6 = vector.shape_cast %5 : vector<1x128xf32> to vector<1x128xf32>
    %7 = vector.broadcast %6 : vector<1x128xf32> to vector<8x128xf32>
    %c0_7 = arith.constant 0 : index
    %c0_8 = arith.constant 0 : index
    %8 = vector.load %arg7[%c0_7, %c0_8] : memref<1x128xf32, #tpu.memory_space<vmem>>, vector<1x128xf32>
    %9 = vector.shape_cast %8 : vector<1x128xf32> to vector<1x128xf32>
    %10 = vector.broadcast %9 : vector<1x128xf32> to vector<8x128xf32>
    %c0_9 = arith.constant 0 : index
    %c0_10 = arith.constant 0 : index
    %11 = vector.load %arg9[%c0_9, %c0_10] : memref<1x16xf32, #tpu.memory_space<vmem>>, vector<1x16xf32>
    %12 = vector.shape_cast %11 : vector<1x16xf32> to vector<1x16xf32>
    %13 = vector.broadcast %12 : vector<1x16xf32> to vector<8x16xf32>
    %c0_11 = arith.constant 0 : index
    %c0_12 = arith.constant 0 : index
    %14 = vector.load %arg11[%c0_11, %c0_12] : memref<1x256xf32, #tpu.memory_space<vmem>>, vector<1x256xf32>
    %15 = vector.shape_cast %14 : vector<1x256xf32> to vector<1x256xf32>
    %16 = vector.broadcast %15 : vector<1x256xf32> to vector<8x256xf32>
    %c0_13 = arith.constant 0 : index
    %c0_14 = arith.constant 0 : index
    %c0_15 = arith.constant 0 : index
    %17 = vector.load %arg12[%c0_13, %c0_14, %c0_15] : memref<8x8x16xf32, #tpu.memory_space<vmem>>, vector<1x8x16xf32>
    %18 = vector.shape_cast %17 : vector<1x8x16xf32> to vector<8x16xf32>
    %19 = vector.shape_cast %0 : vector<8x16xf32> to vector<1x8x16xf32>
    tpu.vector_store %arg12[%c0_13, %c0_14, %c0_15], %19 {strides = array<i32>} : memref<8x8x16xf32, #tpu.memory_space<vmem>>, vector<1x8x16xf32>,
    %20 = math.tanh %1 : vector<8x256xf32>
    %21 = arith.truncf %20 : vector<8x256xf32> to vector<8x256xbf16>
    %c0_16 = arith.constant 0 : index
    %c0_17 = arith.constant 0 : index
    %22 = vector.load %arg2[%c0_16, %c0_17] : memref<256x256xbf16, #tpu.memory_space<vmem>>, vector<256x256xbf16>
    %cst = arith.constant dense<0.000000e+00> : vector<8x256xf32>
    %23 = tpu.matmul %21, %22, %cst {dimension_numbers = #tpu.dot_dimension_numbers<[1], [0], [0], [1], [0, 0, 1, 1], [], []>} : vector<8x256xbf16>, vector<256x256xbf16>, vector<8x256xf32> -> vector<8x256xf32>
    %24 = arith.addf %23, %4 : vector<8x256xf32>
    %cst_18 = arith.constant 2.000000e+01 : f32
    %25 = vector.broadcast %cst_18 : f32 to vector<8x256xf32>
    %26 = arith.cmpf ogt, %24, %25 : vector<8x256xf32>
    %cst_19 = arith.constant 2.000000e+01 : f32
    %27 = vector.broadcast %cst_19 : f32 to vector<8x256xf32>
    %28 = arith.minimumf %24, %27 : vector<8x256xf32>
    %29 = math.exp %28 : vector<8x256xf32>
    %30 = math.log1p %29 : vector<8x256xf32>
    %31 = arith.select %26, %24, %30 : vector<8x256xi1>, vector<8x256xf32>
    %32 = vector.extract_strided_slice %31 {offsets = [0, 0], sizes = [8, 128], strides = [1, 1]} : vector<8x256xf32> to vector<8x128xf32>
    %33 = vector.extract_strided_slice %31 {offsets = [0, 128], sizes = [8, 128], strides = [1, 1]} : vector<8x256xf32> to vector<8x128xf32>
    %34 = arith.truncf %33 : vector<8x128xf32> to vector<8x128xbf16>
    %c0_20 = arith.constant 0 : index
    %c0_21 = arith.constant 0 : index
    %35 = vector.load %arg4[%c0_20, %c0_21] : memref<128x128xbf16, #tpu.memory_space<vmem>>, vector<128x128xbf16>
    %cst_22 = arith.constant dense<0.000000e+00> : vector<8x128xf32>
    %36 = tpu.matmul %34, %35, %cst_22 {dimension_numbers = #tpu.dot_dimension_numbers<[1], [0], [0], [1], [0, 0, 1, 1], [], []>} : vector<8x128xbf16>, vector<128x128xbf16>, vector<8x128xf32> -> vector<8x128xf32>
    %37 = arith.addf %36, %7 : vector<8x128xf32>
    %cst_23 = arith.constant 2.000000e+01 : f32
    %38 = vector.broadcast %cst_23 : f32 to vector<8x128xf32>
    %39 = arith.cmpf ogt, %37, %38 : vector<8x128xf32>
    %cst_24 = arith.constant 2.000000e+01 : f32
    %40 = vector.broadcast %cst_24 : f32 to vector<8x128xf32>
    %41 = arith.minimumf %37, %40 : vector<8x128xf32>
    %42 = math.exp %41 : vector<8x128xf32>
    %43 = math.log1p %42 : vector<8x128xf32>
    %44 = arith.select %39, %37, %43 : vector<8x128xi1>, vector<8x128xf32>
    %45 = arith.truncf %44 : vector<8x128xf32> to vector<8x128xbf16>
    %c0_25 = arith.constant 0 : index
    %c0_26 = arith.constant 0 : index
    %46 = vector.load %arg6[%c0_25, %c0_26] : memref<128x128xbf16, #tpu.memory_space<vmem>>, vector<128x128xbf16>
    %cst_27 = arith.constant dense<0.000000e+00> : vector<8x128xf32>
    %47 = tpu.matmul %45, %46, %cst_27 {dimension_numbers = #tpu.dot_dimension_numbers<[1], [0], [0], [1], [0, 0, 1, 1], [], []>} : vector<8x128xbf16>, vector<128x128xbf16>, vector<8x128xf32> -> vector<8x128xf32>
    %48 = arith.addf %47, %10 : vector<8x128xf32>
    %cst_28 = arith.constant 2.000000e+01 : f32
    %49 = vector.broadcast %cst_28 : f32 to vector<8x128xf32>
    %50 = arith.cmpf ogt, %48, %49 : vector<8x128xf32>
    %cst_29 = arith.constant 2.000000e+01 : f32
    %51 = vector.broadcast %cst_29 : f32 to vector<8x128xf32>
    %52 = arith.minimumf %48, %51 : vector<8x128xf32>
    %53 = math.exp %52 : vector<8x128xf32>
    %54 = math.log1p %53 : vector<8x128xf32>
    %55 = arith.select %50, %48, %54 : vector<8x128xi1>, vector<8x128xf32>
    %56 = tpu.concatenate %32, %55 in 1 : vector<8x128xf32>, vector<8x128xf32> -> vector<8x256xf32>
    %57 = arith.truncf %56 : vector<8x256xf32> to vector<8x256xbf16>
    %c0_30 = arith.constant 0 : index
    %c0_31 = arith.constant 0 : index
    %58 = vector.load %arg8[%c0_30, %c0_31] : memref<256x16xbf16, #tpu.memory_space<vmem>>, vector<256x16xbf16>
    %cst_32 = arith.constant dense<0.000000e+00> : vector<8x16xf32>
    %59 = tpu.matmul %57, %58, %cst_32 {dimension_numbers = #tpu.dot_dimension_numbers<[1], [0], [0], [1], [0, 0, 1, 1], [], []>} : vector<8x256xbf16>, vector<256x16xbf16>, vector<8x16xf32> -> vector<8x16xf32>
    %60 = arith.addf %0, %59 : vector<8x16xf32>
    %61 = arith.addf %60, %13 : vector<8x16xf32>
    %c0_33 = arith.constant 0 : index
    %c0_34 = arith.constant 0 : index
    %62 = vector.load %arg10[%c0_33, %c0_34] : memref<256x256xbf16, #tpu.memory_space<vmem>>, vector<256x256xbf16>
    %cst_35 = arith.constant dense<0.000000e+00> : vector<8x256xf32>
    %63 = tpu.matmul %57, %62, %cst_35 {dimension_numbers = #tpu.dot_dimension_numbers<[1], [0], [0], [1], [0, 0, 1, 1], [], []>} : vector<8x256xbf16>, vector<256x256xbf16>, vector<8x256xf32> -> vector<8x256xf32>
    %64 = arith.addf %1, %63 : vector<8x256xf32>
    %65 = arith.addf %64, %16 : vector<8x256xf32>
    %c1 = arith.constant 1 : index
    %c0_36 = arith.constant 0 : index
    %c0_37 = arith.constant 0 : index
    %66 = vector.load %arg12[%c1, %c0_36, %c0_37] : memref<8x8x16xf32, #tpu.memory_space<vmem>>, vector<1x8x16xf32>
    %67 = vector.shape_cast %66 : vector<1x8x16xf32> to vector<8x16xf32>
    %68 = vector.shape_cast %61 : vector<8x16xf32> to vector<1x8x16xf32>
    tpu.vector_store %arg12[%c1, %c0_36, %c0_37], %68 {strides = array<i32>} : memref<8x8x16xf32, #tpu.memory_space<vmem>>, vector<1x8x16xf32>,
    %69 = math.tanh %65 : vector<8x256xf32>
    %70 = arith.truncf %69 : vector<8x256xf32> to vector<8x256xbf16>
    %c0_38 = arith.constant 0 : index
    %c0_39 = arith.constant 0 : index
    %71 = vector.load %arg2[%c0_38, %c0_39] : memref<256x256xbf16, #tpu.memory_space<vmem>>, vector<256x256xbf16>
    %cst_40 = arith.constant dense<0.000000e+00> : vector<8x256xf32>
    %72 = tpu.matmul %70, %71, %cst_40 {dimension_numbers = #tpu.dot_dimension_numbers<[1], [0], [0], [1], [0, 0, 1, 1], [], []>} : vector<8x256xbf16>, vector<256x256xbf16>, vector<8x256xf32> -> vector<8x256xf32>
    %73 = arith.addf %72, %4 : vector<8x256xf32>
    %cst_41 = arith.constant 2.000000e+01 : f32
    %74 = vector.broadcast %cst_41 : f32 to vector<8x256xf32>
    %75 = arith.cmpf ogt, %73, %74 : vector<8x256xf32>
    %cst_42 = arith.constant 2.000000e+01 : f32
    %76 = vector.broadcast %cst_42 : f32 to vector<8x256xf32>
    %77 = arith.minimumf %73, %76 : vector<8x256xf32>
    %78 = math.exp %77 : vector<8x256xf32>
    %79 = math.log1p %78 : vector<8x256xf32>
    %80 = arith.select %75, %73, %79 : vector<8x256xi1>, vector<8x256xf32>
    %81 = vector.extract_strided_slice %80 {offsets = [0, 0], sizes = [8, 128], strides = [1, 1]} : vector<8x256xf32> to vector<8x128xf32>
    %82 = vector.extract_strided_slice %80 {offsets = [0, 128], sizes = [8, 128], strides = [1, 1]} : vector<8x256xf32> to vector<8x128xf32>
    %83 = arith.truncf %82 : vector<8x128xf32> to vector<8x128xbf16>
    %c0_43 = arith.constant 0 : index
    %c0_44 = arith.constant 0 : index
    %84 = vector.load %arg4[%c0_43, %c0_44] : memref<128x128xbf16, #tpu.memory_space<vmem>>, vector<128x128xbf16>
    %cst_45 = arith.constant dense<0.000000e+00> : vector<8x128xf32>
    %85 = tpu.matmul %83, %84, %cst_45 {dimension_numbers = #tpu.dot_dimension_numbers<[1], [0], [0], [1], [0, 0, 1, 1], [], []>} : vector<8x128xbf16>, vector<128x128xbf16>, vector<8x128xf32> -> vector<8x128xf32>
    %86 = arith.addf %85, %7 : vector<8x128xf32>
    %cst_46 = arith.constant 2.000000e+01 : f32
    %87 = vector.broadcast %cst_46 : f32 to vector<8x128xf32>
    %88 = arith.cmpf ogt, %86, %87 : vector<8x128xf32>
    %cst_47 = arith.constant 2.000000e+01 : f32
    %89 = vector.broadcast %cst_47 : f32 to vector<8x128xf32>
    %90 = arith.minimumf %86, %89 : vector<8x128xf32>
    %91 = math.exp %90 : vector<8x128xf32>
    %92 = math.log1p %91 : vector<8x128xf32>
    %93 = arith.select %88, %86, %92 : vector<8x128xi1>, vector<8x128xf32>
    %94 = arith.truncf %93 : vector<8x128xf32> to vector<8x128xbf16>
    %c0_48 = arith.constant 0 : index
    %c0_49 = arith.constant 0 : index
    %95 = vector.load %arg6[%c0_48, %c0_49] : memref<128x128xbf16, #tpu.memory_space<vmem>>, vector<128x128xbf16>
    %cst_50 = arith.constant dense<0.000000e+00> : vector<8x128xf32>
    %96 = tpu.matmul %94, %95, %cst_50 {dimension_numbers = #tpu.dot_dimension_numbers<[1], [0], [0], [1], [0, 0, 1, 1], [], []>} : vector<8x128xbf16>, vector<128x128xbf16>, vector<8x128xf32> -> vector<8x128xf32>
    %97 = arith.addf %96, %10 : vector<8x128xf32>
    %cst_51 = arith.constant 2.000000e+01 : f32
    %98 = vector.broadcast %cst_51 : f32 to vector<8x128xf32>
    %99 = arith.cmpf ogt, %97, %98 : vector<8x128xf32>
    %cst_52 = arith.constant 2.000000e+01 : f32
    %100 = vector.broadcast %cst_52 : f32 to vector<8x128xf32>
    %101 = arith.minimumf %97, %100 : vector<8x128xf32>
    %102 = math.exp %101 : vector<8x128xf32>
    %103 = math.log1p %102 : vector<8x128xf32>
    %104 = arith.select %99, %97, %103 : vector<8x128xi1>, vector<8x128xf32>
    %105 = tpu.concatenate %81, %104 in 1 : vector<8x128xf32>, vector<8x128xf32> -> vector<8x256xf32>
    %106 = arith.truncf %105 : vector<8x256xf32> to vector<8x256xbf16>
    %c0_53 = arith.constant 0 : index
    %c0_54 = arith.constant 0 : index
    %107 = vector.load %arg8[%c0_53, %c0_54] : memref<256x16xbf16, #tpu.memory_space<vmem>>, vector<256x16xbf16>
    %cst_55 = arith.constant dense<0.000000e+00> : vector<8x16xf32>
    %108 = tpu.matmul %106, %107, %cst_55 {dimension_numbers = #tpu.dot_dimension_numbers<[1], [0], [0], [1], [0, 0, 1, 1], [], []>} : vector<8x256xbf16>, vector<256x16xbf16>, vector<8x16xf32> -> vector<8x16xf32>
    %109 = arith.addf %61, %108 : vector<8x16xf32>
    %110 = arith.addf %109, %13 : vector<8x16xf32>
    %c0_56 = arith.constant 0 : index
    %c0_57 = arith.constant 0 : index
    %111 = vector.load %arg10[%c0_56, %c0_57] : memref<256x256xbf16, #tpu.memory_space<vmem>>, vector<256x256xbf16>
    %cst_58 = arith.constant dense<0.000000e+00> : vector<8x256xf32>
    %112 = tpu.matmul %106, %111, %cst_58 {dimension_numbers = #tpu.dot_dimension_numbers<[1], [0], [0], [1], [0, 0, 1, 1], [], []>} : vector<8x256xbf16>, vector<256x256xbf16>, vector<8x256xf32> -> vector<8x256xf32>
    %113 = arith.addf %65, %112 : vector<8x256xf32>
    %114 = arith.addf %113, %16 : vector<8x256xf32>
    %c2 = arith.constant 2 : index
    %c0_59 = arith.constant 0 : index
    %c0_60 = arith.constant 0 : index
    %115 = vector.load %arg12[%c2, %c0_59, %c0_60] : memref<8x8x16xf32, #tpu.memory_space<vmem>>, vector<1x8x16xf32>
    %116 = vector.shape_cast %115 : vector<1x8x16xf32> to vector<8x16xf32>
    %117 = vector.shape_cast %110 : vector<8x16xf32> to vector<1x8x16xf32>
    tpu.vector_store %arg12[%c2, %c0_59, %c0_60], %117 {strides = array<i32>} : memref<8x8x16xf32, #tpu.memory_space<vmem>>, vector<1x8x16xf32>,
    %118 = math.tanh %114 : vector<8x256xf32>
    %119 = arith.truncf %118 : vector<8x256xf32> to vector<8x256xbf16>
    %c0_61 = arith.constant 0 : index
    %c0_62 = arith.constant 0 : index
    %120 = vector.load %arg2[%c0_61, %c0_62] : memref<256x256xbf16, #tpu.memory_space<vmem>>, vector<256x256xbf16>
    %cst_63 = arith.constant dense<0.000000e+00> : vector<8x256xf32>
    %121 = tpu.matmul %119, %120, %cst_63 {dimension_numbers = #tpu.dot_dimension_numbers<[1], [0], [0], [1], [0, 0, 1, 1], [], []>} : vector<8x256xbf16>, vector<256x256xbf16>, vector<8x256xf32> -> vector<8x256xf32>
    %122 = arith.addf %121, %4 : vector<8x256xf32>
    %cst_64 = arith.constant 2.000000e+01 : f32
    %123 = vector.broadcast %cst_64 : f32 to vector<8x256xf32>
    %124 = arith.cmpf ogt, %122, %123 : vector<8x256xf32>
    %cst_65 = arith.constant 2.000000e+01 : f32
    %125 = vector.broadcast %cst_65 : f32 to vector<8x256xf32>
    %126 = arith.minimumf %122, %125 : vector<8x256xf32>
    %127 = math.exp %126 : vector<8x256xf32>
    %128 = math.log1p %127 : vector<8x256xf32>
    %129 = arith.select %124, %122, %128 : vector<8x256xi1>, vector<8x256xf32>
    %130 = vector.extract_strided_slice %129 {offsets = [0, 0], sizes = [8, 128], strides = [1, 1]} : vector<8x256xf32> to vector<8x128xf32>
    %131 = vector.extract_strided_slice %129 {offsets = [0, 128], sizes = [8, 128], strides = [1, 1]} : vector<8x256xf32> to vector<8x128xf32>
    %132 = arith.truncf %131 : vector<8x128xf32> to vector<8x128xbf16>
    %c0_66 = arith.constant 0 : index
    %c0_67 = arith.constant 0 : index
    %133 = vector.load %arg4[%c0_66, %c0_67] : memref<128x128xbf16, #tpu.memory_space<vmem>>, vector<128x128xbf16>
    %cst_68 = arith.constant dense<0.000000e+00> : vector<8x128xf32>
    %134 = tpu.matmul %132, %133, %cst_68 {dimension_numbers = #tpu.dot_dimension_numbers<[1], [0], [0], [1], [0, 0, 1, 1], [], []>} : vector<8x128xbf16>, vector<128x128xbf16>, vector<8x128xf32> -> vector<8x128xf32>
    %135 = arith.addf %134, %7 : vector<8x128xf32>
    %cst_69 = arith.constant 2.000000e+01 : f32
    %136 = vector.broadcast %cst_69 : f32 to vector<8x128xf32>
    %137 = arith.cmpf ogt, %135, %136 : vector<8x128xf32>
    %cst_70 = arith.constant 2.000000e+01 : f32
    %138 = vector.broadcast %cst_70 : f32 to vector<8x128xf32>
    %139 = arith.minimumf %135, %138 : vector<8x128xf32>
    %140 = math.exp %139 : vector<8x128xf32>
    %141 = math.log1p %140 : vector<8x128xf32>
    %142 = arith.select %137, %135, %141 : vector<8x128xi1>, vector<8x128xf32>
    %143 = arith.truncf %142 : vector<8x128xf32> to vector<8x128xbf16>
    %c0_71 = arith.constant 0 : index
    %c0_72 = arith.constant 0 : index
    %144 = vector.load %arg6[%c0_71, %c0_72] : memref<128x128xbf16, #tpu.memory_space<vmem>>, vector<128x128xbf16>
    %cst_73 = arith.constant dense<0.000000e+00> : vector<8x128xf32>
    %145 = tpu.matmul %143, %144, %cst_73 {dimension_numbers = #tpu.dot_dimension_numbers<[1], [0], [0], [1], [0, 0, 1, 1], [], []>} : vector<8x128xbf16>, vector<128x128xbf16>, vector<8x128xf32> -> vector<8x128xf32>
    %146 = arith.addf %145, %10 : vector<8x128xf32>
    %cst_74 = arith.constant 2.000000e+01 : f32
    %147 = vector.broadcast %cst_74 : f32 to vector<8x128xf32>
    %148 = arith.cmpf ogt, %146, %147 : vector<8x128xf32>
    %cst_75 = arith.constant 2.000000e+01 : f32
    %149 = vector.broadcast %cst_75 : f32 to vector<8x128xf32>
    %150 = arith.minimumf %146, %149 : vector<8x128xf32>
    %151 = math.exp %150 : vector<8x128xf32>
    %152 = math.log1p %151 : vector<8x128xf32>
    %153 = arith.select %148, %146, %152 : vector<8x128xi1>, vector<8x128xf32>
    %154 = tpu.concatenate %130, %153 in 1 : vector<8x128xf32>, vector<8x128xf32> -> vector<8x256xf32>
    %155 = arith.truncf %154 : vector<8x256xf32> to vector<8x256xbf16>
    %c0_76 = arith.constant 0 : index
    %c0_77 = arith.constant 0 : index
    %156 = vector.load %arg8[%c0_76, %c0_77] : memref<256x16xbf16, #tpu.memory_space<vmem>>, vector<256x16xbf16>
    %cst_78 = arith.constant dense<0.000000e+00> : vector<8x16xf32>
    %157 = tpu.matmul %155, %156, %cst_78 {dimension_numbers = #tpu.dot_dimension_numbers<[1], [0], [0], [1], [0, 0, 1, 1], [], []>} : vector<8x256xbf16>, vector<256x16xbf16>, vector<8x16xf32> -> vector<8x16xf32>
    %158 = arith.addf %110, %157 : vector<8x16xf32>
    %159 = arith.addf %158, %13 : vector<8x16xf32>
    %c0_79 = arith.constant 0 : index
    %c0_80 = arith.constant 0 : index
    %160 = vector.load %arg10[%c0_79, %c0_80] : memref<256x256xbf16, #tpu.memory_space<vmem>>, vector<256x256xbf16>
    %cst_81 = arith.constant dense<0.000000e+00> : vector<8x256xf32>
    %161 = tpu.matmul %155, %160, %cst_81 {dimension_numbers = #tpu.dot_dimension_numbers<[1], [0], [0], [1], [0, 0, 1, 1], [], []>} : vector<8x256xbf16>, vector<256x256xbf16>, vector<8x256xf32> -> vector<8x256xf32>
    %162 = arith.addf %114, %161 : vector<8x256xf32>
    %163 = arith.addf %162, %16 : vector<8x256xf32>
    %c3 = arith.constant 3 : index
    %c0_82 = arith.constant 0 : index
    %c0_83 = arith.constant 0 : index
    %164 = vector.load %arg12[%c3, %c0_82, %c0_83] : memref<8x8x16xf32, #tpu.memory_space<vmem>>, vector<1x8x16xf32>
    %165 = vector.shape_cast %164 : vector<1x8x16xf32> to vector<8x16xf32>
    %166 = vector.shape_cast %159 : vector<8x16xf32> to vector<1x8x16xf32>
    tpu.vector_store %arg12[%c3, %c0_82, %c0_83], %166 {strides = array<i32>} : memref<8x8x16xf32, #tpu.memory_space<vmem>>, vector<1x8x16xf32>,
    %167 = math.tanh %163 : vector<8x256xf32>
    %168 = arith.truncf %167 : vector<8x256xf32> to vector<8x256xbf16>
    %c0_84 = arith.constant 0 : index
    %c0_85 = arith.constant 0 : index
    %169 = vector.load %arg2[%c0_84, %c0_85] : memref<256x256xbf16, #tpu.memory_space<vmem>>, vector<256x256xbf16>
    %cst_86 = arith.constant dense<0.000000e+00> : vector<8x256xf32>
    %170 = tpu.matmul %168, %169, %cst_86 {dimension_numbers = #tpu.dot_dimension_numbers<[1], [0], [0], [1], [0, 0, 1, 1], [], []>} : vector<8x256xbf16>, vector<256x256xbf16>, vector<8x256xf32> -> vector<8x256xf32>
    %171 = arith.addf %170, %4 : vector<8x256xf32>
    %cst_87 = arith.constant 2.000000e+01 : f32
    %172 = vector.broadcast %cst_87 : f32 to vector<8x256xf32>
    %173 = arith.cmpf ogt, %171, %172 : vector<8x256xf32>
    %cst_88 = arith.constant 2.000000e+01 : f32
    %174 = vector.broadcast %cst_88 : f32 to vector<8x256xf32>
    %175 = arith.minimumf %171, %174 : vector<8x256xf32>
    %176 = math.exp %175 : vector<8x256xf32>
    %177 = math.log1p %176 : vector<8x256xf32>
    %178 = arith.select %173, %171, %177 : vector<8x256xi1>, vector<8x256xf32>
    %179 = vector.extract_strided_slice %178 {offsets = [0, 0], sizes = [8, 128], strides = [1, 1]} : vector<8x256xf32> to vector<8x128xf32>
    %180 = vector.extract_strided_slice %178 {offsets = [0, 128], sizes = [8, 128], strides = [1, 1]} : vector<8x256xf32> to vector<8x128xf32>
    %181 = arith.truncf %180 : vector<8x128xf32> to vector<8x128xbf16>
    %c0_89 = arith.constant 0 : index
    %c0_90 = arith.constant 0 : index
    %182 = vector.load %arg4[%c0_89, %c0_90] : memref<128x128xbf16, #tpu.memory_space<vmem>>, vector<128x128xbf16>
    %cst_91 = arith.constant dense<0.000000e+00> : vector<8x128xf32>
    %183 = tpu.matmul %181, %182, %cst_91 {dimension_numbers = #tpu.dot_dimension_numbers<[1], [0], [0], [1], [0, 0, 1, 1], [], []>} : vector<8x128xbf16>, vector<128x128xbf16>, vector<8x128xf32> -> vector<8x128xf32>
    %184 = arith.addf %183, %7 : vector<8x128xf32>
    %cst_92 = arith.constant 2.000000e+01 : f32
    %185 = vector.broadcast %cst_92 : f32 to vector<8x128xf32>
    %186 = arith.cmpf ogt, %184, %185 : vector<8x128xf32>
    %cst_93 = arith.constant 2.000000e+01 : f32
    %187 = vector.broadcast %cst_93 : f32 to vector<8x128xf32>
    %188 = arith.minimumf %184, %187 : vector<8x128xf32>
    %189 = math.exp %188 : vector<8x128xf32>
    %190 = math.log1p %189 : vector<8x128xf32>
    %191 = arith.select %186, %184, %190 : vector<8x128xi1>, vector<8x128xf32>
    %192 = arith.truncf %191 : vector<8x128xf32> to vector<8x128xbf16>
    %c0_94 = arith.constant 0 : index
    %c0_95 = arith.constant 0 : index
    %193 = vector.load %arg6[%c0_94, %c0_95] : memref<128x128xbf16, #tpu.memory_space<vmem>>, vector<128x128xbf16>
    %cst_96 = arith.constant dense<0.000000e+00> : vector<8x128xf32>
    %194 = tpu.matmul %192, %193, %cst_96 {dimension_numbers = #tpu.dot_dimension_numbers<[1], [0], [0], [1], [0, 0, 1, 1], [], []>} : vector<8x128xbf16>, vector<128x128xbf16>, vector<8x128xf32> -> vector<8x128xf32>
    %195 = arith.addf %194, %10 : vector<8x128xf32>
    %cst_97 = arith.constant 2.000000e+01 : f32
    %196 = vector.broadcast %cst_97 : f32 to vector<8x128xf32>
    %197 = arith.cmpf ogt, %195, %196 : vector<8x128xf32>
    %cst_98 = arith.constant 2.000000e+01 : f32
    %198 = vector.broadcast %cst_98 : f32 to vector<8x128xf32>
    %199 = arith.minimumf %195, %198 : vector<8x128xf32>
    %200 = math.exp %199 : vector<8x128xf32>
    %201 = math.log1p %200 : vector<8x128xf32>
    %202 = arith.select %197, %195, %201 : vector<8x128xi1>, vector<8x128xf32>
    %203 = tpu.concatenate %179, %202 in 1 : vector<8x128xf32>, vector<8x128xf32> -> vector<8x256xf32>
    %204 = arith.truncf %203 : vector<8x256xf32> to vector<8x256xbf16>
    %c0_99 = arith.constant 0 : index
    %c0_100 = arith.constant 0 : index
    %205 = vector.load %arg8[%c0_99, %c0_100] : memref<256x16xbf16, #tpu.memory_space<vmem>>, vector<256x16xbf16>
    %cst_101 = arith.constant dense<0.000000e+00> : vector<8x16xf32>
    %206 = tpu.matmul %204, %205, %cst_101 {dimension_numbers = #tpu.dot_dimension_numbers<[1], [0], [0], [1], [0, 0, 1, 1], [], []>} : vector<8x256xbf16>, vector<256x16xbf16>, vector<8x16xf32> -> vector<8x16xf32>
    %207 = arith.addf %159, %206 : vector<8x16xf32>
    %208 = arith.addf %207, %13 : vector<8x16xf32>
    %c0_102 = arith.constant 0 : index
    %c0_103 = arith.constant 0 : index
    %209 = vector.load %arg10[%c0_102, %c0_103] : memref<256x256xbf16, #tpu.memory_space<vmem>>, vector<256x256xbf16>
    %cst_104 = arith.constant dense<0.000000e+00> : vector<8x256xf32>
    %210 = tpu.matmul %204, %209, %cst_104 {dimension_numbers = #tpu.dot_dimension_numbers<[1], [0], [0], [1], [0, 0, 1, 1], [], []>} : vector<8x256xbf16>, vector<256x256xbf16>, vector<8x256xf32> -> vector<8x256xf32>
    %211 = arith.addf %163, %210 : vector<8x256xf32>
    %212 = arith.addf %211, %16 : vector<8x256xf32>
    %c4 = arith.constant 4 : index
    %c0_105 = arith.constant 0 : index
    %c0_106 = arith.constant 0 : index
    %213 = vector.load %arg12[%c4, %c0_105, %c0_106] : memref<8x8x16xf32, #tpu.memory_space<vmem>>, vector<1x8x16xf32>
    %214 = vector.shape_cast %213 : vector<1x8x16xf32> to vector<8x16xf32>
    %215 = vector.shape_cast %208 : vector<8x16xf32> to vector<1x8x16xf32>
    tpu.vector_store %arg12[%c4, %c0_105, %c0_106], %215 {strides = array<i32>} : memref<8x8x16xf32, #tpu.memory_space<vmem>>, vector<1x8x16xf32>,
    %216 = math.tanh %212 : vector<8x256xf32>
    %217 = arith.truncf %216 : vector<8x256xf32> to vector<8x256xbf16>
    %c0_107 = arith.constant 0 : index
    %c0_108 = arith.constant 0 : index
    %218 = vector.load %arg2[%c0_107, %c0_108] : memref<256x256xbf16, #tpu.memory_space<vmem>>, vector<256x256xbf16>
    %cst_109 = arith.constant dense<0.000000e+00> : vector<8x256xf32>
    %219 = tpu.matmul %217, %218, %cst_109 {dimension_numbers = #tpu.dot_dimension_numbers<[1], [0], [0], [1], [0, 0, 1, 1], [], []>} : vector<8x256xbf16>, vector<256x256xbf16>, vector<8x256xf32> -> vector<8x256xf32>
    %220 = arith.addf %219, %4 : vector<8x256xf32>
    %cst_110 = arith.constant 2.000000e+01 : f32
    %221 = vector.broadcast %cst_110 : f32 to vector<8x256xf32>
    %222 = arith.cmpf ogt, %220, %221 : vector<8x256xf32>
    %cst_111 = arith.constant 2.000000e+01 : f32
    %223 = vector.broadcast %cst_111 : f32 to vector<8x256xf32>
    %224 = arith.minimumf %220, %223 : vector<8x256xf32>
    %225 = math.exp %224 : vector<8x256xf32>
    %226 = math.log1p %225 : vector<8x256xf32>
    %227 = arith.select %222, %220, %226 : vector<8x256xi1>, vector<8x256xf32>
    %228 = vector.extract_strided_slice %227 {offsets = [0, 0], sizes = [8, 128], strides = [1, 1]} : vector<8x256xf32> to vector<8x128xf32>
    %229 = vector.extract_strided_slice %227 {offsets = [0, 128], sizes = [8, 128], strides = [1, 1]} : vector<8x256xf32> to vector<8x128xf32>
    %230 = arith.truncf %229 : vector<8x128xf32> to vector<8x128xbf16>
    %c0_112 = arith.constant 0 : index
    %c0_113 = arith.constant 0 : index
    %231 = vector.load %arg4[%c0_112, %c0_113] : memref<128x128xbf16, #tpu.memory_space<vmem>>, vector<128x128xbf16>
    %cst_114 = arith.constant dense<0.000000e+00> : vector<8x128xf32>
    %232 = tpu.matmul %230, %231, %cst_114 {dimension_numbers = #tpu.dot_dimension_numbers<[1], [0], [0], [1], [0, 0, 1, 1], [], []>} : vector<8x128xbf16>, vector<128x128xbf16>, vector<8x128xf32> -> vector<8x128xf32>
    %233 = arith.addf %232, %7 : vector<8x128xf32>
    %cst_115 = arith.constant 2.000000e+01 : f32
    %234 = vector.broadcast %cst_115 : f32 to vector<8x128xf32>
    %235 = arith.cmpf ogt, %233, %234 : vector<8x128xf32>
    %cst_116 = arith.constant 2.000000e+01 : f32
    %236 = vector.broadcast %cst_116 : f32 to vector<8x128xf32>
    %237 = arith.minimumf %233, %236 : vector<8x128xf32>
    %238 = math.exp %237 : vector<8x128xf32>
    %239 = math.log1p %238 : vector<8x128xf32>
    %240 = arith.select %235, %233, %239 : vector<8x128xi1>, vector<8x128xf32>
    %241 = arith.truncf %240 : vector<8x128xf32> to vector<8x128xbf16>
    %c0_117 = arith.constant 0 : index
    %c0_118 = arith.constant 0 : index
    %242 = vector.load %arg6[%c0_117, %c0_118] : memref<128x128xbf16, #tpu.memory_space<vmem>>, vector<128x128xbf16>
    %cst_119 = arith.constant dense<0.000000e+00> : vector<8x128xf32>
    %243 = tpu.matmul %241, %242, %cst_119 {dimension_numbers = #tpu.dot_dimension_numbers<[1], [0], [0], [1], [0, 0, 1, 1], [], []>} : vector<8x128xbf16>, vector<128x128xbf16>, vector<8x128xf32> -> vector<8x128xf32>
    %244 = arith.addf %243, %10 : vector<8x128xf32>
    %cst_120 = arith.constant 2.000000e+01 : f32
    %245 = vector.broadcast %cst_120 : f32 to vector<8x128xf32>
    %246 = arith.cmpf ogt, %244, %245 : vector<8x128xf32>
    %cst_121 = arith.constant 2.000000e+01 : f32
    %247 = vector.broadcast %cst_121 : f32 to vector<8x128xf32>
    %248 = arith.minimumf %244, %247 : vector<8x128xf32>
    %249 = math.exp %248 : vector<8x128xf32>
    %250 = math.log1p %249 : vector<8x128xf32>
    %251 = arith.select %246, %244, %250 : vector<8x128xi1>, vector<8x128xf32>
    %252 = tpu.concatenate %228, %251 in 1 : vector<8x128xf32>, vector<8x128xf32> -> vector<8x256xf32>
    %253 = arith.truncf %252 : vector<8x256xf32> to vector<8x256xbf16>
    %c0_122 = arith.constant 0 : index
    %c0_123 = arith.constant 0 : index
    %254 = vector.load %arg8[%c0_122, %c0_123] : memref<256x16xbf16, #tpu.memory_space<vmem>>, vector<256x16xbf16>
    %cst_124 = arith.constant dense<0.000000e+00> : vector<8x16xf32>
    %255 = tpu.matmul %253, %254, %cst_124 {dimension_numbers = #tpu.dot_dimension_numbers<[1], [0], [0], [1], [0, 0, 1, 1], [], []>} : vector<8x256xbf16>, vector<256x16xbf16>, vector<8x16xf32> -> vector<8x16xf32>
    %256 = arith.addf %208, %255 : vector<8x16xf32>
    %257 = arith.addf %256, %13 : vector<8x16xf32>
    %c0_125 = arith.constant 0 : index
    %c0_126 = arith.constant 0 : index
    %258 = vector.load %arg10[%c0_125, %c0_126] : memref<256x256xbf16, #tpu.memory_space<vmem>>, vector<256x256xbf16>
    %cst_127 = arith.constant dense<0.000000e+00> : vector<8x256xf32>
    %259 = tpu.matmul %253, %258, %cst_127 {dimension_numbers = #tpu.dot_dimension_numbers<[1], [0], [0], [1], [0, 0, 1, 1], [], []>} : vector<8x256xbf16>, vector<256x256xbf16>, vector<8x256xf32> -> vector<8x256xf32>
    %260 = arith.addf %212, %259 : vector<8x256xf32>
    %261 = arith.addf %260, %16 : vector<8x256xf32>
    %c5 = arith.constant 5 : index
    %c0_128 = arith.constant 0 : index
    %c0_129 = arith.constant 0 : index
    %262 = vector.load %arg12[%c5, %c0_128, %c0_129] : memref<8x8x16xf32, #tpu.memory_space<vmem>>, vector<1x8x16xf32>
    %263 = vector.shape_cast %262 : vector<1x8x16xf32> to vector<8x16xf32>
    %264 = vector.shape_cast %257 : vector<8x16xf32> to vector<1x8x16xf32>
    tpu.vector_store %arg12[%c5, %c0_128, %c0_129], %264 {strides = array<i32>} : memref<8x8x16xf32, #tpu.memory_space<vmem>>, vector<1x8x16xf32>,
    %265 = math.tanh %261 : vector<8x256xf32>
    %266 = arith.truncf %265 : vector<8x256xf32> to vector<8x256xbf16>
    %c0_130 = arith.constant 0 : index
    %c0_131 = arith.constant 0 : index
    %267 = vector.load %arg2[%c0_130, %c0_131] : memref<256x256xbf16, #tpu.memory_space<vmem>>, vector<256x256xbf16>
    %cst_132 = arith.constant dense<0.000000e+00> : vector<8x256xf32>
    %268 = tpu.matmul %266, %267, %cst_132 {dimension_numbers = #tpu.dot_dimension_numbers<[1], [0], [0], [1], [0, 0, 1, 1], [], []>} : vector<8x256xbf16>, vector<256x256xbf16>, vector<8x256xf32> -> vector<8x256xf32>
    %269 = arith.addf %268, %4 : vector<8x256xf32>
    %cst_133 = arith.constant 2.000000e+01 : f32
    %270 = vector.broadcast %cst_133 : f32 to vector<8x256xf32>
    %271 = arith.cmpf ogt, %269, %270 : vector<8x256xf32>
    %cst_134 = arith.constant 2.000000e+01 : f32
    %272 = vector.broadcast %cst_134 : f32 to vector<8x256xf32>
    %273 = arith.minimumf %269, %272 : vector<8x256xf32>
    %274 = math.exp %273 : vector<8x256xf32>
    %275 = math.log1p %274 : vector<8x256xf32>
    %276 = arith.select %271, %269, %275 : vector<8x256xi1>, vector<8x256xf32>
    %277 = vector.extract_strided_slice %276 {offsets = [0, 0], sizes = [8, 128], strides = [1, 1]} : vector<8x256xf32> to vector<8x128xf32>
    %278 = vector.extract_strided_slice %276 {offsets = [0, 128], sizes = [8, 128], strides = [1, 1]} : vector<8x256xf32> to vector<8x128xf32>
    %279 = arith.truncf %278 : vector<8x128xf32> to vector<8x128xbf16>
    %c0_135 = arith.constant 0 : index
    %c0_136 = arith.constant 0 : index
    %280 = vector.load %arg4[%c0_135, %c0_136] : memref<128x128xbf16, #tpu.memory_space<vmem>>, vector<128x128xbf16>
    %cst_137 = arith.constant dense<0.000000e+00> : vector<8x128xf32>
    %281 = tpu.matmul %279, %280, %cst_137 {dimension_numbers = #tpu.dot_dimension_numbers<[1], [0], [0], [1], [0, 0, 1, 1], [], []>} : vector<8x128xbf16>, vector<128x128xbf16>, vector<8x128xf32> -> vector<8x128xf32>
    %282 = arith.addf %281, %7 : vector<8x128xf32>
    %cst_138 = arith.constant 2.000000e+01 : f32
    %283 = vector.broadcast %cst_138 : f32 to vector<8x128xf32>
    %284 = arith.cmpf ogt, %282, %283 : vector<8x128xf32>
    %cst_139 = arith.constant 2.000000e+01 : f32
    %285 = vector.broadcast %cst_139 : f32 to vector<8x128xf32>
    %286 = arith.minimumf %282, %285 : vector<8x128xf32>
    %287 = math.exp %286 : vector<8x128xf32>
    %288 = math.log1p %287 : vector<8x128xf32>
    %289 = arith.select %284, %282, %288 : vector<8x128xi1>, vector<8x128xf32>
    %290 = arith.truncf %289 : vector<8x128xf32> to vector<8x128xbf16>
    %c0_140 = arith.constant 0 : index
    %c0_141 = arith.constant 0 : index
    %291 = vector.load %arg6[%c0_140, %c0_141] : memref<128x128xbf16, #tpu.memory_space<vmem>>, vector<128x128xbf16>
    %cst_142 = arith.constant dense<0.000000e+00> : vector<8x128xf32>
    %292 = tpu.matmul %290, %291, %cst_142 {dimension_numbers = #tpu.dot_dimension_numbers<[1], [0], [0], [1], [0, 0, 1, 1], [], []>} : vector<8x128xbf16>, vector<128x128xbf16>, vector<8x128xf32> -> vector<8x128xf32>
    %293 = arith.addf %292, %10 : vector<8x128xf32>
    %cst_143 = arith.constant 2.000000e+01 : f32
    %294 = vector.broadcast %cst_143 : f32 to vector<8x128xf32>
    %295 = arith.cmpf ogt, %293, %294 : vector<8x128xf32>
    %cst_144 = arith.constant 2.000000e+01 : f32
    %296 = vector.broadcast %cst_144 : f32 to vector<8x128xf32>
    %297 = arith.minimumf %293, %296 : vector<8x128xf32>
    %298 = math.exp %297 : vector<8x128xf32>
    %299 = math.log1p %298 : vector<8x128xf32>
    %300 = arith.select %295, %293, %299 : vector<8x128xi1>, vector<8x128xf32>
    %301 = tpu.concatenate %277, %300 in 1 : vector<8x128xf32>, vector<8x128xf32> -> vector<8x256xf32>
    %302 = arith.truncf %301 : vector<8x256xf32> to vector<8x256xbf16>
    %c0_145 = arith.constant 0 : index
    %c0_146 = arith.constant 0 : index
    %303 = vector.load %arg8[%c0_145, %c0_146] : memref<256x16xbf16, #tpu.memory_space<vmem>>, vector<256x16xbf16>
    %cst_147 = arith.constant dense<0.000000e+00> : vector<8x16xf32>
    %304 = tpu.matmul %302, %303, %cst_147 {dimension_numbers = #tpu.dot_dimension_numbers<[1], [0], [0], [1], [0, 0, 1, 1], [], []>} : vector<8x256xbf16>, vector<256x16xbf16>, vector<8x16xf32> -> vector<8x16xf32>
    %305 = arith.addf %257, %304 : vector<8x16xf32>
    %306 = arith.addf %305, %13 : vector<8x16xf32>
    %c0_148 = arith.constant 0 : index
    %c0_149 = arith.constant 0 : index
    %307 = vector.load %arg10[%c0_148, %c0_149] : memref<256x256xbf16, #tpu.memory_space<vmem>>, vector<256x256xbf16>
    %cst_150 = arith.constant dense<0.000000e+00> : vector<8x256xf32>
    %308 = tpu.matmul %302, %307, %cst_150 {dimension_numbers = #tpu.dot_dimension_numbers<[1], [0], [0], [1], [0, 0, 1, 1], [], []>} : vector<8x256xbf16>, vector<256x256xbf16>, vector<8x256xf32> -> vector<8x256xf32>
    %309 = arith.addf %261, %308 : vector<8x256xf32>
    %310 = arith.addf %309, %16 : vector<8x256xf32>
    %c6 = arith.constant 6 : index
    %c0_151 = arith.constant 0 : index
    %c0_152 = arith.constant 0 : index
    %311 = vector.load %arg12[%c6, %c0_151, %c0_152] : memref<8x8x16xf32, #tpu.memory_space<vmem>>, vector<1x8x16xf32>
    %312 = vector.shape_cast %311 : vector<1x8x16xf32> to vector<8x16xf32>
    %313 = vector.shape_cast %306 : vector<8x16xf32> to vector<1x8x16xf32>
    tpu.vector_store %arg12[%c6, %c0_151, %c0_152], %313 {strides = array<i32>} : memref<8x8x16xf32, #tpu.memory_space<vmem>>, vector<1x8x16xf32>,
    %314 = math.tanh %310 : vector<8x256xf32>
    %315 = arith.truncf %314 : vector<8x256xf32> to vector<8x256xbf16>
    %c0_153 = arith.constant 0 : index
    %c0_154 = arith.constant 0 : index
    %316 = vector.load %arg2[%c0_153, %c0_154] : memref<256x256xbf16, #tpu.memory_space<vmem>>, vector<256x256xbf16>
    %cst_155 = arith.constant dense<0.000000e+00> : vector<8x256xf32>
    %317 = tpu.matmul %315, %316, %cst_155 {dimension_numbers = #tpu.dot_dimension_numbers<[1], [0], [0], [1], [0, 0, 1, 1], [], []>} : vector<8x256xbf16>, vector<256x256xbf16>, vector<8x256xf32> -> vector<8x256xf32>
    %318 = arith.addf %317, %4 : vector<8x256xf32>
    %cst_156 = arith.constant 2.000000e+01 : f32
    %319 = vector.broadcast %cst_156 : f32 to vector<8x256xf32>
    %320 = arith.cmpf ogt, %318, %319 : vector<8x256xf32>
    %cst_157 = arith.constant 2.000000e+01 : f32
    %321 = vector.broadcast %cst_157 : f32 to vector<8x256xf32>
    %322 = arith.minimumf %318, %321 : vector<8x256xf32>
    %323 = math.exp %322 : vector<8x256xf32>
    %324 = math.log1p %323 : vector<8x256xf32>
    %325 = arith.select %320, %318, %324 : vector<8x256xi1>, vector<8x256xf32>
    %326 = vector.extract_strided_slice %325 {offsets = [0, 0], sizes = [8, 128], strides = [1, 1]} : vector<8x256xf32> to vector<8x128xf32>
    %327 = vector.extract_strided_slice %325 {offsets = [0, 128], sizes = [8, 128], strides = [1, 1]} : vector<8x256xf32> to vector<8x128xf32>
    %328 = arith.truncf %327 : vector<8x128xf32> to vector<8x128xbf16>
    %c0_158 = arith.constant 0 : index
    %c0_159 = arith.constant 0 : index
    %329 = vector.load %arg4[%c0_158, %c0_159] : memref<128x128xbf16, #tpu.memory_space<vmem>>, vector<128x128xbf16>
    %cst_160 = arith.constant dense<0.000000e+00> : vector<8x128xf32>
    %330 = tpu.matmul %328, %329, %cst_160 {dimension_numbers = #tpu.dot_dimension_numbers<[1], [0], [0], [1], [0, 0, 1, 1], [], []>} : vector<8x128xbf16>, vector<128x128xbf16>, vector<8x128xf32> -> vector<8x128xf32>
    %331 = arith.addf %330, %7 : vector<8x128xf32>
    %cst_161 = arith.constant 2.000000e+01 : f32
    %332 = vector.broadcast %cst_161 : f32 to vector<8x128xf32>
    %333 = arith.cmpf ogt, %331, %332 : vector<8x128xf32>
    %cst_162 = arith.constant 2.000000e+01 : f32
    %334 = vector.broadcast %cst_162 : f32 to vector<8x128xf32>
    %335 = arith.minimumf %331, %334 : vector<8x128xf32>
    %336 = math.exp %335 : vector<8x128xf32>
    %337 = math.log1p %336 : vector<8x128xf32>
    %338 = arith.select %333, %331, %337 : vector<8x128xi1>, vector<8x128xf32>
    %339 = arith.truncf %338 : vector<8x128xf32> to vector<8x128xbf16>
    %c0_163 = arith.constant 0 : index
    %c0_164 = arith.constant 0 : index
    %340 = vector.load %arg6[%c0_163, %c0_164] : memref<128x128xbf16, #tpu.memory_space<vmem>>, vector<128x128xbf16>
    %cst_165 = arith.constant dense<0.000000e+00> : vector<8x128xf32>
    %341 = tpu.matmul %339, %340, %cst_165 {dimension_numbers = #tpu.dot_dimension_numbers<[1], [0], [0], [1], [0, 0, 1, 1], [], []>} : vector<8x128xbf16>, vector<128x128xbf16>, vector<8x128xf32> -> vector<8x128xf32>
    %342 = arith.addf %341, %10 : vector<8x128xf32>
    %cst_166 = arith.constant 2.000000e+01 : f32
    %343 = vector.broadcast %cst_166 : f32 to vector<8x128xf32>
    %344 = arith.cmpf ogt, %342, %343 : vector<8x128xf32>
    %cst_167 = arith.constant 2.000000e+01 : f32
    %345 = vector.broadcast %cst_167 : f32 to vector<8x128xf32>
    %346 = arith.minimumf %342, %345 : vector<8x128xf32>
    %347 = math.exp %346 : vector<8x128xf32>
    %348 = math.log1p %347 : vector<8x128xf32>
    %349 = arith.select %344, %342, %348 : vector<8x128xi1>, vector<8x128xf32>
    %350 = tpu.concatenate %326, %349 in 1 : vector<8x128xf32>, vector<8x128xf32> -> vector<8x256xf32>
    %351 = arith.truncf %350 : vector<8x256xf32> to vector<8x256xbf16>
    %c0_168 = arith.constant 0 : index
    %c0_169 = arith.constant 0 : index
    %352 = vector.load %arg8[%c0_168, %c0_169] : memref<256x16xbf16, #tpu.memory_space<vmem>>, vector<256x16xbf16>
    %cst_170 = arith.constant dense<0.000000e+00> : vector<8x16xf32>
    %353 = tpu.matmul %351, %352, %cst_170 {dimension_numbers = #tpu.dot_dimension_numbers<[1], [0], [0], [1], [0, 0, 1, 1], [], []>} : vector<8x256xbf16>, vector<256x16xbf16>, vector<8x16xf32> -> vector<8x16xf32>
    %354 = arith.addf %306, %353 : vector<8x16xf32>
    %355 = arith.addf %354, %13 : vector<8x16xf32>
    %c7 = arith.constant 7 : index
    %c0_171 = arith.constant 0 : index
    %c0_172 = arith.constant 0 : index
    %356 = vector.load %arg12[%c7, %c0_171, %c0_172] : memref<8x8x16xf32, #tpu.memory_space<vmem>>, vector<1x8x16xf32>
    %357 = vector.shape_cast %356 : vector<1x8x16xf32> to vector<8x16xf32>
    %358 = vector.shape_cast %355 : vector<8x16xf32> to vector<1x8x16xf32>
    tpu.vector_store %arg12[%c7, %c0_171, %c0_172], %358 {strides = array<i32>} : memref<8x8x16xf32, #tpu.memory_space<vmem>>, vector<1x8x16xf32>,
    return
  }
}

</mosaic_0001>

<bundles_post_ra>
// kernel: neg.1
= control target key start
LH: loop header
LB: loop body
LE: loop exit
PB: predicated region body
PF: predicated region fallthrough
CT: control target
= control target key end

     0   :  { %s40_s0 = inlined_call_operand.vmem [shape: f32[128,16], index: 0, kind: input, shape index: {}]   ;;  %s41_s1 = inlined_call_operand.vmem [shape: f32[128,16], index: 1, kind: output, shape index: {}]  }
   0x1   :  { %v2_v0 = vld [vmem:[%s40_s0] sm:$0xff]  ;;  %v16_v1 = vld [vmem:[%s40_s0 + $0x8] sm:$0xff] }
   0x2   :  { %v5_v2 = vxor.u32 2147483648, %v2_v0  ;;  %v12_v3 = vxor.u32 2147483648, %v16_v1 }
   0x4   :  { %7 = vst [vmem:[%s41_s1] sm:$0xff] %v5_v2 }
   0x5   :  { %17 = vst [vmem:[%s41_s1 + $0x8] sm:$0xff] %v12_v3 }

// kernel: neural_ode_mlp_forward.1
= control target key start
LH: loop header
LB: loop body
LE: loop exit
PB: predicated region body
PF: predicated region fallthrough
CT: control target
= control target key end

     0   :  { %s12806_s0 = inlined_call_operand.vmem [shape: f32[8,16], index: 0, kind: input, shape index: {}]   ;;  %s12807_s1 = inlined_call_operand.vmem [shape: f32[8,256], index: 1, kind: input, shape index: {}]   ;;  %s12808_s2 = inlined_call_operand.vmem [shape: bf16[256,256], index: 2, kind: input, shape index: {}]   ;;  %s12809_s3 = inlined_call_operand.vmem [shape: f32[1,256], index: 3, kind: input, shape index: {}]   ;;  %s12810_s4 = inlined_call_operand.vmem [shape: bf16[128,128], index: 4, kind: input, shape index: {}]   ;;  %s12811_s5 = inlined_call_operand.vmem [shape: f32[1,128], index: 5, kind: input, shape index: {}]   ;;  %s12812_s6 = inlined_call_operand.vmem [shape: bf16[128,128], index: 6, kind: input, shape index: {}]   ;;  %s12813_s7 = inlined_call_operand.vmem [shape: f32[1,128], index: 7, kind: input, shape index: {}]   ;;  %s12814_s8 = inlined_call_operand.vmem [shape: bf16[256,16], index: 8, kind: input, shape index: {}]   ;;  %s12815_s9 = inlined_call_operand.vmem [shape: f32[1,16], index: 9, kind: input, shape index: {}]   ;;  %s12816_s10 = inlined_call_operand.vmem [shape: bf16[256,256], index: 10, kind: input, shape index: {}]   ;;  %s12817_s11 = inlined_call_operand.vmem [shape: f32[1,256], index: 11, kind: input, shape index: {}]   ;;  %s12818_s12 = inlined_call_operand.hbm [shape: f32[8,8,16], index: 12, kind: output, shape index: {}]  }
   0x1   :  { %v8491_v0 = vld [vmem:[%s12808_s2 + $0x74] sm:$0xf]  ;;  %v5977_v1 = vld [vmem:[%s12808_s2 + $0x78] sm:$0xf0]  ;;  %v8489_v5 = vld [vmem:[%s12808_s2 + $0x64] sm:$0xf] }
   0x2   :  { %v8507_v2 = vld [vmem:[%s12808_s2 + $0xf4] sm:$0xf]  ;;  %v5980_v3 = vor.u32 %v8491_v0, %v5977_v1  ;;  %v6041_v4 = vld [vmem:[%s12808_s2 + $0xf8] sm:$0xf0]  ;;  %v5969_v6 = vld [vmem:[%s12808_s2 + $0x68] sm:$0xf0] }
   0x3   :  { %v6044_v7 = vor.u32 %v8507_v2, %v6041_v4  ;;  %v8505_v8 = vld [vmem:[%s12808_s2 + $0xe4] sm:$0xf]  ;;  %v6033_v9 = vld [vmem:[%s12808_s2 + $0xe8] sm:$0xf0]  ;;  %v5972_v10 = vor.u32 %v8489_v5, %v5969_v6  ;;  %v8487_v12 = vld [vmem:[%s12808_s2 + $0x54] sm:$0xf] }
   0x4   :  { %293 = vmatpush.bf16.msra.mxu2 %v5980_v3  ;;  %v6036_v11 = vor.u32 %v8505_v8, %v6033_v9  ;;  %v5961_v13 = vld [vmem:[%s12808_s2 + $0x58] sm:$0xf0]  ;;  %v8503_v14 = vld [vmem:[%s12808_s2 + $0xd4] sm:$0xf]  ;;  %v8485_v18 = vld [vmem:[%s12808_s2 + $0x44] sm:$0xf] }
   0x5   :  { %306 = vmatpush.bf16.msra.mxu3 %v6044_v7  ;;  %v6025_v15 = vld [vmem:[%s12808_s2 + $0xd8] sm:$0xf0]  ;;  %v5964_v16 = vor.u32 %v8487_v12, %v5961_v13  ;;  %v5953_v19 = vld [vmem:[%s12808_s2 + $0x48] sm:$0xf0]  ;;  %v8501_v20 = vld [vmem:[%s12808_s2 + $0xc4] sm:$0xf] }
   0x6   :  { %v6028_v17 = vor.u32 %v8503_v14, %v6025_v15  ;;  %v6017_v21 = vld [vmem:[%s12808_s2 + $0xc8] sm:$0xf0]  ;;  %v8483_v22 = vld [vmem:[%s12808_s2 + $0x34] sm:$0xf]  ;;  %v5945_v23 = vld [vmem:[%s12808_s2 + $0x38] sm:$0xf0]  ;;  %v5956_v24 = vor.u32 %v8485_v18, %v5953_v19 }
   0x7   :  { %v8499_v25 = vld [vmem:[%s12808_s2 + $0xb4] sm:$0xf]  ;;  %v6009_v26 = vld [vmem:[%s12808_s2 + $0xb8] sm:$0xf0]  ;;  %v5975_v27 = vld [vmem:[%s12808_s2 + $0x70] sm:$0xf]  ;;  %v6020_v29 = vor.u32 %v8501_v20, %v6017_v21  ;;  %v5948_v39 = vor.u32 %v8483_v22, %v5945_v23 }
   0x8   :  { %294 = vmatpush.bf16.msra.mxu2 %v5972_v10  ;;  %v8492_v28 = vld [vmem:[%s12808_s2 + $0x74] sm:$0xf0]  ;;  %v6039_v31 = vld [vmem:[%s12808_s2 + $0xf0] sm:$0xf]  ;;  %v5967_v33 = vld [vmem:[%s12808_s2 + $0x60] sm:$0xf]  ;;  %v6012_v44 = vor.u32 %v8499_v25, %v6009_v26 }
   0x9   :  { %307 = vmatpush.bf16.msra.mxu3 %v6036_v11  ;;  %v5976_v30 = vor.u32 %v8492_v28, %v5975_v27  ;;  %v8508_v32 = vld [vmem:[%s12808_s2 + $0xf4] sm:$0xf0]  ;;  %v8490_v35 = vld [vmem:[%s12808_s2 + $0x64] sm:$0xf0]  ;;  %v6031_v36 = vld [vmem:[%s12808_s2 + $0xe0] sm:$0xf] }
   0xa   :  { %v6040_v34 = vor.u32 %v8508_v32, %v6039_v31  ;;  %v8506_v37 = vld [vmem:[%s12808_s2 + $0xe4] sm:$0xf0]  ;;  %v5968_v38 = vor.u32 %v8490_v35, %v5967_v33  ;;  %v8481_v40 = vld [vmem:[%s12808_s2 + $0x24] sm:$0xf]  ;;  %v5959_v42 = vld [vmem:[%s12808_s2 + $0x50] sm:$0xf] }
   0xb   :  { %267 = vmatpush.bf16.msra.mxu0 %v5976_v30  ;;  %v6032_v41 = vor.u32 %v8506_v37, %v6031_v36  ;;  %v8488_v43 = vld [vmem:[%s12808_s2 + $0x54] sm:$0xf0]  ;;  %v5937_v45 = vld [vmem:[%s12808_s2 + $0x28] sm:$0xf0]  ;;  %v6023_v46 = vld [vmem:[%s12808_s2 + $0xd0] sm:$0xf] }
   0xc   :  { %295 = vmatpush.bf16.msra.mxu2 %v5964_v16  ;;  %280 = vmatpush.bf16.msra.mxu1 %v6040_v34  ;;  %v8504_v47 = vld [vmem:[%s12808_s2 + $0xd4] sm:$0xf0]  ;;  %v8497_v48 = vld [vmem:[%s12808_s2 + $0xa4] sm:$0xf]  ;;  %v6001_v49 = vld [vmem:[%s12808_s2 + $0xa8] sm:$0xf0]  ;;  %v5960_v52 = vor.u32 %v8488_v43, %v5959_v42  ;;  %v5940_v53 = vor.u32 %v8481_v40, %v5937_v45 }
   0xd   :  { %308 = vmatpush.bf16.msra.mxu3 %v6028_v17  ;;  %v8479_v50 = vld [vmem:[%s12808_s2 + $0x14] sm:$0xf]  ;;  %v43_v51 = vld [vmem:[%s12807_s1] sm:$0xff]  ;;  %v44_v54 = vld [vmem:[%s12807_s1 + $0x8] sm:$0xff]  ;;  %v6024_v55 = vor.u32 %v8504_v47, %v6023_v46  ;;  %v6004_v58 = vor.u32 %v8497_v48, %v6001_v49 }
   0xe   :  { %v5951_v56 = vld [vmem:[%s12808_s2 + $0x40] sm:$0xf]  ;;  %v8486_v57 = vld [vmem:[%s12808_s2 + $0x44] sm:$0xf0]  ;;  %v5929_v59 = vld [vmem:[%s12808_s2 + $0x18] sm:$0xf0]  ;;  %9123 = vtanh.f32 %v43_v51 }
   0xf   :  { %268 = vmatpush.bf16.msra.mxu0 %v5968_v38  ;;  %v6015_v60 = vld [vmem:[%s12808_s2 + $0xc0] sm:$0xf]  ;;  %v8502_v61 = vld [vmem:[%s12808_s2 + $0xc4] sm:$0xf0]  ;;  %v8495_v62 = vld [vmem:[%s12808_s2 + $0x94] sm:$0xf]  ;;  %9125 = vtanh.f32 %v44_v54  ;;  %v5952_v1 = vor.u32 %v8486_v57, %v5951_v56  ;;  %v5932_v3 = vor.u32 %v8479_v50, %v5929_v59 }
  0x10   :  { %296 = vmatpush.bf16.msra.mxu2 %v5956_v24  ;;  %281 = vmatpush.bf16.msra.mxu1 %v6032_v41  ;;  %v5993_v63 = vld [vmem:[%s12808_s2 + $0x98] sm:$0xf0]  ;;  %v8477_v0 = vld [vmem:[%s12808_s2 + $0x4] sm:$0xf]  ;;  %v5943_v2 = vld [vmem:[%s12808_s2 + $0x30] sm:$0xf]  ;;  %v6016_v4 = vor.u32 %v8502_v61, %v6015_v60 }
  0x11   :  { %309 = vmatpush.bf16.msra.mxu3 %v6020_v29  ;;  %v8484_v5 = vld [vmem:[%s12808_s2 + $0x34] sm:$0xf0] }
  0x13   :  { %269 = vmatpush.bf16.msra.mxu0 %v5960_v52 }
  0x14   :  { %297 = vmatpush.bf16.msra.mxu2 %v5948_v39  ;;  %282 = vmatpush.bf16.msra.mxu1 %v6024_v55 }
  0x15   :  { %310 = vmatpush.bf16.msra.mxu3 %v6012_v44 }
  0x18   :  { %298 = vmatpush.bf16.msra.mxu2 %v5940_v53 }
  0x19   :  { %17 = vsyncpa [#allocation3], 0  ;;  %311 = vmatpush.bf16.msra.mxu3 %v6004_v58  ;;  %v5996_v6 = vor.u32 %v8495_v62, %v5993_v63  ;;  %v5921_v7 = vld [vmem:[%s12808_s2 + $0x8] sm:$0xf0]  ;;  %v6007_v8 = vld [vmem:[%s12808_s2 + $0xb0] sm:$0xf]  ;;  %270 = vmatpush.bf16.msra.mxu0 %v5952_v1  ;;  %v5944_v12 = vor.u32 %v8484_v5, %v5943_v2  ;;  %v9124_v13 = vpop.eup %9123 }
  0x1a   :  { %v8500_v9 = vld [vmem:[%s12808_s2 + $0xb4] sm:$0xf0]  ;;  %v8493_v10 = vld [vmem:[%s12808_s2 + $0x84] sm:$0xf]  ;;  %v5985_v11 = vld [vmem:[%s12808_s2 + $0x88] sm:$0xf0]  ;;  %v5924_v14 = vor.u32 %v8477_v0, %v5921_v7  ;;  %283 = vmatpush.bf16.msra.mxu1 %v6016_v4  ;;  %v9126_v18 = vpop.eup %9125  ;;  %v73_v22 = vpack.c.bf16 %v9124_v13, %v9124_v13 }
  0x1b   :  { %v6008_v15 = vor.u32 %v8500_v9, %v6007_v8  ;;  %v5935_v16 = vld [vmem:[%s12808_s2 + $0x20] sm:$0xf]  ;;  %v8482_v17 = vld [vmem:[%s12808_s2 + $0x24] sm:$0xf0]  ;;  %v5988_v19 = vor.u32 %v8493_v10, %v5985_v11  ;;  %v74_v24 = vpack.c.bf16 %v9126_v18, %v9126_v18  ;;  %v5927_v26 = vld [vmem:[%s12808_s2 + $0x10] sm:$0xf] }
  0x1c   :  { %299 = vmatpush.bf16.msra.mxu2 %v5932_v3  ;;  %v5999_v20 = vld [vmem:[%s12808_s2 + $0xa0] sm:$0xf]  ;;  %v8498_v21 = vld [vmem:[%s12808_s2 + $0xa4] sm:$0xf0]  ;;  %v5936_v23 = vor.u32 %v8482_v17, %v5935_v16  ;;  %v8480_v27 = vld [vmem:[%s12808_s2 + $0x14] sm:$0xf0] }
  0x1d   :  { %312 = vmatpush.bf16.msra.mxu3 %v5996_v6  ;;  %271 = vmatpush.bf16.msra.mxu0 %v5944_v12  ;;  %v6000_v25 = vor.u32 %v8498_v21, %v5999_v20  ;;  %v5991_v28 = vld [vmem:[%s12808_s2 + $0x90] sm:$0xf]  ;;  %v8496_v29 = vld [vmem:[%s12808_s2 + $0x94] sm:$0xf0]  ;;  %v5928_v30 = vor.u32 %v8480_v27, %v5927_v26  ;;  %v5919_v32 = vld [vmem:[%s12808_s2] sm:$0xf] }
  0x1e   :  { %284 = vmatpush.bf16.msra.mxu1 %v6008_v15  ;;  %v5992_v31 = vor.u32 %v8496_v29, %v5991_v28  ;;  %v8478_v33 = vld [vmem:[%s12808_s2 + $0x4] sm:$0xf0]  ;;  %v5983_v34 = vld [vmem:[%s12808_s2 + $0x80] sm:$0xf]  ;;  %v8516_v38 = vld [vmem:[%s12810_s4 + $0x38] sm:$0xff]  ;;  %vm69_vm8 = vcmask 130048  }
  0x1f   :  { %v8494_v35 = vld [vmem:[%s12808_s2 + $0x84] sm:$0xf0]  ;;  %v5920_v36 = vor.u32 %v8478_v33, %v5919_v32  ;;  %v8515_v39 = vld [vmem:[%s12810_s4 + $0x30] sm:$0xff]  ;;  %v8513_v41 = vld [vmem:[%s12810_s4 + $0x20] sm:$0xff]  ;;  %s5905_s30 = sshll.u32 %s12818_s12, 4  ;;  %s9302_s15 = smov 8   ;;  %s5906_s30 = int_to_ptr.hbm [resolvable:$true] %s5905_s30 }
  0x20   :  { %300 = vmatpush.bf16.msra.mxu2 %v5924_v14  ;;  %v5984_v37 = vor.u32 %v8494_v35, %v5983_v34  ;;  %v8514_v40 = vld [vmem:[%s12810_s4 + $0x28] sm:$0xff]  ;;  %v8512_v42 = vld [vmem:[%s12810_s4 + $0x18] sm:$0xff]  ;;  %v8511_v43 = vld [vmem:[%s12810_s4 + $0x10] sm:$0xff] }
  0x21   :  { %313 = vmatpush.bf16.msra.mxu3 %v5988_v19  ;;  %272 = vmatpush.bf16.msra.mxu0 %v5936_v23  ;;  %v8510_v44 = vld [vmem:[%s12810_s4 + $0x8] sm:$0xff]  ;;  %v8509_v45 = vld [vmem:[%s12810_s4] sm:$0xff]  ;;  %v8532_v48 = vld [vmem:[%s12814_s8 + $0x38] sm:$0xff] }
  0x22   :  { %285 = vmatpush.bf16.msra.mxu1 %v6000_v25  ;;  %v45_v46 = vld [vmem:[%s12809_s3] sm:$0x3]  ;;  %v8531_v52 = vld [vmem:[%s12814_s8 + $0x30] sm:$0xff]  ;;  %v8556_v55 = vld [vmem:[%s12816_s10 + $0x74] sm:$0xf0]  ;;  %s9301_s3 = smov 128  }
  0x23   :  { %301 = vmatmul.bf16.vlgmr.msra.gmra.mxu2 %v73_v22  ;;  %v9593_v47 = vperm.slane %v45_v46, 1  ;;  %v6231_v53 = vld [vmem:[%s12816_s10 + $0x70] sm:$0xf]  ;;  %v9605_v54 = vperm.slane %v45_v46, 0  ;;  %v6223_v58 = vld [vmem:[%s12816_s10 + $0x60] sm:$0xf] }
  0x24   :  { %314 = vmatmul.bf16.vlgmr.msra.gmra.mxu3 %v74_v24  ;;  %661 = vmatpush.bf16.msrb.mxu2 %v8532_v48  ;;  %v6232_v57 = vor.u32 %v8556_v55, %v6231_v53  ;;  %v8554_v59 = vld [vmem:[%s12816_s10 + $0x64] sm:$0xf0]  ;;  %v6215_v2 = vld [vmem:[%s12816_s10 + $0x50] sm:$0xf]  ;;  %v8552_v3 = vld [vmem:[%s12816_s10 + $0x54] sm:$0xf0] }
  0x25   :  { %273 = vmatpush.bf16.msra.mxu0 %v5928_v30  ;;  %v8530_v61 = vld [vmem:[%s12814_s8 + $0x28] sm:$0xff]  ;;  %v6224_v63 = vor.u32 %v8554_v59, %v6223_v58  ;;  %v8529_v8 = vld [vmem:[%s12814_s8 + $0x20] sm:$0xff]  ;;  %v6216_v9 = vor.u32 %v8552_v3, %v6215_v2  ;;  %v8528_v14 = vld [vmem:[%s12814_s8 + $0x18] sm:$0xff] }
  0x26   :  { %286 = vmatpush.bf16.msra.mxu1 %v5992_v31  ;;  %v6207_v11 = vld [vmem:[%s12816_s10 + $0x40] sm:$0xf]  ;;  %v8550_v12 = vld [vmem:[%s12816_s10 + $0x44] sm:$0xf0]  ;;  %v6199_v17 = vld [vmem:[%s12816_s10 + $0x30] sm:$0xf] }
  0x27   :  { %v6208_v15 = vor.u32 %v8550_v12, %v6207_v11  ;;  %v8548_v18 = vld [vmem:[%s12816_s10 + $0x34] sm:$0xf0]  ;;  %v8527_v23 = vld [vmem:[%s12814_s8 + $0x10] sm:$0xff]  ;;  %v6191_v25 = vld [vmem:[%s12816_s10 + $0x20] sm:$0xf] }
  0x28   :  { %662 = vmatpush.bf16.msrb.mxu2 %v8531_v52  ;;  %v8546_v26 = vld [vmem:[%s12816_s10 + $0x24] sm:$0xf0]  ;;  %v6183_v34 = vld [vmem:[%s12816_s10 + $0x10] sm:$0xf]  ;;  %v8544_v35 = vld [vmem:[%s12816_s10 + $0x14] sm:$0xf0] }
  0x29   :  { %274 = vmatpush.bf16.msra.mxu0 %v5920_v36  ;;  %v8526_v29 = vld [vmem:[%s12814_s8 + $0x8] sm:$0xff]  ;;  %v6192_v32 = vor.u32 %v8546_v26, %v6191_v25  ;;  %v8555_v36 = vld [vmem:[%s12816_s10 + $0x74] sm:$0xf]  ;;  %v6175_v46 = vld [vmem:[%s12816_s10] sm:$0xf] }
  0x2a   :  { %287 = vmatpush.bf16.msra.mxu1 %v5984_v37  ;;  %v6233_v37 = vld [vmem:[%s12816_s10 + $0x78] sm:$0xf0]  ;;  %v8542_v48 = vld [vmem:[%s12816_s10 + $0x4] sm:$0xf0]  ;;  %v8549_v3 = vld [vmem:[%s12816_s10 + $0x44] sm:$0xf] }
  0x2b   :  { %v6176_v58 = vor.u32 %v8542_v48, %v6175_v46  ;;  %v8524_v59 = vld [vmem:[%s12812_s6 + $0x38] sm:$0xff]  ;;  %v8543_v12 = vld [vmem:[%s12816_s10 + $0x14] sm:$0xf]  ;;  %v9756_v25 = vld [vmem:[%s12811_s5] ss:$0 sm:$0xff] }
  0x2c   :  { %275 = vmatmul.bf16.vlgmr.msra.gmra.mxu0 %v73_v22  ;;  %663 = vmatpush.bf16.msrb.mxu2 %v8530_v61  ;;  %v8537_v46 = vld [vmem:[%s12814_s8 + $0x60] sm:$0xff] }
  0x2d   :  { %288 = vmatmul.bf16.vlgmr.msra.gmra.mxu1 %v74_v24  ;;  %412 = vmatpush.bf16.msrb.mxu0 %v8516_v38  ;;  %v6200_v24 = vor.u32 %v8548_v18, %v6199_v17  ;;  %v8523_v18 = vld [vmem:[%s12812_s6 + $0x30] sm:$0xff] }
  0x2e   :  { %504 = vmatpush.bf16.msrb.mxu1 %v8524_v59  ;;  %v6287_v59 = vld [vmem:[%s12816_s10 + $0xe0] sm:$0xf] }
  0x30   :  { %664 = vmatpush.bf16.msrb.mxu2 %v8529_v8 }
  0x31   :  { %413 = vmatpush.bf16.msrb.mxu0 %v8515_v39 }
  0x32   :  { %505 = vmatpush.bf16.msrb.mxu1 %v8523_v18  ;;  %v6247_v18 = vld [vmem:[%s12816_s10 + $0x90] sm:$0xf] }
  0x34   :  { %665 = vmatpush.bf16.msrb.mxu2 %v8528_v14 }
  0x35   :  { %414 = vmatpush.bf16.msrb.mxu0 %v8514_v40 }
  0x38   :  { %666 = vmatpush.bf16.msrb.mxu2 %v8527_v23  ;;  %v8518_v23 = vld [vmem:[%s12812_s6 + $0x8] sm:$0xff] }
  0x39   :  { %415 = vmatpush.bf16.msrb.mxu0 %v8513_v41 }
  0x3c   :  { %667 = vmatpush.bf16.msrb.mxu2 %v8526_v29 }
  0x3d   :  { %416 = vmatpush.bf16.msrb.mxu0 %v8512_v42  ;;  %v8525_v42 = vld [vmem:[%s12814_s8] sm:$0xff] }
  0x40   :  { %668 = vmatpush.bf16.msrb.mxu2 %v8525_v42 }
  0x41   :  { %417 = vmatpush.bf16.msrb.mxu0 %v8511_v43 }
  0x45   :  { %418 = vmatpush.bf16.msrb.mxu0 %v8510_v44  ;;  %v6184_v44 = vor.u32 %v8544_v35, %v6183_v34  ;;  %v6295_v34 = vld [vmem:[%s12816_s10 + $0xf0] sm:$0xf]  ;;  %v8572_v35 = vld [vmem:[%s12816_s10 + $0xf4] sm:$0xf0] }
  0x49   :  { %419 = vmatpush.bf16.msrb.mxu0 %v8509_v45  ;;  %v6236_v45 = vor.u32 %v8555_v36, %v6233_v37  ;;  %v8539_v37 = vld [vmem:[%s12814_s8 + $0x70] sm:$0xff] }
  0x4b   :  { %907 = vmatpush.bf16.msra.mxu2 %v6236_v45 }
  0x4d   :  { %881 = vmatpush.bf16.msra.mxu0 %v6232_v57 }
  0x51   :  { %882 = vmatpush.bf16.msra.mxu0 %v6224_v63 }
  0x55   :  { %883 = vmatpush.bf16.msra.mxu0 %v6216_v9  ;;  %v8545_v9 = vld [vmem:[%s12816_s10 + $0x24] sm:$0xf] }
  0x59   :  { %884 = vmatpush.bf16.msra.mxu0 %v6208_v15  ;;  %v8541_v15 = vld [vmem:[%s12816_s10 + $0x4] sm:$0xf] }
  0x5d   :  { %885 = vmatpush.bf16.msra.mxu0 %v6200_v24  ;;  %v8517_v24 = vld [vmem:[%s12812_s6] sm:$0xff] }
  0x61   :  { %886 = vmatpush.bf16.msra.mxu0 %v6192_v32  ;;  %v8540_v32 = vld [vmem:[%s12814_s8 + $0x78] sm:$0xff] }
  0x62   :  { %674 = vmatpush.bf16.msrb.mxu3 %v8540_v32  ;;  %v8563_v32 = vld [vmem:[%s12816_s10 + $0xb4] sm:$0xf] }
  0x65   :  { %887 = vmatpush.bf16.msra.mxu0 %v6184_v44 }
  0x66   :  { %675 = vmatpush.bf16.msrb.mxu3 %v8539_v37  ;;  %v6257_v37 = vld [vmem:[%s12816_s10 + $0xa8] sm:$0xf0] }
  0x69   :  { %888 = vmatpush.bf16.msra.mxu0 %v6176_v58  ;;  %v8536_v58 = vld [vmem:[%s12814_s8 + $0x58] sm:$0xff] }
  0xa6   :  { %v302_v49 = vpop.f32.mrf.mxu2 }
  0xa7   :  { %v303_v50 = vadd.f32 %v302_v49, %v9593_v47  ;;  %v315_v51 = vpop.f32.mrf.mxu3 }
  0xa9   :  { %v9610_v56 = vadd.f32 %v315_v51, %v303_v50  ;;  %v276_v62 = vpop.f32.mrf.mxu0  ;;  %v8553_v50 = vld [vmem:[%s12816_s10 + $0x64] sm:$0xf]  ;;  %v6225_v51 = vld [vmem:[%s12816_s10 + $0x68] sm:$0xf0] }
  0xaa   :  { %v277_v0 = vadd.f32 %v276_v62, %v9605_v54  ;;  %v289_v1 = vpop.f32.mrf.mxu1  ;;  %v6217_v62 = vld [vmem:[%s12816_s10 + $0x58] sm:$0xf0] }
  0xab   :  { %v322_v60 = vmin.f32 %v9610_v56, 20.0  ;;  %vm320_vm1 = vcmp.gt.f32.partialorder %v9610_v56, 20.0 }
  0xac   :  { %v9629_v6 = vadd.f32 %v289_v1, %v277_v0 }
  0xad   :  { %v325_v4 = vmul.f32 1.442695, %v322_v60  ;;  %v6228_v60 = vor.u32 %v8553_v50, %v6225_v51 }
  0xae   :  { %v304_v5 = vpop.f32.mrf.mxu2  ;;  %v321_v10 = vmin.f32 %v9629_v6, 20.0  ;;  %vm319_vm3 = vcmp.gt.f32.partialorder %v9629_v6, 20.0 }
  0xaf   :  { %9127 = vpow2.f32 %v325_v4  ;;  %v317_v7 = vpop.f32.mrf.mxu3  ;;  %908 = vmatpush.bf16.msra.mxu2 %v6228_v60  ;;  %v6209_v4 = vld [vmem:[%s12816_s10 + $0x48] sm:$0xf0]  ;;  %v8570_v60 = vld [vmem:[%s12816_s10 + $0xe4] sm:$0xf0] }
  0xb0   :  { %v323_v13 = vmul.f32 1.442695, %v321_v10  ;;  %v6212_v5 = vor.u32 %v8549_v3, %v6209_v4  ;;  %v8547_v7 = vld [vmem:[%s12816_s10 + $0x34] sm:$0xf]  ;;  %v6193_v10 = vld [vmem:[%s12816_s10 + $0x28] sm:$0xf0] }
  0xb1   :  { %v278_v16 = vpop.f32.mrf.mxu0  ;;  %v6196_v11 = vor.u32 %v8545_v9, %v6193_v10  ;;  %v8566_v3 = vld [vmem:[%s12816_s10 + $0xc4] sm:$0xf0]  ;;  %v6297_v9 = vld [vmem:[%s12816_s10 + $0xf8] sm:$0xf0] }
  0xb2   :  { %9129 = vpow2.f32 %v323_v13  ;;  %v291_v19 = vpop.f32.mrf.mxu1  ;;  %v6185_v13 = vld [vmem:[%s12816_s10 + $0x18] sm:$0xf0]  ;;  %v6177_v16 = vld [vmem:[%s12816_s10 + $0x8] sm:$0xf0] }
  0xb3   :  { %v6188_v14 = vor.u32 %v8543_v12, %v6185_v13  ;;  %v6180_v17 = vor.u32 %v8541_v15, %v6177_v16  ;;  %v8522_v19 = vld [vmem:[%s12812_s6 + $0x28] sm:$0xff]  ;;  %v6255_v12 = vld [vmem:[%s12816_s10 + $0xa0] sm:$0xf] }
  0xb4   :  { %506 = vmatpush.bf16.msrb.mxu1 %v8522_v19  ;;  %v8562_v13 = vld [vmem:[%s12816_s10 + $0xa4] sm:$0xf0]  ;;  %v6289_v15 = vld [vmem:[%s12816_s10 + $0xe8] sm:$0xf0]  ;;  %v8560_v19 = vld [vmem:[%s12816_s10 + $0x94] sm:$0xf0] }
  0xb5   :  { %v9128_v20 = vpop.eup %9127  ;;  %v6256_v16 = vor.u32 %v8562_v13, %v6255_v12  ;;  %v6335_v13 = vld [vmem:[%s12808_s2 + $0x40] sm:$0xf] }
  0xb6   :  { %v336_v21 = vadd.f32 1.0, %v9128_v20  ;;  %v339_v22 = vmul.f32 -0.5, %v9128_v20  ;;  %v342_v33 = vand.u32 2147483647, %v9128_v20 }
  0xb8   :  { %9131 = vlog2.f32 %v336_v21  ;;  %v9130_v27 = vpop.eup %9129  ;;  %v340_v28 = vadd.f32 1.0, %v339_v22  ;;  %vm343_vm0 = vcmp.lt.f32.partialorder %v342_v33, 0.0004427343  ;;  %v8520_v21 = vld [vmem:[%s12812_s6 + $0x18] sm:$0xff]  ;;  %v8519_v22 = vld [vmem:[%s12812_s6 + $0x10] sm:$0xff] }
  0xb9   :  { %v327_v30 = vadd.f32 1.0, %v9130_v27  ;;  %v330_v31 = vmul.f32 -0.5, %v9130_v27  ;;  %v333_v43 = vand.u32 2147483647, %v9130_v27 }
  0xba   :  { %v341_v41 = vmul.f32 %v9128_v20, %v340_v28  ;;  %v8521_v20 = vld [vmem:[%s12812_s6 + $0x20] sm:$0xff] }
  0xbb   :  { %9133 = vlog2.f32 %v327_v30  ;;  %v331_v39 = vadd.f32 1.0, %v330_v31  ;;  %vm334_vm2 = vcmp.lt.f32.partialorder %v333_v43, 0.0004427343  ;;  %507 = vmatpush.bf16.msrb.mxu1 %v8521_v20  ;;  %v8567_v20 = vld [vmem:[%s12816_s10 + $0xd4] sm:$0xf] }
  0xbd   :  { %v332_v53 = vmul.f32 %v9130_v27, %v331_v39 }
  0xbe   :  { %v9132_v38 = vpop.eup %9131 }
  0xbf   :  { %v338_v40 = vmul.f32 0.6931472, %v9132_v38  ;;  %508 = vmatpush.bf16.msrb.mxu1 %v8520_v21  ;;  %v6296_v38 = vor.u32 %v8572_v35, %v6295_v34  ;;  %v6281_v21 = vld [vmem:[%s12816_s10 + $0xd8] sm:$0xf0]  ;;  %v9870_v34 = vld [vmem:[%s12813_s7] ss:$0 sm:$0xff] }
  0xc1   :  { %v344_v49 = vsel %vm343_vm0, %v341_v41, %v338_v40  ;;  %v9134_v55 = vpop.eup %9133  ;;  %v8538_v41 = vld [vmem:[%s12814_s8 + $0x68] sm:$0xff] }
  0xc2   :  { %v346_v52 = vsel %vm320_vm1, %v9610_v56, %v344_v49  ;;  %v329_v61 = vmul.f32 0.6931472, %v9134_v55  ;;  %v8551_v56 = vld [vmem:[%s12816_s10 + $0x54] sm:$0xf]  ;;  %676 = vmatpush.bf16.msrb.mxu3 %v8538_v41 }
  0xc3   :  { %v347_v57 = vpack.c.bf16 %v346_v52, %v346_v52  ;;  %v6220_v1 = vor.u32 %v8551_v56, %v6217_v62  ;;  %509 = vmatpush.bf16.msrb.mxu1 %v8519_v22  ;;  %v8535_v56 = vld [vmem:[%s12814_s8 + $0x50] sm:$0xff]  ;;  %v6248_v22 = vor.u32 %v8560_v19, %v6247_v18  ;;  %v8581_v18 = vld [vmem:[%s12808_s2 + $0x44] sm:$0xf]  ;;  %v6337_v19 = vld [vmem:[%s12808_s2 + $0x48] sm:$0xf0] }
  0xc4   :  { %v335_v63 = vsel %vm334_vm2, %v332_v53, %v329_v61  ;;  %v6288_v61 = vor.u32 %v8570_v60, %v6287_v59  ;;  %v6279_v62 = vld [vmem:[%s12816_s10 + $0xd0] sm:$0xf]  ;;  %v8559_v41 = vld [vmem:[%s12816_s10 + $0x94] sm:$0xf] }
  0xc5   :  { %420 = vmatmul.bf16.vlgmr.msrb.gmra.mxu0 %v347_v57  ;;  %v345_v0 = vsel %vm319_vm3, %v9629_v6, %v335_v63  ;;  %909 = vmatpush.bf16.msra.mxu2 %v6220_v1  ;;  %v6201_v6 = vld [vmem:[%s12816_s10 + $0x38] sm:$0xf0]  ;;  %v8568_v63 = vld [vmem:[%s12816_s10 + $0xd4] sm:$0xf0]  ;;  %v8534_v1 = vld [vmem:[%s12814_s8 + $0x48] sm:$0xff] }
  0xc6   :  { %v531_v2 = vpack.c.bf16 %v345_v0, %v345_v0  ;;  %v6204_v8 = vor.u32 %v8547_v7, %v6201_v6  ;;  %677 = vmatpush.bf16.msrb.mxu3 %v8537_v46  ;;  %v6280_v0 = vor.u32 %v8568_v63, %v6279_v62  ;;  %v8564_v7 = vld [vmem:[%s12816_s10 + $0xb4] sm:$0xf0]  ;;  %v8533_v6 = vld [vmem:[%s12814_s8 + $0x40] sm:$0xff] }
  0xc7   :  { %510 = vmatpush.bf16.msrb.mxu1 %v8518_v23  ;;  %v6284_v23 = vor.u32 %v8567_v20, %v6281_v21  ;;  %v8557_v46 = vld [vmem:[%s12816_s10 + $0x84] sm:$0xf]  ;;  %v6351_v63 = vld [vmem:[%s12808_s2 + $0x60] sm:$0xf] }
  0xc8   :  { %669 = vmatmul.bf16.vlgmr.msrb.gmra.mxu2 %v531_v2 }
  0xc9   :  { %910 = vmatpush.bf16.msra.mxu2 %v6212_v5  ;;  %v6263_v5 = vld [vmem:[%s12816_s10 + $0xb0] sm:$0xf] }
  0xca   :  { %678 = vmatpush.bf16.msrb.mxu3 %v8536_v58  ;;  %v6264_v10 = vor.u32 %v8564_v7, %v6263_v5  ;;  %v8587_v58 = vld [vmem:[%s12808_s2 + $0x74] sm:$0xf]  ;;  %v6343_v5 = vld [vmem:[%s12808_s2 + $0x50] sm:$0xf]  ;;  %v8584_v7 = vld [vmem:[%s12808_s2 + $0x54] sm:$0xf0] }
  0xcb   :  { %511 = vmatpush.bf16.msrb.mxu1 %v8517_v24  ;;  %v6239_v24 = vld [vmem:[%s12816_s10 + $0x80] sm:$0xf] }
  0xcd   :  { %911 = vmatpush.bf16.msra.mxu2 %v6204_v8  ;;  %v8571_v8 = vld [vmem:[%s12816_s10 + $0xf4] sm:$0xf] }
  0xce   :  { %679 = vmatpush.bf16.msrb.mxu3 %v8535_v56  ;;  %v6361_v56 = vld [vmem:[%s12808_s2 + $0x78] sm:$0xf0] }
  0xcf   :  { %894 = vmatpush.bf16.msra.mxu1 %v6296_v38  ;;  %v6364_v62 = vor.u32 %v8587_v58, %v6361_v56  ;;  %v6415_v58 = vld [vmem:[%s12808_s2 + $0xe0] sm:$0xf]  ;;  %v6417_v56 = vld [vmem:[%s12808_s2 + $0xe8] sm:$0xf0] }
  0xd1   :  { %912 = vmatpush.bf16.msra.mxu2 %v6196_v11  ;;  %v6300_v11 = vor.u32 %v8571_v8, %v6297_v9  ;;  %v6345_v8 = vld [vmem:[%s12808_s2 + $0x58] sm:$0xf0] }
  0xd2   :  { %680 = vmatpush.bf16.msrb.mxu3 %v8534_v1  ;;  %v8585_v1 = vld [vmem:[%s12808_s2 + $0x64] sm:$0xf] }
  0xd3   :  { %895 = vmatpush.bf16.msra.mxu1 %v6288_v61 }
  0xd5   :  { %889 = vmatmul.bf16.vlgmr.msra.gmra.mxu0 %v531_v2  ;;  %913 = vmatpush.bf16.msra.mxu2 %v6188_v14  ;;  %v8569_v14 = vld [vmem:[%s12816_s10 + $0xe4] sm:$0xf] }
  0xd6   :  { %681 = vmatpush.bf16.msrb.mxu3 %v8533_v6  ;;  %v8583_v6 = vld [vmem:[%s12808_s2 + $0x54] sm:$0xf] }
  0xd7   :  { %896 = vmatpush.bf16.msra.mxu1 %v6280_v0  ;;  %v8586_v0 = vld [vmem:[%s12808_s2 + $0x64] sm:$0xf0]  ;;  %v6348_v12 = vor.u32 %v8583_v6, %v6345_v8  ;;  %v8599_v6 = vld [vmem:[%s12808_s2 + $0xd4] sm:$0xf] }
  0xd9   :  { %914 = vmatpush.bf16.msra.mxu2 %v6180_v17  ;;  %v6292_v17 = vor.u32 %v8569_v14, %v6289_v15  ;;  %v8582_v14 = vld [vmem:[%s12808_s2 + $0x44] sm:$0xf0] }
  0xda   :  { %920 = vmatpush.bf16.msra.mxu3 %v6300_v11  ;;  %v6344_v11 = vor.u32 %v8584_v7, %v6343_v5  ;;  %v6336_v20 = vor.u32 %v8582_v14, %v6335_v13  ;;  %v6407_v5 = vld [vmem:[%s12808_s2 + $0xd0] sm:$0xf]  ;;  %v8600_v7 = vld [vmem:[%s12808_s2 + $0xd4] sm:$0xf0]  ;;  %v8597_v13 = vld [vmem:[%s12808_s2 + $0xc4] sm:$0xf] }
  0xdb   :  { %v6408_v8 = vor.u32 %v8600_v7, %v6407_v5 }
  0xdc   :  { %915 = vmatmul.bf16.vlgmr.msra.gmra.mxu2 %v531_v2  ;;  %v6271_v2 = vld [vmem:[%s12816_s10 + $0xc0] sm:$0xf] }
  0xdd   :  { %v6272_v4 = vor.u32 %v8566_v3, %v6271_v2  ;;  %v6352_v2 = vor.u32 %v8586_v0, %v6351_v63  ;;  %v6353_v3 = vld [vmem:[%s12808_s2 + $0x68] sm:$0xf0]  ;;  %1161 = vmatpush.bf16.msrb.mxu2 %v6364_v62  ;;  %v6303_v62 = vld [vmem:[%s12808_s2] sm:$0xf]  ;;  %v8574_v63 = vld [vmem:[%s12808_s2 + $0x4] sm:$0xf0] }
  0xde   :  { %921 = vmatpush.bf16.msra.mxu3 %v6292_v17 }
  0xdf   :  { %897 = vmatpush.bf16.msra.mxu1 %v6272_v4  ;;  %v6356_v4 = vor.u32 %v8585_v1, %v6353_v3  ;;  %v6304_v1 = vor.u32 %v8574_v63, %v6303_v62  ;;  %v6305_v3 = vld [vmem:[%s12808_s2 + $0x8] sm:$0xf0] }
  0xe1   :  { %1162 = vmatpush.bf16.msrb.mxu2 %v6356_v4 }
  0xe2   :  { %922 = vmatpush.bf16.msra.mxu3 %v6284_v23  ;;  %v6340_v23 = vor.u32 %v8581_v18, %v6337_v19  ;;  %v8596_v18 = vld [vmem:[%s12808_s2 + $0xb4] sm:$0xf0]  ;;  %v8595_v19 = vld [vmem:[%s12808_s2 + $0xb4] sm:$0xf] }
  0xe3   :  { %898 = vmatpush.bf16.msra.mxu1 %v6264_v10 }
  0xe5   :  { %1163 = vmatpush.bf16.msrb.mxu2 %v6348_v12  ;;  %v8598_v12 = vld [vmem:[%s12808_s2 + $0xc4] sm:$0xf0] }
  0xe7   :  { %899 = vmatpush.bf16.msra.mxu1 %v6256_v16 }
  0xe9   :  { %1164 = vmatpush.bf16.msrb.mxu2 %v6340_v23  ;;  %v6383_v23 = vld [vmem:[%s12808_s2 + $0xa0] sm:$0xf] }
  0xeb   :  { %900 = vmatpush.bf16.msra.mxu1 %v6248_v22 }
 0x142   :  { %v421_v26 = vpop.f32.mrf.mxu0 }
 0x143   :  { %v422_v27 = vadd.f32 %v9756_v25, %v421_v26  ;;  %v8558_v26 = vld [vmem:[%s12816_s10 + $0x84] sm:$0xf0] }
 0x145   :  { %v426_v28 = vmin.f32 %v422_v27, 20.0  ;;  %vm425_vm5 = vcmp.gt.f32.partialorder %v422_v27, 20.0 }
 0x147   :  { %v427_v29 = vmul.f32 1.442695, %v426_v28  ;;  %v6273_v28 = vld [vmem:[%s12816_s10 + $0xc8] sm:$0xf0] }
 0x149   :  { %9135 = vpow2.f32 %v427_v29  ;;  %v6240_v29 = vor.u32 %v8558_v26, %v6239_v24  ;;  %v6327_v26 = vld [vmem:[%s12808_s2 + $0x30] sm:$0xf] }
 0x14a   :  { %v423_v30 = vpop.f32.mrf.mxu0 }
 0x14b   :  { %v9759_v31 = vpop.f32.mrf.mxu2  ;;  %901 = vmatpush.bf16.msra.mxu1 %v6240_v29 }
 0x14f   :  { %v9136_v33 = vpop.eup %9135 }
 0x150   :  { %v429_v36 = vadd.f32 1.0, %v9136_v33  ;;  %v432_v39 = vmul.f32 -0.5, %v9136_v33  ;;  %v435_v44 = vand.u32 2147483647, %v9136_v33 }
 0x152   :  { %9137 = vlog2.f32 %v429_v36  ;;  %v9773_v40 = vpop.f32.mrf.mxu0  ;;  %v433_v42 = vadd.f32 1.0, %v432_v39  ;;  %vm436_vm4 = vcmp.lt.f32.partialorder %v435_v44, 0.0004427343  ;;  %v8561_v36 = vld [vmem:[%s12816_s10 + $0xa4] sm:$0xf] }
 0x153   :  { %v672_v43 = vpop.f32.mrf.mxu2  ;;  %v6260_v38 = vor.u32 %v8561_v36, %v6257_v37  ;;  %v8577_v36 = vld [vmem:[%s12808_s2 + $0x24] sm:$0xf] }
 0x154   :  { %v434_v49 = vmul.f32 %v9136_v33, %v433_v42  ;;  %v6265_v33 = vld [vmem:[%s12816_s10 + $0xb8] sm:$0xf0] }
 0x155   :  { %v6268_v35 = vor.u32 %v8563_v32, %v6265_v33  ;;  %v6249_v42 = vld [vmem:[%s12816_s10 + $0x98] sm:$0xf0]  ;;  %v6319_v33 = vld [vmem:[%s12808_s2 + $0x20] sm:$0xf] }
 0x158   :  { %v9138_v45 = vpop.eup %9137 }
 0x159   :  { %v431_v48 = vmul.f32 0.6931472, %v9138_v45  ;;  %v6252_v45 = vor.u32 %v8559_v41, %v6249_v42  ;;  %v6423_v41 = vld [vmem:[%s12808_s2 + $0xf0] sm:$0xf]  ;;  %v8604_v42 = vld [vmem:[%s12808_s2 + $0xf4] sm:$0xf0] }
 0x15a   :  { %v892_v50 = vpop.f32.mrf.mxu0 }
 0x15b   :  { %v437_v51 = vsel %vm436_vm4, %v434_v49, %v431_v48  ;;  %v6241_v48 = vld [vmem:[%s12816_s10 + $0x88] sm:$0xf0] }
 0x15c   :  { %v438_v52 = vsel %vm425_vm5, %v422_v27, %v437_v51  ;;  %v8565_v27 = vld [vmem:[%s12816_s10 + $0xc4] sm:$0xf]  ;;  %v6244_v50 = vor.u32 %v8557_v46, %v6241_v48 }
 0x15d   :  { %v439_v53 = vpack.c.bf16 %v438_v52, %v438_v52  ;;  %v6276_v30 = vor.u32 %v8565_v27, %v6273_v28  ;;  %v8580_v27 = vld [vmem:[%s12808_s2 + $0x34] sm:$0xf0]  ;;  %v8579_v28 = vld [vmem:[%s12808_s2 + $0x34] sm:$0xf]  ;;  %v9978_v46 = vld [vmem:[%s12806_s0] sm:$0xff] }
 0x15e   :  { %v6328_v29 = vor.u32 %v8580_v27, %v6327_v26  ;;  %70 = vst.msk [vmem:[#allocation2] sm:$0xff] %vm69_vm8, %v9978_v46  ;;  %v8593_v26 = vld [vmem:[%s12808_s2 + $0xa4] sm:$0xf] }
 0x15f   :  { %512 = vmatmul.bf16.vlgmr.msrb.gmra.mxu1 %v439_v53  ;;  %v9781_v55 = vpop.f32.mrf.mxu2  ;;  %923 = vmatpush.bf16.msra.mxu3 %v6276_v30  ;;  %v6359_v53 = vld [vmem:[%s12808_s2 + $0x70] sm:$0xf]  ;;  %v6329_v30 = vld [vmem:[%s12808_s2 + $0x38] sm:$0xf0] }
 0x160   :  { %v6332_v32 = vor.u32 %v8579_v28, %v6329_v30  ;;  %v6385_v28 = vld [vmem:[%s12808_s2 + $0xa8] sm:$0xf0]  ;;  %v63_v30 = vld [vmem:[%s12817_s11] sm:$0x3] }
 0x162   :  { %1165 = vmatpush.bf16.msrb.mxu2 %v6332_v32  ;;  %v6375_v32 = vld [vmem:[%s12808_s2 + $0x90] sm:$0xf] }
 0x163   :  { %924 = vmatpush.bf16.msra.mxu3 %v6268_v35  ;;  %v8578_v35 = vld [vmem:[%s12808_s2 + $0x24] sm:$0xf0] }
 0x164   :  { %v6320_v37 = vor.u32 %v8578_v35, %v6319_v33  ;;  %v8592_v33 = vld [vmem:[%s12808_s2 + $0x94] sm:$0xf0]  ;;  %v8591_v35 = vld [vmem:[%s12808_s2 + $0x94] sm:$0xf] }
 0x167   :  { %v918_v57 = vpop.f32.mrf.mxu2  ;;  %925 = vmatpush.bf16.msra.mxu3 %v6260_v38  ;;  %v6321_v38 = vld [vmem:[%s12808_s2 + $0x28] sm:$0xf0] }
 0x168   :  { %v8588_v57 = vld [vmem:[%s12808_s2 + $0x74] sm:$0xf0] }
 0x169   :  { %v6360_v61 = vor.u32 %v8588_v57, %v6359_v53  ;;  %v6313_v53 = vld [vmem:[%s12808_s2 + $0x18] sm:$0xf0] }
 0x16b   :  { %926 = vmatpush.bf16.msra.mxu3 %v6252_v45  ;;  %1135 = vmatpush.bf16.msrb.mxu0 %v6360_v61  ;;  %v6425_v45 = vld [vmem:[%s12808_s2 + $0xf8] sm:$0xf0] }
 0x16f   :  { %927 = vmatpush.bf16.msra.mxu3 %v6244_v50  ;;  %1136 = vmatpush.bf16.msrb.mxu0 %v6352_v2  ;;  %v8576_v50 = vld [vmem:[%s12808_s2 + $0x14] sm:$0xf0]  ;;  %v8573_v2 = vld [vmem:[%s12808_s2 + $0x4] sm:$0xf] }
 0x170   :  { %v6308_v4 = vor.u32 %v8573_v2, %v6305_v3 }
 0x173   :  { %1137 = vmatpush.bf16.msrb.mxu0 %v6344_v11  ;;  %v6399_v11 = vld [vmem:[%s12808_s2 + $0xc0] sm:$0xf] }
 0x174   :  { %v6400_v14 = vor.u32 %v8598_v12, %v6399_v11  ;;  %v8625_v11 = vld [vmem:[%s12814_s8 + $0x20] sm:$0xff]  ;;  %v8610_v12 = vld [vmem:[%s12810_s4 + $0x28] sm:$0xff] }
 0x177   :  { %1138 = vmatpush.bf16.msrb.mxu0 %v6336_v20 }
 0x17b   :  { %1139 = vmatpush.bf16.msrb.mxu0 %v6328_v29  ;;  %v6388_v29 = vor.u32 %v8593_v26, %v6385_v28  ;;  %v6609_v28 = vld [vmem:[%s12816_s10 + $0x68] sm:$0xf0] }
 0x17f   :  { %1140 = vmatpush.bf16.msrb.mxu0 %v6320_v37  ;;  %v6377_v37 = vld [vmem:[%s12808_s2 + $0x98] sm:$0xf0] }
 0x1dc   :  { %v513_v39 = vpop.f32.mrf.mxu1 }
 0x1dd   :  { %v514_v43 = vadd.f32 %v9870_v34, %v513_v39  ;;  %v6324_v39 = vor.u32 %v8577_v36, %v6321_v38  ;;  %v6376_v36 = vor.u32 %v8592_v33, %v6375_v32  ;;  %v6367_v38 = vld [vmem:[%s12808_s2 + $0x80] sm:$0xf]  ;;  %v6615_v33 = vld [vmem:[%s12816_s10 + $0x70] sm:$0xf] }
 0x1de   :  { %v8605_v32 = vld [vmem:[%s12810_s4] sm:$0xff] }
 0x1df   :  { %v518_v44 = vmin.f32 %v514_v43, 20.0  ;;  %vm517_vm7 = vcmp.gt.f32.partialorder %v514_v43, 20.0  ;;  %1166 = vmatpush.bf16.msrb.mxu2 %v6324_v39  ;;  %v8590_v39 = vld [vmem:[%s12808_s2 + $0x84] sm:$0xf0] }
 0x1e1   :  { %v519_v49 = vmul.f32 1.442695, %v518_v44  ;;  %v6424_v44 = vor.u32 %v8604_v42, %v6423_v41  ;;  %v6380_v41 = vor.u32 %v8591_v35, %v6377_v37  ;;  %v8589_v42 = vld [vmem:[%s12808_s2 + $0x84] sm:$0xf]  ;;  %v8652_v35 = vld [vmem:[%s12816_s10 + $0x74] sm:$0xf0] }
 0x1e2   :  { %v8647_v37 = vld [vmem:[%s12816_s10 + $0x54] sm:$0xf] }
 0x1e3   :  { %9139 = vpow2.f32 %v519_v49  ;;  %v6311_v49 = vld [vmem:[%s12808_s2 + $0x10] sm:$0xf]  ;;  %1148 = vmatpush.bf16.msrb.mxu1 %v6424_v44 }
 0x1e4   :  { %v515_v51 = vpop.f32.mrf.mxu1 }
 0x1e5   :  { %v6312_v51 = vor.u32 %v8576_v50, %v6311_v49 }
 0x1e7   :  { %1141 = vmatpush.bf16.msrb.mxu0 %v6312_v51  ;;  %v9263_v51 = vld [vmem:[%s12807_s1] sm:$0xff] }
 0x1e9   :  { %v9140_v52 = vpop.eup %9139 }
 0x1ea   :  { %v521_v59 = vadd.f32 1.0, %v9140_v52  ;;  %v524_v60 = vmul.f32 -0.5, %v9140_v52  ;;  %v527_v10 = vand.u32 2147483647, %v9140_v52 }
 0x1eb   :  { %1142 = vmatpush.bf16.msrb.mxu0 %v6304_v1 }
 0x1ec   :  { %9141 = vlog2.f32 %v521_v59  ;;  %v525_v9 = vadd.f32 1.0, %v524_v60  ;;  %vm528_vm6 = vcmp.lt.f32.partialorder %v527_v10, 0.0004427343  ;;  %v8602_v59 = vld [vmem:[%s12808_s2 + $0xe4] sm:$0xf0] }
 0x1ed   :  { %v8601_v60 = vld [vmem:[%s12808_s2 + $0xe4] sm:$0xf]  ;;  %v6416_v61 = vor.u32 %v8602_v59, %v6415_v58 }
 0x1ee   :  { %v526_v17 = vmul.f32 %v9140_v52, %v525_v9  ;;  %v8575_v52 = vld [vmem:[%s12808_s2 + $0x14] sm:$0xf]  ;;  %v6420_v0 = vor.u32 %v8601_v60, %v6417_v56  ;;  %v6409_v9 = vld [vmem:[%s12808_s2 + $0xd8] sm:$0xf0] }
 0x1ef   :  { %v6316_v57 = vor.u32 %v8575_v52, %v6313_v53  ;;  %1149 = vmatpush.bf16.msrb.mxu1 %v6416_v61  ;;  %v6412_v10 = vor.u32 %v8599_v6, %v6409_v9  ;;  %v8628_v6 = vld [vmem:[%s12814_s8 + $0x38] sm:$0xff]  ;;  %v8626_v9 = vld [vmem:[%s12814_s8 + $0x28] sm:$0xff] }
 0x1f1   :  { %1167 = vmatpush.bf16.msrb.mxu2 %v6316_v57 }
 0x1f2   :  { %v9142_v15 = vpop.eup %9141 }
 0x1f3   :  { %v523_v16 = vmul.f32 0.6931472, %v9142_v15  ;;  %1150 = vmatpush.bf16.msrb.mxu1 %v6408_v8  ;;  %v6401_v15 = vld [vmem:[%s12808_s2 + $0xc8] sm:$0xf0]  ;;  %v8612_v8 = vld [vmem:[%s12810_s4 + $0x38] sm:$0xff] }
 0x1f4   :  { %1280 = vmatpush.bf16.msra.mxu0 %v8612_v8 }
 0x1f5   :  { %v529_v21 = vsel %vm528_vm6, %v526_v17, %v523_v16  ;;  %1168 = vmatpush.bf16.msrb.mxu2 %v6308_v4  ;;  %v6404_v16 = vor.u32 %v8597_v13, %v6401_v15  ;;  %v6391_v17 = vld [vmem:[%s12808_s2 + $0xb0] sm:$0xf]  ;;  %v8624_v13 = vld [vmem:[%s12814_s8 + $0x18] sm:$0xff] }
 0x1f6   :  { %v530_v22 = vsel %vm517_vm7, %v514_v43, %v529_v21  ;;  %v8603_v43 = vld [vmem:[%s12808_s2 + $0xf4] sm:$0xf]  ;;  %v6392_v20 = vor.u32 %v8596_v18, %v6391_v17  ;;  %v6393_v21 = vld [vmem:[%s12808_s2 + $0xb8] sm:$0xf0]  ;;  %v8622_v17 = vld [vmem:[%s12814_s8 + $0x8] sm:$0xff] }
 0x1f7   :  { %v532_v24 = vpack.c.bf16 %v530_v22, %v530_v22  ;;  %v6428_v48 = vor.u32 %v8603_v43, %v6425_v45  ;;  %1151 = vmatpush.bf16.msrb.mxu1 %v6400_v14  ;;  %v6396_v22 = vor.u32 %v8595_v19, %v6393_v21  ;;  %v6369_v43 = vld [vmem:[%s12808_s2 + $0x88] sm:$0xf0]  ;;  %v6368_v45 = vor.u32 %v8590_v39, %v6367_v38  ;;  %v8609_v14 = vld [vmem:[%s12810_s4 + $0x20] sm:$0xff]  ;;  %v8623_v15 = vld [vmem:[%s12814_s8 + $0x10] sm:$0xff] }
 0x1f8   :  { %v6372_v50 = vor.u32 %v8589_v42, %v6369_v43  ;;  %v8607_v19 = vld [vmem:[%s12810_s4 + $0x10] sm:$0xff]  ;;  %v6601_v38 = vld [vmem:[%s12816_s10 + $0x58] sm:$0xf0]  ;;  %v8650_v42 = vld [vmem:[%s12816_s10 + $0x64] sm:$0xf0] }
 0x1f9   :  { %682 = vmatmul.bf16.vlgmr.msrb.gmra.mxu3 %v532_v24  ;;  %902 = vmatmul.bf16.vlgmr.msra.gmra.mxu1 %v532_v24  ;;  %v8651_v21 = vld [vmem:[%s12816_s10 + $0x74] sm:$0xf]  ;;  %v6604_v39 = vor.u32 %v8647_v37, %v6601_v38 }
 0x1fa   :  { %1174 = vmatpush.bf16.msrb.mxu3 %v6428_v48  ;;  %v10093_v48 = vperm.slane %v63_v30, 0  ;;  %1529 = vmatpush.bf16.msra.mxu2 %v8628_v6  ;;  %v8644_v6 = vld [vmem:[%s12816_s10 + $0x34] sm:$0xf0] }
 0x1fb   :  { %1152 = vmatpush.bf16.msrb.mxu1 %v6392_v20  ;;  %v8621_v20 = vld [vmem:[%s12814_s8] sm:$0xff] }
 0x1fe   :  { %1175 = vmatpush.bf16.msrb.mxu3 %v6420_v0  ;;  %v10115_v0 = vperm.slane %v63_v30, 1 }
 0x202   :  { %1176 = vmatpush.bf16.msrb.mxu3 %v6412_v10  ;;  %v8611_v10 = vld [vmem:[%s12810_s4 + $0x30] sm:$0xff] }
 0x203   :  { %1281 = vmatpush.bf16.msra.mxu0 %v8611_v10  ;;  %v6569_v10 = vld [vmem:[%s12816_s10 + $0x18] sm:$0xf0] }
 0x206   :  { %1177 = vmatpush.bf16.msrb.mxu3 %v6404_v16  ;;  %v8608_v16 = vld [vmem:[%s12810_s4 + $0x18] sm:$0xff] }
 0x207   :  { %1282 = vmatpush.bf16.msra.mxu0 %v8610_v12  ;;  %v6575_v12 = vld [vmem:[%s12816_s10 + $0x20] sm:$0xf] }
 0x209   :  { %928 = vmatmul.bf16.vlgmr.msra.gmra.mxu3 %v532_v24  ;;  %v8594_v24 = vld [vmem:[%s12808_s2 + $0xa4] sm:$0xf0] }
 0x20a   :  { %1178 = vmatpush.bf16.msrb.mxu3 %v6396_v22  ;;  %v6384_v27 = vor.u32 %v8594_v24, %v6383_v23  ;;  %v6617_v22 = vld [vmem:[%s12816_s10 + $0x78] sm:$0xf0]  ;;  %v8606_v24 = vld [vmem:[%s12810_s4 + $0x8] sm:$0xff] }
 0x20b   :  { %1283 = vmatpush.bf16.msra.mxu0 %v8609_v14  ;;  %v6620_v23 = vor.u32 %v8651_v21, %v6617_v22  ;;  %v8637_v14 = vld [vmem:[%s12816_s10 + $0x4] sm:$0xf]  ;;  %v8640_v21 = vld [vmem:[%s12816_s10 + $0x14] sm:$0xf0] }
 0x20c   :  { %1153 = vmatpush.bf16.msrb.mxu1 %v6384_v27  ;;  %v8649_v27 = vld [vmem:[%s12816_s10 + $0x64] sm:$0xf] }
 0x20e   :  { %1179 = vmatpush.bf16.msrb.mxu3 %v6388_v29  ;;  %v6612_v29 = vor.u32 %v8649_v27, %v6609_v28 }
 0x20f   :  { %1284 = vmatpush.bf16.msra.mxu0 %v8608_v16 }
 0x210   :  { %1154 = vmatpush.bf16.msrb.mxu1 %v6376_v36  ;;  %v6616_v36 = vor.u32 %v8652_v35, %v6615_v33 }
 0x212   :  { %1180 = vmatpush.bf16.msrb.mxu3 %v6380_v41  ;;  %v6607_v41 = vld [vmem:[%s12816_s10 + $0x60] sm:$0xf] }
 0x213   :  { %1285 = vmatpush.bf16.msra.mxu0 %v8607_v19  ;;  %v6608_v43 = vor.u32 %v8650_v42, %v6607_v41  ;;  %v8620_v41 = vld [vmem:[%s12812_s6 + $0x38] sm:$0xff] }
 0x214   :  { %1155 = vmatpush.bf16.msrb.mxu1 %v6368_v45  ;;  %v8645_v45 = vld [vmem:[%s12816_s10 + $0x44] sm:$0xf] }
 0x216   :  { %1181 = vmatpush.bf16.msrb.mxu3 %v6372_v50 }
 0x217   :  { %1286 = vmatpush.bf16.msra.mxu0 %v8606_v24 }
 0x218   :  { %1372 = vmatpush.bf16.msra.mxu1 %v8620_v41  ;;  %v6671_v41 = vld [vmem:[%s12816_s10 + $0xe0] sm:$0xf] }
 0x21b   :  { %1287 = vmatpush.bf16.msra.mxu0 %v8605_v32  ;;  %v8638_v32 = vld [vmem:[%s12816_s10 + $0x4] sm:$0xf0] }
 0x276   :  { %v903_v44 = vpop.f32.mrf.mxu1 }
 0x277   :  { %v904_v49 = vadd.f32 %v903_v44, %v9773_v40  ;;  %v10107_v40 = vld [vmem:[%s12815_s9] ss:$0 sm:$0xff] }
 0x279   :  { %v933_v52 = vadd.f32 %v9263_v51, %v904_v49  ;;  %v6593_v49 = vld [vmem:[%s12816_s10 + $0x48] sm:$0xf0]  ;;  %v6599_v51 = vld [vmem:[%s12816_s10 + $0x50] sm:$0xf] }
 0x27a   :  { %v6596_v50 = vor.u32 %v8645_v45, %v6593_v49 }
 0x27b   :  { %v10100_v53 = vadd.f32 %v933_v52, %v10093_v48  ;;  %v8648_v52 = vld [vmem:[%s12816_s10 + $0x54] sm:$0xf0] }
 0x27c   :  { %v683_v57 = vpop.f32.mrf.mxu3 }
 0x27d   :  { %9143 = vtanh.f32 %v10100_v53  ;;  %v684_v58 = vadd.f32 %v683_v57, %v9759_v31  ;;  %v6600_v57 = vor.u32 %v8648_v52, %v6599_v51 }
 0x27e   :  { %v905_v59 = vpop.f32.mrf.mxu1 }
 0x27f   :  { %v687_v60 = vadd.f32 %v684_v58, %v9978_v46  ;;  %v9264_v46 = vld [vmem:[%s12807_s1 + $0x8] sm:$0xff]  ;;  %v8643_v58 = vld [vmem:[%s12816_s10 + $0x34] sm:$0xf]  ;;  %v6585_v59 = vld [vmem:[%s12816_s10 + $0x38] sm:$0xf0] }
 0x281   :  { %v10111_v61 = vadd.f32 %v10107_v40, %v687_v60  ;;  %v6588_v60 = vor.u32 %v8643_v58, %v6585_v59 }
 0x283   :  { %v9144_v56 = vpop.eup %9143  ;;  %938 = vst.msk [vmem:[#allocation2 + $0x8] sm:$0xff] %vm69_vm8, %v10111_v61 }
 0x284   :  { %v685_v62 = vpop.f32.mrf.mxu3  ;;  %v941_v63 = vpack.c.bf16 %v9144_v56, %v9144_v56  ;;  %v6591_v56 = vld [vmem:[%s12816_s10 + $0x40] sm:$0xf] }
 0x285   :  { %v8646_v62 = vld [vmem:[%s12816_s10 + $0x44] sm:$0xf0] }
 0x286   :  { %1143 = vmatmul.bf16.vlgmr.msrb.gmra.mxu0 %v941_v63  ;;  %1169 = vmatmul.bf16.vlgmr.msrb.gmra.mxu2 %v941_v63 }
 0x287   :  { %1749 = vmatpush.bf16.msrb.mxu0 %v6616_v36 }
 0x28b   :  { %1750 = vmatpush.bf16.msrb.mxu0 %v6608_v43 }
 0x28c   :  { %v929_v31 = vpop.f32.mrf.mxu3 }
 0x28d   :  { %v930_v1 = vadd.f32 %v929_v31, %v9781_v55  ;;  %v8627_v55 = vld [vmem:[%s12814_s8 + $0x30] sm:$0xff]  ;;  %v6592_v31 = vor.u32 %v8646_v62, %v6591_v56 }
 0x28e   :  { %1530 = vmatpush.bf16.msra.mxu2 %v8627_v55 }
 0x28f   :  { %v934_v2 = vadd.f32 %v9264_v46, %v930_v1  ;;  %1751 = vmatpush.bf16.msrb.mxu0 %v6600_v57  ;;  %v8641_v46 = vld [vmem:[%s12816_s10 + $0x24] sm:$0xf] }
 0x291   :  { %v10122_v3 = vadd.f32 %v934_v2, %v10115_v0  ;;  %v6577_v2 = vld [vmem:[%s12816_s10 + $0x28] sm:$0xf0] }
 0x292   :  { %1531 = vmatpush.bf16.msra.mxu2 %v8626_v9  ;;  %v8639_v9 = vld [vmem:[%s12816_s10 + $0x14] sm:$0xf] }
 0x293   :  { %9145 = vtanh.f32 %v10122_v3  ;;  %1752 = vmatpush.bf16.msrb.mxu0 %v6592_v31 }
 0x294   :  { %v931_v4 = vpop.f32.mrf.mxu3 }
 0x296   :  { %1532 = vmatpush.bf16.msra.mxu2 %v8625_v11  ;;  %v6572_v11 = vor.u32 %v8639_v9, %v6569_v10  ;;  %v6679_v9 = vld [vmem:[%s12816_s10 + $0xf0] sm:$0xf]  ;;  %v8668_v10 = vld [vmem:[%s12816_s10 + $0xf4] sm:$0xf0] }
 0x299   :  { %v9146_v5 = vpop.eup %9145 }
 0x29a   :  { %v942_v7 = vpack.c.bf16 %v9146_v5, %v9146_v5  ;;  %1533 = vmatpush.bf16.msra.mxu2 %v8624_v13  ;;  %v6580_v5 = vor.u32 %v8641_v46, %v6577_v2  ;;  %v8642_v13 = vld [vmem:[%s12816_s10 + $0x24] sm:$0xf0]  ;;  %v8619_v46 = vld [vmem:[%s12812_s6 + $0x30] sm:$0xff] }
 0x29b   :  { %1373 = vmatpush.bf16.msra.mxu1 %v8619_v46  ;;  %v8618_v2 = vld [vmem:[%s12812_s6 + $0x28] sm:$0xff]  ;;  %v6639_v46 = vld [vmem:[%s12816_s10 + $0xa0] sm:$0xf] }
 0x29c   :  { %1156 = vmatmul.bf16.vlgmr.msrb.gmra.mxu1 %v942_v7  ;;  %1182 = vmatmul.bf16.vlgmr.msrb.gmra.mxu3 %v942_v7  ;;  %v6583_v7 = vld [vmem:[%s12816_s10 + $0x30] sm:$0xf] }
 0x29d   :  { %v6584_v8 = vor.u32 %v8644_v6, %v6583_v7  ;;  %v8615_v7 = vld [vmem:[%s12812_s6 + $0x10] sm:$0xff]  ;;  %v8614_v6 = vld [vmem:[%s12812_s6 + $0x8] sm:$0xff] }
 0x29e   :  { %1534 = vmatpush.bf16.msra.mxu2 %v8623_v15 }
 0x29f   :  { %1753 = vmatpush.bf16.msrb.mxu0 %v6584_v8  ;;  %1374 = vmatpush.bf16.msra.mxu1 %v8618_v2  ;;  %v8636_v8 = vld [vmem:[%s12814_s8 + $0x78] sm:$0xff]  ;;  %v8658_v2 = vld [vmem:[%s12816_s10 + $0xa4] sm:$0xf0] }
 0x2a0   :  { %1542 = vmatpush.bf16.msra.mxu3 %v8636_v8  ;;  %v8656_v8 = vld [vmem:[%s12816_s10 + $0x94] sm:$0xf0] }
 0x2a2   :  { %1535 = vmatpush.bf16.msra.mxu2 %v8622_v17  ;;  %v6576_v17 = vor.u32 %v8642_v13, %v6575_v12  ;;  %v6680_v12 = vor.u32 %v8668_v10, %v6679_v9  ;;  %v8663_v9 = vld [vmem:[%s12816_s10 + $0xd4] sm:$0xf] }
 0x2a4   :  { %1754 = vmatpush.bf16.msrb.mxu0 %v6576_v17  ;;  %v8634_v17 = vld [vmem:[%s12814_s8 + $0x68] sm:$0xff] }
 0x2a6   :  { %1536 = vmatpush.bf16.msra.mxu2 %v8621_v20  ;;  %v6567_v20 = vld [vmem:[%s12816_s10 + $0x10] sm:$0xf] }
 0x2a7   :  { %v6568_v27 = vor.u32 %v8640_v21, %v6567_v20 }
 0x2a9   :  { %1755 = vmatpush.bf16.msrb.mxu0 %v6568_v27 }
 0x2aa   :  { %1775 = vmatpush.bf16.msrb.mxu2 %v6620_v23 }
 0x2ae   :  { %1776 = vmatpush.bf16.msrb.mxu2 %v6612_v29 }
 0x2b2   :  { %1777 = vmatpush.bf16.msrb.mxu2 %v6604_v39 }
 0x2b6   :  { %1778 = vmatpush.bf16.msrb.mxu2 %v6596_v50 }
 0x2ba   :  { %1779 = vmatpush.bf16.msrb.mxu2 %v6588_v60 }
 0x2be   :  { %1780 = vmatpush.bf16.msrb.mxu2 %v6580_v5  ;;  %v8616_v5 = vld [vmem:[%s12812_s6 + $0x18] sm:$0xff] }
 0x2c2   :  { %1781 = vmatpush.bf16.msrb.mxu2 %v6572_v11  ;;  %v8635_v11 = vld [vmem:[%s12814_s8 + $0x70] sm:$0xff] }
 0x2c3   :  { %1543 = vmatpush.bf16.msra.mxu3 %v8635_v11  ;;  %v6665_v11 = vld [vmem:[%s12816_s10 + $0xd8] sm:$0xf0] }
 0x2c7   :  { %1544 = vmatpush.bf16.msra.mxu3 %v8634_v17 }
 0x303   :  { %v1144_v18 = vpop.f32.mrf.mxu0 }
 0x304   :  { %v1145_v63 = vadd.f32 %v1144_v18, %v9605_v54  ;;  %v6561_v18 = vld [vmem:[%s12816_s10 + $0x8] sm:$0xf0] }
 0x305   :  { %v6564_v23 = vor.u32 %v8637_v14, %v6561_v18 }
 0x307   :  { %1782 = vmatpush.bf16.msrb.mxu2 %v6564_v23 }
 0x309   :  { %v1170_v26 = vpop.f32.mrf.mxu2 }
 0x30a   :  { %v1171_v15 = vadd.f32 %v1170_v26, %v9593_v47 }
 0x30b   :  { %v1146_v30 = vpop.f32.mrf.mxu0 }
 0x30c   :  { %v6559_v30 = vld [vmem:[%s12816_s10] sm:$0xf] }
 0x30d   :  { %v6560_v36 = vor.u32 %v8638_v32, %v6559_v30 }
 0x30f   :  { %1756 = vmatpush.bf16.msrb.mxu0 %v6560_v36 }
 0x311   :  { %v1172_v44 = vpop.f32.mrf.mxu2 }
 0x319   :  { %v1157_v1 = vpop.f32.mrf.mxu1 }
 0x31a   :  { %v1158_v4 = vadd.f32 %v1157_v1, %v1145_v63 }
 0x31c   :  { %v1189_v55 = vmin.f32 %v1158_v4, 20.0  ;;  %vm1187_vm10 = vcmp.gt.f32.partialorder %v1158_v4, 20.0 }
 0x31e   :  { %v1191_v16 = vmul.f32 1.442695, %v1189_v55  ;;  %v8613_v55 = vld [vmem:[%s12812_s6] sm:$0xff] }
 0x31f   :  { %v1183_v19 = vpop.f32.mrf.mxu3 }
 0x320   :  { %9147 = vpow2.f32 %v1191_v16  ;;  %v1184_v22 = vadd.f32 %v1183_v19, %v1171_v15  ;;  %v8633_v19 = vld [vmem:[%s12814_s8 + $0x60] sm:$0xff] }
 0x321   :  { %v1159_v24 = vpop.f32.mrf.mxu1  ;;  %1545 = vmatpush.bf16.msra.mxu3 %v8633_v19 }
 0x322   :  { %v1190_v26 = vmin.f32 %v1184_v22, 20.0  ;;  %vm1188_vm12 = vcmp.gt.f32.partialorder %v1184_v22, 20.0 }
 0x324   :  { %v1193_v28 = vmul.f32 1.442695, %v1190_v26 }
 0x326   :  { %v9148_v29 = vpop.eup %9147  ;;  %9149 = vpow2.f32 %v1193_v28 }
 0x327   :  { %v1195_v33 = vadd.f32 1.0, %v9148_v29  ;;  %v1185_v35 = vpop.f32.mrf.mxu3  ;;  %v1198_v37 = vmul.f32 -0.5, %v9148_v29  ;;  %v1201_v42 = vand.u32 2147483647, %v9148_v29 }
 0x329   :  { %9151 = vlog2.f32 %v1195_v33  ;;  %v1199_v39 = vadd.f32 1.0, %v1198_v37  ;;  %vm1202_vm9 = vcmp.lt.f32.partialorder %v1201_v42, 0.0004427343  ;;  %v8666_v42 = vld [vmem:[%s12816_s10 + $0xe4] sm:$0xf0] }
 0x32b   :  { %v1200_v50 = vmul.f32 %v9148_v29, %v1199_v39  ;;  %v8632_v39 = vld [vmem:[%s12814_s8 + $0x58] sm:$0xff] }
 0x32c   :  { %v9150_v38 = vpop.eup %9149  ;;  %1546 = vmatpush.bf16.msra.mxu3 %v8632_v39 }
 0x32d   :  { %v1204_v43 = vadd.f32 1.0, %v9150_v38  ;;  %v1207_v44 = vmul.f32 -0.5, %v9150_v38  ;;  %v1210_v58 = vand.u32 2147483647, %v9150_v38 }
 0x32f   :  { %v9152_v45 = vpop.eup %9151  ;;  %9153 = vlog2.f32 %v1204_v43  ;;  %v1208_v52 = vadd.f32 1.0, %v1207_v44  ;;  %vm1211_vm11 = vcmp.lt.f32.partialorder %v1210_v58, 0.0004427343  ;;  %v6672_v43 = vor.u32 %v8666_v42, %v6671_v41  ;;  %v8631_v44 = vld [vmem:[%s12814_s8 + $0x50] sm:$0xff] }
 0x330   :  { %v1197_v49 = vmul.f32 0.6931472, %v9152_v45  ;;  %v6663_v45 = vld [vmem:[%s12816_s10 + $0xd0] sm:$0xf]  ;;  %1547 = vmatpush.bf16.msra.mxu3 %v8631_v44  ;;  %v8683_v44 = vld [vmem:[%s12808_s2 + $0x74] sm:$0xf] }
 0x331   :  { %v1209_v62 = vmul.f32 %v9150_v38, %v1208_v52  ;;  %v6655_v52 = vld [vmem:[%s12816_s10 + $0xc0] sm:$0xf]  ;;  %v6743_v42 = vld [vmem:[%s12808_s2 + $0x70] sm:$0xf] }
 0x332   :  { %v1203_v51 = vsel %vm1202_vm9, %v1200_v50, %v1197_v49  ;;  %v8664_v49 = vld [vmem:[%s12816_s10 + $0xd4] sm:$0xf0] }
 0x333   :  { %v1213_v57 = vsel %vm1187_vm10, %v1158_v4, %v1203_v51  ;;  %v8617_v4 = vld [vmem:[%s12812_s6 + $0x20] sm:$0xff]  ;;  %v6664_v50 = vor.u32 %v8664_v49, %v6663_v45  ;;  %v8630_v51 = vld [vmem:[%s12814_s8 + $0x48] sm:$0xff] }
 0x334   :  { %v1399_v59 = vpack.c.bf16 %v1213_v57, %v1213_v57  ;;  %1375 = vmatpush.bf16.msra.mxu1 %v8617_v4  ;;  %v8662_v57 = vld [vmem:[%s12816_s10 + $0xc4] sm:$0xf0]  ;;  %1548 = vmatpush.bf16.msra.mxu3 %v8630_v51  ;;  %v8665_v4 = vld [vmem:[%s12816_s10 + $0xe4] sm:$0xf]  ;;  %v6745_v51 = vld [vmem:[%s12808_s2 + $0x78] sm:$0xf0] }
 0x335   :  { %v9154_v60 = vpop.eup %9153  ;;  %v6656_v58 = vor.u32 %v8662_v57, %v6655_v52  ;;  %v6748_v52 = vor.u32 %v8683_v44, %v6745_v51  ;;  %v6735_v57 = vld [vmem:[%s12808_s2 + $0x60] sm:$0xf]  ;;  %v8698_v51 = vld [vmem:[%s12808_s2 + $0xe4] sm:$0xf0] }
 0x336   :  { %v1206_v56 = vmul.f32 0.6931472, %v9154_v60  ;;  %1537 = vmatmul.bf16.vlgmr.msra.gmra.mxu2 %v1399_v59  ;;  %v6647_v60 = vld [vmem:[%s12816_s10 + $0xb0] sm:$0xf] }
 0x337   :  { %2029 = vmatpush.bf16.msra.mxu2 %v6748_v52  ;;  %v8697_v52 = vld [vmem:[%s12808_s2 + $0xe4] sm:$0xf] }
 0x338   :  { %v1212_v63 = vsel %vm1211_vm11, %v1209_v62, %v1206_v56  ;;  %1376 = vmatpush.bf16.msra.mxu1 %v8616_v5  ;;  %v8660_v56 = vld [vmem:[%s12816_s10 + $0xb4] sm:$0xf0]  ;;  %v6640_v5 = vor.u32 %v8658_v2, %v6639_v46  ;;  %v6729_v46 = vld [vmem:[%s12808_s2 + $0x58] sm:$0xf0] }
 0x339   :  { %v1214_v31 = vsel %vm1188_vm12, %v1184_v22, %v1212_v63  ;;  %v6648_v62 = vor.u32 %v8660_v56, %v6647_v60  ;;  %v8667_v63 = vld [vmem:[%s12816_s10 + $0xf4] sm:$0xf]  ;;  %v6737_v56 = vld [vmem:[%s12808_s2 + $0x68] sm:$0xf0] }
 0x33a   :  { %v1215_v1 = vpack.c.bf16 %v1214_v31, %v1214_v31  ;;  %v6681_v31 = vld [vmem:[%s12816_s10 + $0xf8] sm:$0xf0] }
 0x33c   :  { %1288 = vmatmul.bf16.vlgmr.msra.gmra.mxu0 %v1215_v1  ;;  %1377 = vmatpush.bf16.msra.mxu1 %v8615_v7  ;;  %v6684_v1 = vor.u32 %v8667_v63, %v6681_v31  ;;  %v6673_v7 = vld [vmem:[%s12816_s10 + $0xe8] sm:$0xf0]  ;;  %v6727_v63 = vld [vmem:[%s12808_s2 + $0x50] sm:$0xf]  ;;  %v8680_v31 = vld [vmem:[%s12808_s2 + $0x54] sm:$0xf0] }
 0x340   :  { %1378 = vmatpush.bf16.msra.mxu1 %v8614_v6  ;;  %v6676_v6 = vor.u32 %v8665_v4, %v6673_v7 }
 0x344   :  { %1379 = vmatpush.bf16.msra.mxu1 %v8613_v55  ;;  %v6631_v55 = vld [vmem:[%s12816_s10 + $0x90] sm:$0xf] }
 0x345   :  { %v6632_v10 = vor.u32 %v8656_v8, %v6631_v55  ;;  %v8678_v55 = vld [vmem:[%s12808_s2 + $0x44] sm:$0xf0] }
 0x346   :  { %1783 = vmatmul.bf16.vlgmr.msrb.gmra.mxu2 %v1399_v59 }
 0x348   :  { %1762 = vmatpush.bf16.msrb.mxu1 %v6680_v12  ;;  %v6668_v12 = vor.u32 %v8663_v9, %v6665_v11  ;;  %v8677_v11 = vld [vmem:[%s12808_s2 + $0x44] sm:$0xf] }
 0x34c   :  { %1757 = vmatmul.bf16.vlgmr.msrb.gmra.mxu0 %v1399_v59  ;;  %1763 = vmatpush.bf16.msrb.mxu1 %v6672_v43  ;;  %v8629_v59 = vld [vmem:[%s12814_s8 + $0x40] sm:$0xff]  ;;  %v8684_v43 = vld [vmem:[%s12808_s2 + $0x74] sm:$0xf0] }
 0x34d   :  { %1549 = vmatpush.bf16.msra.mxu3 %v8629_v59  ;;  %v8681_v59 = vld [vmem:[%s12808_s2 + $0x64] sm:$0xf] }
 0x350   :  { %1764 = vmatpush.bf16.msrb.mxu1 %v6664_v50  ;;  %v6744_v50 = vor.u32 %v8684_v43, %v6743_v42  ;;  %v8672_v42 = vld [vmem:[%s12808_s2 + $0x14] sm:$0xf0]  ;;  %v8671_v43 = vld [vmem:[%s12808_s2 + $0x14] sm:$0xf] }
 0x351   :  { %1788 = vmatpush.bf16.msrb.mxu3 %v6684_v1  ;;  %v8679_v1 = vld [vmem:[%s12808_s2 + $0x54] sm:$0xf] }
 0x352   :  { %2003 = vmatpush.bf16.msra.mxu0 %v6744_v50  ;;  %v6732_v7 = vor.u32 %v8679_v1, %v6729_v46  ;;  %v6799_v50 = vld [vmem:[%s12808_s2 + $0xe0] sm:$0xf]  ;;  %v6791_v46 = vld [vmem:[%s12808_s2 + $0xd0] sm:$0xf] }
 0x354   :  { %1765 = vmatpush.bf16.msrb.mxu1 %v6656_v58  ;;  %v8682_v58 = vld [vmem:[%s12808_s2 + $0x64] sm:$0xf0] }
 0x355   :  { %1789 = vmatpush.bf16.msrb.mxu3 %v6676_v6  ;;  %v6736_v60 = vor.u32 %v8682_v58, %v6735_v57  ;;  %v6719_v6 = vld [vmem:[%s12808_s2 + $0x40] sm:$0xf]  ;;  %v6800_v57 = vor.u32 %v8698_v51, %v6799_v50  ;;  %v6801_v58 = vld [vmem:[%s12808_s2 + $0xe8] sm:$0xf0] }
 0x357   :  { %2004 = vmatpush.bf16.msra.mxu0 %v6736_v60  ;;  %v8670_v60 = vld [vmem:[%s12808_s2 + $0x4] sm:$0xf0] }
 0x358   :  { %1766 = vmatpush.bf16.msrb.mxu1 %v6648_v62  ;;  %v6740_v62 = vor.u32 %v8681_v59, %v6737_v56  ;;  %v6687_v59 = vld [vmem:[%s12808_s2] sm:$0xf]  ;;  %v6804_v56 = vor.u32 %v8697_v52, %v6801_v58 }
 0x359   :  { %1790 = vmatpush.bf16.msrb.mxu3 %v6668_v12  ;;  %v6721_v12 = vld [vmem:[%s12808_s2 + $0x48] sm:$0xf0] }
 0x35a   :  { %2030 = vmatpush.bf16.msra.mxu2 %v6740_v62  ;;  %v6688_v62 = vor.u32 %v8670_v60, %v6687_v59 }
 0x35c   :  { %1767 = vmatpush.bf16.msrb.mxu1 %v6640_v5  ;;  %v6728_v5 = vor.u32 %v8680_v31, %v6727_v63  ;;  %v8669_v63 = vld [vmem:[%s12808_s2 + $0x4] sm:$0xf]  ;;  %v6689_v31 = vld [vmem:[%s12808_s2 + $0x8] sm:$0xf0] }
 0x35d   :  { %v6692_v1 = vor.u32 %v8669_v63, %v6689_v31  ;;  %v8724_v63 = vld [vmem:[%s12814_s8 + $0x38] sm:$0xff]  ;;  %v8722_v31 = vld [vmem:[%s12814_s8 + $0x28] sm:$0xff] }
 0x35e   :  { %2005 = vmatpush.bf16.msra.mxu0 %v6728_v5  ;;  %2031 = vmatpush.bf16.msra.mxu2 %v6732_v7  ;;  %v6793_v7 = vld [vmem:[%s12808_s2 + $0xd8] sm:$0xf0] }
 0x360   :  { %1768 = vmatpush.bf16.msrb.mxu1 %v6632_v10 }
 0x3b9   :  { %v1289_v13 = vpop.f32.mrf.mxu0  ;;  %v10307_v14 = vpop.f32.mrf.mxu2 }
 0x3ba   :  { %v1290_v15 = vadd.f32 %v9756_v25, %v1289_v13  ;;  %v6623_v13 = vld [vmem:[%s12816_s10 + $0x80] sm:$0xf] }
 0x3bc   :  { %v1294_v16 = vmin.f32 %v1290_v15, 20.0  ;;  %vm1293_vm14 = vcmp.gt.f32.partialorder %v1290_v15, 20.0 }
 0x3be   :  { %v1295_v18 = vmul.f32 1.442695, %v1294_v16  ;;  %v8661_v16 = vld [vmem:[%s12816_s10 + $0xc4] sm:$0xf] }
 0x3c0   :  { %9155 = vpow2.f32 %v1295_v18  ;;  %v6657_v18 = vld [vmem:[%s12816_s10 + $0xc8] sm:$0xf0] }
 0x3c1   :  { %v1291_v20 = vpop.f32.mrf.mxu0  ;;  %v1540_v21 = vpop.f32.mrf.mxu2  ;;  %v6660_v19 = vor.u32 %v8661_v16, %v6657_v18 }
 0x3c2   :  { %v8659_v20 = vld [vmem:[%s12816_s10 + $0xb4] sm:$0xf]  ;;  %v6649_v21 = vld [vmem:[%s12816_s10 + $0xb8] sm:$0xf0] }
 0x3c3   :  { %1791 = vmatpush.bf16.msrb.mxu3 %v6660_v19  ;;  %v6711_v19 = vld [vmem:[%s12808_s2 + $0x30] sm:$0xf] }
 0x3c6   :  { %v9156_v22 = vpop.eup %9155 }
 0x3c7   :  { %v1297_v23 = vadd.f32 1.0, %v9156_v22  ;;  %v1300_v25 = vmul.f32 -0.5, %v9156_v22  ;;  %v1303_v28 = vand.u32 2147483647, %v9156_v22 }
 0x3c9   :  { %9157 = vlog2.f32 %v1297_v23  ;;  %v10316_v24 = vpop.f32.mrf.mxu0  ;;  %v10318_v26 = vpop.f32.mrf.mxu2  ;;  %v1301_v27 = vadd.f32 1.0, %v1300_v25  ;;  %vm1304_vm13 = vcmp.lt.f32.partialorder %v1303_v28, 0.0004427343  ;;  %v8657_v23 = vld [vmem:[%s12816_s10 + $0xa4] sm:$0xf] }
 0x3ca   :  { %v6641_v25 = vld [vmem:[%s12816_s10 + $0xa8] sm:$0xf0] }
 0x3cb   :  { %v1302_v32 = vmul.f32 %v9156_v22, %v1301_v27  ;;  %v6652_v22 = vor.u32 %v8659_v20, %v6649_v21  ;;  %v6644_v28 = vor.u32 %v8657_v23, %v6641_v25  ;;  %v8676_v20 = vld [vmem:[%s12808_s2 + $0x34] sm:$0xf0]  ;;  %v8675_v21 = vld [vmem:[%s12808_s2 + $0x34] sm:$0xf]  ;;  %v6713_v23 = vld [vmem:[%s12808_s2 + $0x38] sm:$0xf0] }
 0x3cc   :  { %v6716_v25 = vor.u32 %v8675_v21, %v6713_v23  ;;  %v8690_v21 = vld [vmem:[%s12808_s2 + $0xa4] sm:$0xf0] }
 0x3cd   :  { %1792 = vmatpush.bf16.msrb.mxu3 %v6652_v22  ;;  %v6712_v22 = vor.u32 %v8676_v20, %v6711_v19  ;;  %v6767_v20 = vld [vmem:[%s12808_s2 + $0xa0] sm:$0xf] }
 0x3ce   :  { %v6768_v23 = vor.u32 %v8690_v21, %v6767_v20  ;;  %v8701_v21 = vld [vmem:[%s12810_s4] sm:$0xff] }
 0x3cf   :  { %v9158_v29 = vpop.eup %9157 }
 0x3d0   :  { %v1299_v30 = vmul.f32 0.6931472, %v9158_v29 }
 0x3d1   :  { %v1760_v33 = vpop.f32.mrf.mxu0  ;;  %v1786_v35 = vpop.f32.mrf.mxu2  ;;  %1793 = vmatpush.bf16.msrb.mxu3 %v6644_v28  ;;  %v8674_v28 = vld [vmem:[%s12808_s2 + $0x24] sm:$0xf0] }
 0x3d2   :  { %v1305_v36 = vsel %vm1304_vm13, %v1302_v32, %v1299_v30  ;;  %v8655_v30 = vld [vmem:[%s12816_s10 + $0x94] sm:$0xf]  ;;  %v6633_v32 = vld [vmem:[%s12816_s10 + $0x98] sm:$0xf0] }
 0x3d3   :  { %v1306_v37 = vsel %vm1293_vm14, %v1290_v15, %v1305_v36  ;;  %v8654_v15 = vld [vmem:[%s12816_s10 + $0x84] sm:$0xf0]  ;;  %v6636_v35 = vor.u32 %v8655_v30, %v6633_v32  ;;  %v6705_v32 = vld [vmem:[%s12808_s2 + $0x28] sm:$0xf0] }
 0x3d4   :  { %v1307_v38 = vpack.c.bf16 %v1306_v37, %v1306_v37  ;;  %v6624_v17 = vor.u32 %v8654_v15, %v6623_v13  ;;  %v8653_v37 = vld [vmem:[%s12816_s10 + $0x84] sm:$0xf]  ;;  %v6720_v13 = vor.u32 %v8678_v55, %v6719_v6  ;;  %v6783_v55 = vld [vmem:[%s12808_s2 + $0xc0] sm:$0xf] }
 0x3d5   :  { %1794 = vmatpush.bf16.msrb.mxu3 %v6636_v35  ;;  %v6807_v35 = vld [vmem:[%s12808_s2 + $0xf0] sm:$0xf] }
 0x3d6   :  { %1380 = vmatmul.bf16.vlgmr.msra.gmra.mxu1 %v1307_v38  ;;  %2006 = vmatpush.bf16.msra.mxu0 %v6720_v13  ;;  %v6775_v13 = vld [vmem:[%s12808_s2 + $0xb0] sm:$0xf] }
 0x3d7   :  { %1769 = vmatpush.bf16.msrb.mxu1 %v6624_v17  ;;  %v6724_v17 = vor.u32 %v8677_v11, %v6721_v12  ;;  %v6785_v11 = vld [vmem:[%s12808_s2 + $0xc8] sm:$0xf0] }
 0x3d9   :  { %2032 = vmatpush.bf16.msra.mxu2 %v6724_v17 }
 0x3da   :  { %2007 = vmatpush.bf16.msra.mxu0 %v6712_v22  ;;  %v8689_v22 = vld [vmem:[%s12808_s2 + $0xa4] sm:$0xf] }
 0x3dd   :  { %2033 = vmatpush.bf16.msra.mxu2 %v6716_v25  ;;  %v6769_v25 = vld [vmem:[%s12808_s2 + $0xa8] sm:$0xf0] }
 0x453   :  { %v1381_v27 = vpop.f32.mrf.mxu1 }
 0x454   :  { %v1382_v29 = vadd.f32 %v9870_v34, %v1381_v27  ;;  %v6625_v34 = vld [vmem:[%s12816_s10 + $0x88] sm:$0xf0]  ;;  %v6703_v27 = vld [vmem:[%s12808_s2 + $0x20] sm:$0xf] }
 0x455   :  { %v6628_v39 = vor.u32 %v8653_v37, %v6625_v34  ;;  %v6704_v30 = vor.u32 %v8674_v28, %v6703_v27  ;;  %v8699_v37 = vld [vmem:[%s12808_s2 + $0xf4] sm:$0xf]  ;;  %v6772_v27 = vor.u32 %v8689_v22, %v6769_v25  ;;  %v6759_v28 = vld [vmem:[%s12808_s2 + $0x90] sm:$0xf] }
 0x456   :  { %v1386_v33 = vmin.f32 %v1382_v29, 20.0  ;;  %vm1385_vm0 = vcmp.gt.f32.partialorder %v1382_v29, 20.0  ;;  %v6999_v22 = vld [vmem:[%s12816_s10 + $0x70] sm:$0xf] }
 0x457   :  { %1795 = vmatpush.bf16.msrb.mxu3 %v6628_v39  ;;  %2008 = vmatpush.bf16.msra.mxu0 %v6704_v30  ;;  %v8687_v30 = vld [vmem:[%s12808_s2 + $0x94] sm:$0xf] }
 0x458   :  { %v1387_v36 = vmul.f32 1.442695, %v1386_v33 }
 0x45a   :  { %9159 = vpow2.f32 %v1387_v36  ;;  %v8700_v36 = vld [vmem:[%s12808_s2 + $0xf4] sm:$0xf0] }
 0x45b   :  { %v1383_v38 = vpop.f32.mrf.mxu1  ;;  %v6808_v34 = vor.u32 %v8700_v36, %v6807_v35  ;;  %v6751_v35 = vld [vmem:[%s12808_s2 + $0x80] sm:$0xf]  ;;  %v8686_v36 = vld [vmem:[%s12808_s2 + $0x84] sm:$0xf0] }
 0x45c   :  { %v6809_v38 = vld [vmem:[%s12808_s2 + $0xf8] sm:$0xf0] }
 0x45d   :  { %v6812_v39 = vor.u32 %v8699_v37, %v6809_v38  ;;  %2016 = vmatpush.bf16.msra.mxu1 %v6808_v34  ;;  %v8685_v34 = vld [vmem:[%s12808_s2 + $0x84] sm:$0xf]  ;;  %v6753_v38 = vld [vmem:[%s12808_s2 + $0x88] sm:$0xf0] }
 0x460   :  { %v9160_v41 = vpop.eup %9159 }
 0x461   :  { %v1389_v45 = vadd.f32 1.0, %v9160_v41  ;;  %v1392_v49 = vmul.f32 -0.5, %v9160_v41  ;;  %v1395_v4 = vand.u32 2147483647, %v9160_v41  ;;  %2017 = vmatpush.bf16.msra.mxu1 %v6800_v57 }
 0x463   :  { %9161 = vlog2.f32 %v1389_v45  ;;  %v1393_v2 = vadd.f32 1.0, %v1392_v49  ;;  %vm1396_vm15 = vcmp.lt.f32.partialorder %v1395_v4, 0.0004427343  ;;  %v6697_v45 = vld [vmem:[%s12808_s2 + $0x18] sm:$0xf0] }
 0x464   :  { %v6700_v49 = vor.u32 %v8671_v43, %v6697_v45  ;;  %v8695_v4 = vld [vmem:[%s12808_s2 + $0xd4] sm:$0xf]  ;;  %v6756_v43 = vor.u32 %v8685_v34, %v6753_v38  ;;  %v6983_v38 = vld [vmem:[%s12816_s10 + $0x50] sm:$0xf] }
 0x465   :  { %v1394_v10 = vmul.f32 %v9160_v41, %v1393_v2  ;;  %v6695_v41 = vld [vmem:[%s12808_s2 + $0x10] sm:$0xf]  ;;  %v8696_v2 = vld [vmem:[%s12808_s2 + $0xd4] sm:$0xf0]  ;;  %v6796_v6 = vor.u32 %v8695_v4, %v6793_v7 }
 0x466   :  { %v6696_v44 = vor.u32 %v8672_v42, %v6695_v41  ;;  %v6792_v5 = vor.u32 %v8696_v2, %v6791_v46  ;;  %v6752_v41 = vor.u32 %v8686_v36, %v6751_v35  ;;  %v8721_v46 = vld [vmem:[%s12814_s8 + $0x20] sm:$0xff]  ;;  %v8706_v2 = vld [vmem:[%s12810_s4 + $0x28] sm:$0xff]  ;;  %v8720_v4 = vld [vmem:[%s12814_s8 + $0x18] sm:$0xff] }
 0x467   :  { %v8719_v7 = vld [vmem:[%s12814_s8 + $0x10] sm:$0xff]  ;;  %v8741_v36 = vld [vmem:[%s12816_s10 + $0x44] sm:$0xf] }
 0x468   :  { %2009 = vmatpush.bf16.msra.mxu0 %v6696_v44  ;;  %2018 = vmatpush.bf16.msra.mxu1 %v6792_v5  ;;  %v8705_v5 = vld [vmem:[%s12810_s4 + $0x20] sm:$0xff] }
 0x469   :  { %v9162_v8 = vpop.eup %9161 }
 0x46a   :  { %v1391_v9 = vmul.f32 0.6931472, %v9162_v8  ;;  %v8694_v8 = vld [vmem:[%s12808_s2 + $0xc4] sm:$0xf0] }
 0x46c   :  { %v1397_v15 = vsel %vm1396_vm15, %v1394_v10, %v1391_v9  ;;  %2010 = vmatpush.bf16.msra.mxu0 %v6688_v62  ;;  %v8693_v9 = vld [vmem:[%s12808_s2 + $0xc4] sm:$0xf]  ;;  %v6784_v10 = vor.u32 %v8694_v8, %v6783_v55  ;;  %v8718_v55 = vld [vmem:[%s12814_s8 + $0x8] sm:$0xff] }
 0x46d   :  { %v1398_v16 = vsel %vm1385_vm0, %v1382_v29, %v1397_v15  ;;  %v8673_v29 = vld [vmem:[%s12808_s2 + $0x24] sm:$0xf]  ;;  %v6788_v12 = vor.u32 %v8693_v9, %v6785_v11  ;;  %v8692_v15 = vld [vmem:[%s12808_s2 + $0xb4] sm:$0xf0]  ;;  %v8703_v9 = vld [vmem:[%s12810_s4 + $0x10] sm:$0xff] }
 0x46e   :  { %v1400_v18 = vpack.c.bf16 %v1398_v16, %v1398_v16  ;;  %v6708_v33 = vor.u32 %v8673_v29, %v6705_v32  ;;  %2019 = vmatpush.bf16.msra.mxu1 %v6784_v10  ;;  %v8691_v16 = vld [vmem:[%s12808_s2 + $0xb4] sm:$0xf]  ;;  %v6776_v17 = vor.u32 %v8692_v15, %v6775_v13  ;;  %v8688_v29 = vld [vmem:[%s12808_s2 + $0x94] sm:$0xf0]  ;;  %v8717_v10 = vld [vmem:[%s12814_s8] sm:$0xff] }
 0x46f   :  { %v6760_v32 = vor.u32 %v8688_v29, %v6759_v28  ;;  %v8747_v11 = vld [vmem:[%s12816_s10 + $0x74] sm:$0xf]  ;;  %v8702_v15 = vld [vmem:[%s12810_s4 + $0x8] sm:$0xff]  ;;  %v6985_v28 = vld [vmem:[%s12816_s10 + $0x58] sm:$0xf0] }
 0x470   :  { %1550 = vmatmul.bf16.vlgmr.msra.gmra.mxu3 %v1400_v18  ;;  %1770 = vmatmul.bf16.vlgmr.msrb.gmra.mxu1 %v1400_v18 }
 0x471   :  { %2034 = vmatpush.bf16.msra.mxu2 %v6708_v33  ;;  %2042 = vmatpush.bf16.msra.mxu3 %v6812_v39  ;;  %v6761_v33 = vld [vmem:[%s12808_s2 + $0x98] sm:$0xf0] }
 0x472   :  { %2020 = vmatpush.bf16.msra.mxu1 %v6776_v17  ;;  %v6764_v37 = vor.u32 %v8687_v30, %v6761_v33  ;;  %v8745_v17 = vld [vmem:[%s12816_s10 + $0x64] sm:$0xf]  ;;  %v6991_v30 = vld [vmem:[%s12816_s10 + $0x60] sm:$0xf] }
 0x475   :  { %2035 = vmatpush.bf16.msra.mxu2 %v6700_v49  ;;  %2043 = vmatpush.bf16.msra.mxu3 %v6804_v56 }
 0x476   :  { %2021 = vmatpush.bf16.msra.mxu1 %v6768_v23  ;;  %v8748_v23 = vld [vmem:[%s12816_s10 + $0x74] sm:$0xf0] }
 0x477   :  { %v7000_v25 = vor.u32 %v8748_v23, %v6999_v22 }
 0x479   :  { %2036 = vmatpush.bf16.msra.mxu2 %v6692_v1  ;;  %2044 = vmatpush.bf16.msra.mxu3 %v6796_v6  ;;  %v8707_v1 = vld [vmem:[%s12810_s4 + $0x30] sm:$0xff]  ;;  %v8704_v6 = vld [vmem:[%s12810_s4 + $0x18] sm:$0xff] }
 0x47a   :  { %2022 = vmatpush.bf16.msra.mxu1 %v6760_v32  ;;  %v8746_v32 = vld [vmem:[%s12816_s10 + $0x64] sm:$0xf0] }
 0x47b   :  { %v6992_v33 = vor.u32 %v8746_v32, %v6991_v30 }
 0x47d   :  { %2045 = vmatpush.bf16.msra.mxu3 %v6788_v12  ;;  %2397 = vmatpush.bf16.msrb.mxu2 %v8724_v63  ;;  %v7001_v12 = vld [vmem:[%s12816_s10 + $0x78] sm:$0xf0]  ;;  %v8735_v63 = vld [vmem:[%s12816_s10 + $0x14] sm:$0xf] }
 0x47e   :  { %2023 = vmatpush.bf16.msra.mxu1 %v6752_v41  ;;  %v7004_v13 = vor.u32 %v8747_v11, %v7001_v12 }
 0x480   :  { %1796 = vmatmul.bf16.vlgmr.msrb.gmra.mxu3 %v1400_v18  ;;  %v6777_v18 = vld [vmem:[%s12808_s2 + $0xb8] sm:$0xf0] }
 0x481   :  { %v6780_v19 = vor.u32 %v8691_v16, %v6777_v18  ;;  %v6993_v18 = vld [vmem:[%s12816_s10 + $0x68] sm:$0xf0] }
 0x483   :  { %2046 = vmatpush.bf16.msra.mxu3 %v6780_v19  ;;  %v6996_v19 = vor.u32 %v8745_v17, %v6993_v18  ;;  %v6943_v17 = vld [vmem:[%s12816_s10] sm:$0xf]  ;;  %v8734_v18 = vld [vmem:[%s12816_s10 + $0x4] sm:$0xf0] }
 0x487   :  { %2047 = vmatpush.bf16.msra.mxu3 %v6772_v27  ;;  %v8743_v27 = vld [vmem:[%s12816_s10 + $0x54] sm:$0xf] }
 0x488   :  { %v6988_v29 = vor.u32 %v8743_v27, %v6985_v28  ;;  %v8716_v27 = vld [vmem:[%s12812_s6 + $0x38] sm:$0xff] }
 0x489   :  { %2240 = vmatpush.bf16.msrb.mxu1 %v8716_v27  ;;  %v8762_v27 = vld [vmem:[%s12816_s10 + $0xe4] sm:$0xf0] }
 0x48b   :  { %2048 = vmatpush.bf16.msra.mxu3 %v6764_v37  ;;  %v6977_v37 = vld [vmem:[%s12816_s10 + $0x48] sm:$0xf0] }
 0x48c   :  { %v6980_v34 = vor.u32 %v8741_v36, %v6977_v37 }
 0x48f   :  { %2049 = vmatpush.bf16.msra.mxu3 %v6756_v43  ;;  %v6969_v43 = vld [vmem:[%s12816_s10 + $0x38] sm:$0xf0] }
 0x4ed   :  { %v1771_v39 = vpop.f32.mrf.mxu1 }
 0x4ee   :  { %v1772_v42 = vadd.f32 %v1771_v39, %v10316_v24  ;;  %v8744_v39 = vld [vmem:[%s12816_s10 + $0x54] sm:$0xf0] }
 0x4ef   :  { %v6984_v41 = vor.u32 %v8744_v39, %v6983_v38 }
 0x4f0   :  { %v1801_v44 = vadd.f32 %v1772_v42, %v10100_v53  ;;  %v8739_v42 = vld [vmem:[%s12816_s10 + $0x34] sm:$0xf] }
 0x4f2   :  { %v10618_v45 = vadd.f32 %v1801_v44, %v10093_v48  ;;  %v6972_v44 = vor.u32 %v8739_v42, %v6969_v43 }
 0x4f3   :  { %v1551_v49 = vpop.f32.mrf.mxu3 }
 0x4f4   :  { %9163 = vtanh.f32 %v10618_v45  ;;  %v1552_v50 = vadd.f32 %v1551_v49, %v10307_v14  ;;  %v6975_v49 = vld [vmem:[%s12816_s10 + $0x40] sm:$0xf] }
 0x4f5   :  { %v1773_v51 = vpop.f32.mrf.mxu1 }
 0x4f6   :  { %v1555_v52 = vadd.f32 %v1552_v50, %v10111_v61  ;;  %v8742_v50 = vld [vmem:[%s12816_s10 + $0x44] sm:$0xf0] }
 0x4f8   :  { %v10624_v57 = vadd.f32 %v10107_v40, %v1555_v52  ;;  %v6976_v52 = vor.u32 %v8742_v50, %v6975_v49 }
 0x4fa   :  { %v9164_v24 = vpop.eup %9163  ;;  %1806 = vst.msk [vmem:[#allocation2 + $0x10] sm:$0xff] %vm69_vm8, %v10624_v57 }
 0x4fb   :  { %v1553_v53 = vpop.f32.mrf.mxu3  ;;  %v1809_v58 = vpack.c.bf16 %v9164_v24, %v9164_v24 }
 0x4fc   :  { %v8737_v53 = vld [vmem:[%s12816_s10 + $0x24] sm:$0xf] }
 0x4fd   :  { %2011 = vmatmul.bf16.vlgmr.msra.gmra.mxu0 %v1809_v58  ;;  %2037 = vmatmul.bf16.vlgmr.msra.gmra.mxu2 %v1809_v58  ;;  %v6961_v58 = vld [vmem:[%s12816_s10 + $0x28] sm:$0xf0] }
 0x503   :  { %v1797_v59 = vpop.f32.mrf.mxu3 }
 0x504   :  { %v1798_v60 = vadd.f32 %v1797_v59, %v10318_v26  ;;  %v8723_v26 = vld [vmem:[%s12814_s8 + $0x30] sm:$0xff] }
 0x505   :  { %2398 = vmatpush.bf16.msrb.mxu2 %v8723_v26  ;;  %v6953_v26 = vld [vmem:[%s12816_s10 + $0x18] sm:$0xf0] }
 0x506   :  { %v1802_v56 = vadd.f32 %v1798_v60, %v10122_v3  ;;  %v8708_v3 = vld [vmem:[%s12810_s4 + $0x38] sm:$0xff]  ;;  %v6964_v60 = vor.u32 %v8737_v53, %v6961_v58  ;;  %v8711_v58 = vld [vmem:[%s12812_s6 + $0x10] sm:$0xff] }
 0x507   :  { %2148 = vmatpush.bf16.msrb.mxu0 %v8708_v3  ;;  %v6956_v3 = vor.u32 %v8735_v63, %v6953_v26  ;;  %v8712_v53 = vld [vmem:[%s12812_s6 + $0x18] sm:$0xff] }
 0x508   :  { %v10631_v14 = vadd.f32 %v1802_v56, %v10115_v0  ;;  %v6967_v56 = vld [vmem:[%s12816_s10 + $0x30] sm:$0xf] }
 0x509   :  { %2399 = vmatpush.bf16.msrb.mxu2 %v8722_v31  ;;  %v6959_v31 = vld [vmem:[%s12816_s10 + $0x20] sm:$0xf] }
 0x50a   :  { %9165 = vtanh.f32 %v10631_v14 }
 0x50b   :  { %v1799_v40 = vpop.f32.mrf.mxu3  ;;  %2149 = vmatpush.bf16.msrb.mxu0 %v8707_v1  ;;  %v8738_v1 = vld [vmem:[%s12816_s10 + $0x24] sm:$0xf0] }
 0x50c   :  { %v8740_v40 = vld [vmem:[%s12816_s10 + $0x34] sm:$0xf0] }
 0x50d   :  { %2400 = vmatpush.bf16.msrb.mxu2 %v8721_v46  ;;  %v8733_v46 = vld [vmem:[%s12816_s10 + $0x4] sm:$0xf] }
 0x50f   :  { %2150 = vmatpush.bf16.msrb.mxu0 %v8706_v2 }
 0x510   :  { %v9166_v61 = vpop.eup %9165 }
 0x511   :  { %v1810_v62 = vpack.c.bf16 %v9166_v61, %v9166_v61  ;;  %2401 = vmatpush.bf16.msrb.mxu2 %v8720_v4 }
 0x513   :  { %2024 = vmatmul.bf16.vlgmr.msra.gmra.mxu1 %v1810_v62  ;;  %2050 = vmatmul.bf16.vlgmr.msra.gmra.mxu3 %v1810_v62  ;;  %v6968_v62 = vor.u32 %v8740_v40, %v6967_v56  ;;  %v8732_v56 = vld [vmem:[%s12814_s8 + $0x78] sm:$0xff]  ;;  %v7063_v40 = vld [vmem:[%s12816_s10 + $0xf0] sm:$0xf] }
 0x514   :  { %2151 = vmatpush.bf16.msrb.mxu0 %v8705_v5  ;;  %v6960_v5 = vor.u32 %v8738_v1, %v6959_v31  ;;  %2410 = vmatpush.bf16.msrb.mxu3 %v8732_v56  ;;  %v10821_v31 = vld [vmem:[%s12811_s5] ss:$0 sm:$0xff]  ;;  %v8759_v56 = vld [vmem:[%s12816_s10 + $0xd4] sm:$0xf] }
 0x515   :  { %2402 = vmatpush.bf16.msrb.mxu2 %v8719_v7  ;;  %v6945_v7 = vld [vmem:[%s12816_s10 + $0x8] sm:$0xf0] }
 0x518   :  { %2152 = vmatpush.bf16.msrb.mxu0 %v8704_v6 }
 0x519   :  { %2403 = vmatpush.bf16.msrb.mxu2 %v8718_v55  ;;  %v6951_v55 = vld [vmem:[%s12816_s10 + $0x10] sm:$0xf] }
 0x51c   :  { %2153 = vmatpush.bf16.msrb.mxu0 %v8703_v9 }
 0x51d   :  { %2404 = vmatpush.bf16.msrb.mxu2 %v8717_v10  ;;  %v6948_v10 = vor.u32 %v8733_v46, %v6945_v7 }
 0x520   :  { %2154 = vmatpush.bf16.msrb.mxu0 %v8702_v15 }
 0x521   :  { %2643 = vmatpush.bf16.msra.mxu2 %v7004_v13 }
 0x524   :  { %2155 = vmatpush.bf16.msrb.mxu0 %v8701_v21  ;;  %v6944_v21 = vor.u32 %v8734_v18, %v6943_v17 }
 0x525   :  { %2644 = vmatpush.bf16.msra.mxu2 %v6996_v19 }
 0x528   :  { %2617 = vmatpush.bf16.msra.mxu0 %v7000_v25 }
 0x529   :  { %2645 = vmatpush.bf16.msra.mxu2 %v6988_v29 }
 0x52c   :  { %2618 = vmatpush.bf16.msra.mxu0 %v6992_v33 }
 0x52d   :  { %2646 = vmatpush.bf16.msra.mxu2 %v6980_v34 }
 0x530   :  { %2619 = vmatpush.bf16.msra.mxu0 %v6984_v41 }
 0x531   :  { %2647 = vmatpush.bf16.msra.mxu2 %v6972_v44 }
 0x534   :  { %2620 = vmatpush.bf16.msra.mxu0 %v6976_v52  ;;  %v8714_v52 = vld [vmem:[%s12812_s6 + $0x28] sm:$0xff] }
 0x535   :  { %2648 = vmatpush.bf16.msra.mxu2 %v6964_v60  ;;  %v8709_v60 = vld [vmem:[%s12812_s6] sm:$0xff] }
 0x538   :  { %2621 = vmatpush.bf16.msra.mxu0 %v6968_v62  ;;  %v8731_v62 = vld [vmem:[%s12814_s8 + $0x70] sm:$0xff] }
 0x539   :  { %2649 = vmatpush.bf16.msra.mxu2 %v6956_v3  ;;  %2411 = vmatpush.bf16.msrb.mxu3 %v8731_v62 }
 0x53c   :  { %2622 = vmatpush.bf16.msra.mxu0 %v6960_v5  ;;  %v8729_v5 = vld [vmem:[%s12814_s8 + $0x60] sm:$0xff] }
 0x53d   :  { %2650 = vmatpush.bf16.msra.mxu2 %v6948_v10 }
 0x57a   :  { %v2012_v8 = vpop.f32.mrf.mxu0 }
 0x57b   :  { %v2013_v51 = vadd.f32 %v2012_v8, %v9605_v54  ;;  %v8736_v8 = vld [vmem:[%s12816_s10 + $0x14] sm:$0xf0] }
 0x57c   :  { %v6952_v13 = vor.u32 %v8736_v8, %v6951_v55 }
 0x57e   :  { %2623 = vmatpush.bf16.msra.mxu0 %v6952_v13 }
 0x580   :  { %v2038_v16 = vpop.f32.mrf.mxu2 }
 0x581   :  { %v2039_v2 = vadd.f32 %v2038_v16, %v9593_v47 }
 0x582   :  { %v2014_v20 = vpop.f32.mrf.mxu0  ;;  %2624 = vmatpush.bf16.msra.mxu0 %v6944_v21 }
 0x588   :  { %v2040_v35 = vpop.f32.mrf.mxu2 }
 0x590   :  { %v2025_v24 = vpop.f32.mrf.mxu1 }
 0x591   :  { %v2026_v59 = vadd.f32 %v2025_v24, %v2013_v51  ;;  %v8715_v51 = vld [vmem:[%s12812_s6 + $0x30] sm:$0xff]  ;;  %v8713_v24 = vld [vmem:[%s12812_s6 + $0x20] sm:$0xff] }
 0x592   :  { %2241 = vmatpush.bf16.msrb.mxu1 %v8715_v51  ;;  %v8754_v51 = vld [vmem:[%s12816_s10 + $0xa4] sm:$0xf0] }
 0x593   :  { %v2057_v61 = vmin.f32 %v2026_v59, 20.0  ;;  %vm2055_vm2 = vcmp.gt.f32.partialorder %v2026_v59, 20.0 }
 0x595   :  { %v2059_v4 = vmul.f32 1.442695, %v2057_v61  ;;  %v8764_v61 = vld [vmem:[%s12816_s10 + $0xf4] sm:$0xf0] }
 0x596   :  { %v2051_v6 = vpop.f32.mrf.mxu3  ;;  %2242 = vmatpush.bf16.msrb.mxu1 %v8714_v52  ;;  %v7064_v63 = vor.u32 %v8764_v61, %v7063_v40  ;;  %v8761_v52 = vld [vmem:[%s12816_s10 + $0xe4] sm:$0xf]  ;;  %v7049_v61 = vld [vmem:[%s12816_s10 + $0xd8] sm:$0xf0] }
 0x597   :  { %9167 = vpow2.f32 %v2059_v4  ;;  %v2052_v9 = vadd.f32 %v2051_v6, %v2039_v2  ;;  %v8730_v2 = vld [vmem:[%s12814_s8 + $0x68] sm:$0xff]  ;;  %v7052_v62 = vor.u32 %v8759_v56, %v7049_v61 }
 0x598   :  { %v2027_v11 = vpop.f32.mrf.mxu1  ;;  %2412 = vmatpush.bf16.msrb.mxu3 %v8730_v2  ;;  %v7041_v2 = vld [vmem:[%s12816_s10 + $0xc8] sm:$0xf0] }
 0x599   :  { %v2058_v12 = vmin.f32 %v2052_v9, 20.0  ;;  %vm2056_vm4 = vcmp.gt.f32.partialorder %v2052_v9, 20.0 }
 0x59a   :  { %2243 = vmatpush.bf16.msrb.mxu1 %v8713_v24 }
 0x59b   :  { %v2061_v15 = vmul.f32 1.442695, %v2058_v12 }
 0x59c   :  { %2413 = vmatpush.bf16.msrb.mxu3 %v8729_v5  ;;  %v8755_v5 = vld [vmem:[%s12816_s10 + $0xb4] sm:$0xf] }
 0x59d   :  { %v9168_v16 = vpop.eup %9167  ;;  %9169 = vpow2.f32 %v2061_v15 }
 0x59e   :  { %v2063_v19 = vadd.f32 1.0, %v9168_v16  ;;  %v2053_v20 = vpop.f32.mrf.mxu3  ;;  %v2066_v22 = vmul.f32 -0.5, %v9168_v16  ;;  %v2069_v28 = vand.u32 2147483647, %v9168_v16  ;;  %2244 = vmatpush.bf16.msrb.mxu1 %v8712_v53  ;;  %v7057_v53 = vld [vmem:[%s12816_s10 + $0xe8] sm:$0xf0] }
 0x5a0   :  { %9171 = vlog2.f32 %v2063_v19  ;;  %v2067_v25 = vadd.f32 1.0, %v2066_v22  ;;  %vm2070_vm1 = vcmp.lt.f32.partialorder %v2069_v28, 0.0004427343 }
 0x5a2   :  { %v2068_v35 = vmul.f32 %v9168_v16, %v2067_v25  ;;  %2245 = vmatpush.bf16.msrb.mxu1 %v8711_v58  ;;  %v7055_v25 = vld [vmem:[%s12816_s10 + $0xe0] sm:$0xf]  ;;  %v7060_v58 = vor.u32 %v8761_v52, %v7057_v53 }
 0x5a3   :  { %v9170_v23 = vpop.eup %9169  ;;  %v7056_v28 = vor.u32 %v8762_v27, %v7055_v25 }
 0x5a4   :  { %v2072_v29 = vadd.f32 1.0, %v9170_v23  ;;  %v2075_v30 = vmul.f32 -0.5, %v9170_v23  ;;  %v2078_v38 = vand.u32 2147483647, %v9170_v23 }
 0x5a6   :  { %v9172_v32 = vpop.eup %9171  ;;  %9173 = vlog2.f32 %v2072_v29  ;;  %v2076_v37 = vadd.f32 1.0, %v2075_v30  ;;  %vm2079_vm3 = vcmp.lt.f32.partialorder %v2078_v38, 0.0004427343  ;;  %v8727_v29 = vld [vmem:[%s12814_s8 + $0x50] sm:$0xff]  ;;  %v8725_v38 = vld [vmem:[%s12814_s8 + $0x40] sm:$0xff] }
 0x5a7   :  { %v2065_v33 = vmul.f32 0.6931472, %v9172_v32  ;;  %v7047_v30 = vld [vmem:[%s12816_s10 + $0xd0] sm:$0xf]  ;;  %v8760_v32 = vld [vmem:[%s12816_s10 + $0xd4] sm:$0xf0] }
 0x5a8   :  { %v2077_v43 = vmul.f32 %v9170_v23, %v2076_v37  ;;  %v8728_v23 = vld [vmem:[%s12814_s8 + $0x58] sm:$0xff]  ;;  %v8758_v37 = vld [vmem:[%s12816_s10 + $0xc4] sm:$0xf0] }
 0x5a9   :  { %v2071_v36 = vsel %vm2070_vm1, %v2068_v35, %v2065_v33  ;;  %2414 = vmatpush.bf16.msrb.mxu3 %v8728_v23  ;;  %v7048_v33 = vor.u32 %v8760_v32, %v7047_v30  ;;  %v8726_v35 = vld [vmem:[%s12814_s8 + $0x48] sm:$0xff]  ;;  %v8779_v30 = vld [vmem:[%s12808_s2 + $0x74] sm:$0xf] }
 0x5aa   :  { %v2081_v34 = vsel %vm2055_vm2, %v2026_v59, %v2071_v36  ;;  %v8710_v59 = vld [vmem:[%s12812_s6 + $0x8] sm:$0xff]  ;;  %v7039_v36 = vld [vmem:[%s12816_s10 + $0xc0] sm:$0xf] }
 0x5ab   :  { %v2267_v39 = vpack.c.bf16 %v2081_v34, %v2081_v34  ;;  %2246 = vmatpush.bf16.msrb.mxu1 %v8710_v59  ;;  %v7040_v34 = vor.u32 %v8758_v37, %v7039_v36  ;;  %v7015_v59 = vld [vmem:[%s12816_s10 + $0x90] sm:$0xf]  ;;  %v7129_v36 = vld [vmem:[%s12808_s2 + $0x78] sm:$0xf0] }
 0x5ac   :  { %v9174_v41 = vpop.eup %9173  ;;  %v7132_v37 = vor.u32 %v8779_v30, %v7129_v36  ;;  %v8767_v30 = vld [vmem:[%s12808_s2 + $0x14] sm:$0xf]  ;;  %v7183_v36 = vld [vmem:[%s12808_s2 + $0xe0] sm:$0xf] }
 0x5ad   :  { %v2074_v42 = vmul.f32 0.6931472, %v9174_v41  ;;  %2405 = vmatmul.bf16.vlgmr.msrb.gmra.mxu2 %v2267_v39  ;;  %2415 = vmatpush.bf16.msrb.mxu3 %v8727_v29  ;;  %v8756_v41 = vld [vmem:[%s12816_s10 + $0xb4] sm:$0xf0] }
 0x5ae   :  { %v8780_v29 = vld [vmem:[%s12808_s2 + $0x74] sm:$0xf0]  ;;  %2897 = vmatpush.bf16.msrb.mxu2 %v7132_v37  ;;  %v8794_v37 = vld [vmem:[%s12808_s2 + $0xe4] sm:$0xf0] }
 0x5af   :  { %v2080_v44 = vsel %vm2079_vm3, %v2077_v43, %v2074_v42  ;;  %2247 = vmatpush.bf16.msrb.mxu1 %v8709_v60  ;;  %v8763_v43 = vld [vmem:[%s12816_s10 + $0xf4] sm:$0xf]  ;;  %v8752_v60 = vld [vmem:[%s12816_s10 + $0x94] sm:$0xf0] }
 0x5b0   :  { %v2082_v49 = vsel %vm2056_vm4, %v2052_v9, %v2080_v44  ;;  %v7065_v44 = vld [vmem:[%s12816_s10 + $0xf8] sm:$0xf0]  ;;  %v7016_v40 = vor.u32 %v8752_v60, %v7015_v59  ;;  %v7103_v59 = vld [vmem:[%s12808_s2 + $0x40] sm:$0xf]  ;;  %v8774_v60 = vld [vmem:[%s12808_s2 + $0x44] sm:$0xf0] }
 0x5b1   :  { %v2083_v50 = vpack.c.bf16 %v2082_v49, %v2082_v49  ;;  %2416 = vmatpush.bf16.msrb.mxu3 %v8726_v35  ;;  %v7068_v49 = vor.u32 %v8763_v43, %v7065_v44  ;;  %v7111_v44 = vld [vmem:[%s12808_s2 + $0x50] sm:$0xf] }
 0x5b3   :  { %2156 = vmatmul.bf16.vlgmr.msrb.gmra.mxu0 %v2083_v50  ;;  %2630 = vmatpush.bf16.msra.mxu1 %v7064_v63  ;;  %v7023_v50 = vld [vmem:[%s12816_s10 + $0xa0] sm:$0xf] }
 0x5b4   :  { %v7024_v24 = vor.u32 %v8754_v51, %v7023_v50  ;;  %v7007_v63 = vld [vmem:[%s12816_s10 + $0x80] sm:$0xf]  ;;  %v8775_v50 = vld [vmem:[%s12808_s2 + $0x54] sm:$0xf]  ;;  %v7113_v51 = vld [vmem:[%s12808_s2 + $0x58] sm:$0xf0] }
 0x5b5   :  { %2417 = vmatpush.bf16.msrb.mxu3 %v8725_v38  ;;  %v8778_v38 = vld [vmem:[%s12808_s2 + $0x64] sm:$0xf0] }
 0x5b7   :  { %2631 = vmatpush.bf16.msra.mxu1 %v7056_v28  ;;  %v7127_v28 = vld [vmem:[%s12808_s2 + $0x70] sm:$0xf] }
 0x5b8   :  { %v7128_v35 = vor.u32 %v8780_v29, %v7127_v28  ;;  %v7079_v28 = vld [vmem:[%s12808_s2 + $0x10] sm:$0xf]  ;;  %v8768_v29 = vld [vmem:[%s12808_s2 + $0x14] sm:$0xf0] }
 0x5b9   :  { %2656 = vmatpush.bf16.msra.mxu3 %v7068_v49  ;;  %v8776_v49 = vld [vmem:[%s12808_s2 + $0x54] sm:$0xf0] }
 0x5ba   :  { %2871 = vmatpush.bf16.msrb.mxu0 %v7128_v35  ;;  %v7112_v53 = vor.u32 %v8776_v49, %v7111_v44  ;;  %v8765_v49 = vld [vmem:[%s12808_s2 + $0x4] sm:$0xf] }
 0x5bb   :  { %2632 = vmatpush.bf16.msra.mxu1 %v7048_v33 }
 0x5bd   :  { %2651 = vmatmul.bf16.vlgmr.msra.gmra.mxu2 %v2267_v39  ;;  %2657 = vmatpush.bf16.msra.mxu3 %v7060_v58  ;;  %v7116_v58 = vor.u32 %v8775_v50, %v7113_v51  ;;  %v7073_v50 = vld [vmem:[%s12808_s2 + $0x8] sm:$0xf0] }
 0x5be   :  { %v7076_v51 = vor.u32 %v8765_v49, %v7073_v50 }
 0x5bf   :  { %2633 = vmatpush.bf16.msra.mxu1 %v7040_v34  ;;  %v7119_v34 = vld [vmem:[%s12808_s2 + $0x60] sm:$0xf] }
 0x5c1   :  { %2658 = vmatpush.bf16.msra.mxu3 %v7052_v62  ;;  %v8773_v62 = vld [vmem:[%s12808_s2 + $0x44] sm:$0xf] }
 0x5c3   :  { %2625 = vmatmul.bf16.vlgmr.msra.gmra.mxu0 %v2267_v39  ;;  %v7031_v39 = vld [vmem:[%s12816_s10 + $0xb0] sm:$0xf] }
 0x5c4   :  { %v7032_v42 = vor.u32 %v8756_v41, %v7031_v39  ;;  %v8777_v39 = vld [vmem:[%s12808_s2 + $0x64] sm:$0xf]  ;;  %v7120_v41 = vor.u32 %v8778_v38, %v7119_v34  ;;  %v7184_v38 = vor.u32 %v8794_v37, %v7183_v36 }
 0x5c5   :  { %v8793_v34 = vld [vmem:[%s12808_s2 + $0xe4] sm:$0xf] }
 0x5c6   :  { %2634 = vmatpush.bf16.msra.mxu1 %v7032_v42  ;;  %v7121_v42 = vld [vmem:[%s12808_s2 + $0x68] sm:$0xf0]  ;;  %2872 = vmatpush.bf16.msrb.mxu0 %v7120_v41  ;;  %v7071_v41 = vld [vmem:[%s12808_s2] sm:$0xf] }
 0x5c7   :  { %v7124_v43 = vor.u32 %v8777_v39, %v7121_v42  ;;  %v7185_v39 = vld [vmem:[%s12808_s2 + $0xe8] sm:$0xf0]  ;;  %v8766_v42 = vld [vmem:[%s12808_s2 + $0x4] sm:$0xf0] }
 0x5c8   :  { %v7072_v44 = vor.u32 %v8766_v42, %v7071_v41 }
 0x5c9   :  { %2898 = vmatpush.bf16.msrb.mxu2 %v7124_v43  ;;  %v7188_v43 = vor.u32 %v8793_v34, %v7185_v39 }
 0x5ca   :  { %2635 = vmatpush.bf16.msra.mxu1 %v7024_v24  ;;  %2873 = vmatpush.bf16.msrb.mxu0 %v7112_v53  ;;  %v8791_v53 = vld [vmem:[%s12808_s2 + $0xd4] sm:$0xf] }
 0x5cd   :  { %2899 = vmatpush.bf16.msrb.mxu2 %v7116_v58 }
 0x5ce   :  { %2636 = vmatpush.bf16.msra.mxu1 %v7016_v40 }
 0x630   :  { %v2157_v26 = vpop.f32.mrf.mxu0  ;;  %v10816_v3 = vpop.f32.mrf.mxu2 }
 0x631   :  { %v2158_v1 = vadd.f32 %v10821_v31, %v2157_v26  ;;  %v8750_v26 = vld [vmem:[%s12816_s10 + $0x84] sm:$0xf0] }
 0x633   :  { %v2162_v46 = vmin.f32 %v2158_v1, 20.0  ;;  %vm2161_vm6 = vcmp.gt.f32.partialorder %v2158_v1, 20.0 }
 0x635   :  { %v2163_v4 = vmul.f32 1.442695, %v2162_v46  ;;  %v7008_v46 = vor.u32 %v8750_v26, %v7007_v63  ;;  %v7105_v63 = vld [vmem:[%s12808_s2 + $0x48] sm:$0xf0]  ;;  %v7104_v26 = vor.u32 %v8774_v60, %v7103_v59  ;;  %v7177_v59 = vld [vmem:[%s12808_s2 + $0xd8] sm:$0xf0] }
 0x636   :  { %v7180_v60 = vor.u32 %v8791_v53, %v7177_v59  ;;  %v8803_v53 = vld [vmem:[%s12810_s4 + $0x30] sm:$0xff]  ;;  %v8802_v59 = vld [vmem:[%s12810_s4 + $0x28] sm:$0xff] }
 0x637   :  { %9175 = vpow2.f32 %v2163_v4  ;;  %2637 = vmatpush.bf16.msra.mxu1 %v7008_v46  ;;  %2874 = vmatpush.bf16.msrb.mxu0 %v7104_v26 }
 0x638   :  { %v2159_v7 = vpop.f32.mrf.mxu0  ;;  %v2408_v6 = vpop.f32.mrf.mxu2 }
 0x639   :  { %v7033_v7 = vld [vmem:[%s12816_s10 + $0xb8] sm:$0xf0] }
 0x63a   :  { %v7036_v6 = vor.u32 %v8755_v5, %v7033_v7  ;;  %v7095_v5 = vld [vmem:[%s12808_s2 + $0x30] sm:$0xf]  ;;  %v8772_v7 = vld [vmem:[%s12808_s2 + $0x34] sm:$0xf0] }
 0x63d   :  { %v9176_v55 = vpop.eup %9175 }
 0x63e   :  { %v2165_v8 = vadd.f32 1.0, %v9176_v55  ;;  %v2168_v9 = vmul.f32 -0.5, %v9176_v55  ;;  %v2171_v13 = vand.u32 2147483647, %v9176_v55 }
 0x640   :  { %9177 = vlog2.f32 %v2165_v8  ;;  %v10830_v10 = vpop.f32.mrf.mxu0  ;;  %v10832_v11 = vpop.f32.mrf.mxu2  ;;  %v2169_v12 = vadd.f32 1.0, %v2168_v9  ;;  %vm2172_vm5 = vcmp.lt.f32.partialorder %v2171_v13, 0.0004427343  ;;  %v7025_v8 = vld [vmem:[%s12816_s10 + $0xa8] sm:$0xf0] }
 0x641   :  { %v10927_v13 = vld [vmem:[%s12813_s7] ss:$0 sm:$0xff] }
 0x642   :  { %v2170_v17 = vmul.f32 %v9176_v55, %v2169_v12  ;;  %v8753_v55 = vld [vmem:[%s12816_s10 + $0xa4] sm:$0xf] }
 0x643   :  { %v7028_v12 = vor.u32 %v8753_v55, %v7025_v8  ;;  %v7096_v55 = vor.u32 %v8772_v7, %v7095_v5  ;;  %v7097_v8 = vld [vmem:[%s12808_s2 + $0x38] sm:$0xf0] }
 0x644   :  { %v7161_v5 = vld [vmem:[%s12808_s2 + $0xb8] sm:$0xf0] }
 0x645   :  { %2875 = vmatpush.bf16.msrb.mxu0 %v7096_v55  ;;  %v8786_v55 = vld [vmem:[%s12808_s2 + $0xa4] sm:$0xf0] }
 0x646   :  { %v9178_v15 = vpop.eup %9177 }
 0x647   :  { %v2167_v16 = vmul.f32 0.6931472, %v9178_v15 }
 0x648   :  { %v2628_v18 = vpop.f32.mrf.mxu0  ;;  %v2654_v19 = vpop.f32.mrf.mxu2 }
 0x649   :  { %v2173_v20 = vsel %vm2172_vm5, %v2170_v17, %v2167_v16  ;;  %v8751_v16 = vld [vmem:[%s12816_s10 + $0x94] sm:$0xf]  ;;  %v7017_v17 = vld [vmem:[%s12816_s10 + $0x98] sm:$0xf0] }
 0x64a   :  { %v2174_v21 = vsel %vm2161_vm6, %v2158_v1, %v2173_v20  ;;  %v8757_v1 = vld [vmem:[%s12816_s10 + $0xc4] sm:$0xf]  ;;  %v7020_v19 = vor.u32 %v8751_v16, %v7017_v17 }
 0x64b   :  { %v2175_v22 = vpack.c.bf16 %v2174_v21, %v2174_v21  ;;  %v7044_v4 = vor.u32 %v8757_v1, %v7041_v2  ;;  %v8749_v21 = vld [vmem:[%s12816_s10 + $0x84] sm:$0xf]  ;;  %v7108_v2 = vor.u32 %v8773_v62, %v7105_v63  ;;  %v7169_v63 = vld [vmem:[%s12808_s2 + $0xc8] sm:$0xf0] }
 0x64c   :  { %v8769_v16 = vld [vmem:[%s12808_s2 + $0x24] sm:$0xf] }
 0x64d   :  { %2248 = vmatmul.bf16.vlgmr.msrb.gmra.mxu1 %v2175_v22  ;;  %2659 = vmatpush.bf16.msra.mxu3 %v7044_v4  ;;  %v7009_v22 = vld [vmem:[%s12816_s10 + $0x88] sm:$0xf0] }
 0x64e   :  { %v7012_v25 = vor.u32 %v8749_v21, %v7009_v22  ;;  %2900 = vmatpush.bf16.msrb.mxu2 %v7108_v2  ;;  %v8796_v21 = vld [vmem:[%s12808_s2 + $0xf4] sm:$0xf0]  ;;  %v8795_v22 = vld [vmem:[%s12808_s2 + $0xf4] sm:$0xf] }
 0x64f   :  { %v8787_v2 = vld [vmem:[%s12808_s2 + $0xb4] sm:$0xf] }
 0x650   :  { %v7164_v7 = vor.u32 %v8787_v2, %v7161_v5  ;;  %v7385_v2 = vld [vmem:[%s12816_s10 + $0x78] sm:$0xf0]  ;;  %v8798_v5 = vld [vmem:[%s12810_s4 + $0x8] sm:$0xff] }
 0x651   :  { %2660 = vmatpush.bf16.msra.mxu3 %v7036_v6  ;;  %v8771_v6 = vld [vmem:[%s12808_s2 + $0x34] sm:$0xf] }
 0x655   :  { %2661 = vmatpush.bf16.msra.mxu3 %v7028_v12  ;;  %v7087_v12 = vld [vmem:[%s12808_s2 + $0x20] sm:$0xf] }
 0x659   :  { %2662 = vmatpush.bf16.msra.mxu3 %v7020_v19 }
 0x65d   :  { %2663 = vmatpush.bf16.msra.mxu3 %v7012_v25  ;;  %v7193_v25 = vld [vmem:[%s12808_s2 + $0xf8] sm:$0xf0] }
 0x6ca   :  { %v2249_v9 = vpop.f32.mrf.mxu1 }
 0x6cb   :  { %v2250_v15 = vadd.f32 %v10927_v13, %v2249_v9  ;;  %v7100_v9 = vor.u32 %v8771_v6, %v7097_v8  ;;  %v7151_v6 = vld [vmem:[%s12808_s2 + $0xa0] sm:$0xf]  ;;  %v8785_v8 = vld [vmem:[%s12808_s2 + $0xa4] sm:$0xf] }
 0x6cd   :  { %v2254_v18 = vmin.f32 %v2250_v15, 20.0  ;;  %vm2253_vm9 = vcmp.gt.f32.partialorder %v2250_v15, 20.0  ;;  %2901 = vmatpush.bf16.msrb.mxu2 %v7100_v9  ;;  %v7152_v9 = vor.u32 %v8786_v55, %v7151_v6  ;;  %v8841_v6 = vld [vmem:[%s12816_s10 + $0x64] sm:$0xf]  ;;  %v7377_v55 = vld [vmem:[%s12816_s10 + $0x68] sm:$0xf0] }
 0x6cf   :  { %v2255_v20 = vmul.f32 1.442695, %v2254_v18  ;;  %v7089_v18 = vld [vmem:[%s12808_s2 + $0x28] sm:$0xf0] }
 0x6d0   :  { %v7092_v19 = vor.u32 %v8769_v16, %v7089_v18  ;;  %v7143_v16 = vld [vmem:[%s12808_s2 + $0x90] sm:$0xf]  ;;  %v8783_v18 = vld [vmem:[%s12808_s2 + $0x94] sm:$0xf] }
 0x6d1   :  { %9179 = vpow2.f32 %v2255_v20  ;;  %v7191_v20 = vld [vmem:[%s12808_s2 + $0xf0] sm:$0xf] }
 0x6d2   :  { %v2251_v23 = vpop.f32.mrf.mxu1  ;;  %2902 = vmatpush.bf16.msrb.mxu2 %v7092_v19 }
 0x6d3   :  { %v7192_v23 = vor.u32 %v8796_v21, %v7191_v20  ;;  %v7145_v20 = vld [vmem:[%s12808_s2 + $0x98] sm:$0xf0]  ;;  %v7135_v21 = vld [vmem:[%s12808_s2 + $0x80] sm:$0xf] }
 0x6d5   :  { %2884 = vmatpush.bf16.msrb.mxu1 %v7192_v23  ;;  %v7148_v23 = vor.u32 %v8783_v18, %v7145_v20  ;;  %v8839_v18 = vld [vmem:[%s12816_s10 + $0x54] sm:$0xf] }
 0x6d7   :  { %v9180_v27 = vpop.eup %9179 }
 0x6d8   :  { %v2257_v32 = vadd.f32 1.0, %v9180_v27  ;;  %v2260_v33 = vmul.f32 -0.5, %v9180_v27  ;;  %v2263_v24 = vand.u32 2147483647, %v9180_v27 }
 0x6d9   :  { %2885 = vmatpush.bf16.msrb.mxu1 %v7184_v38 }
 0x6da   :  { %9181 = vlog2.f32 %v2257_v32  ;;  %v2261_v52 = vadd.f32 1.0, %v2260_v33  ;;  %vm2264_vm7 = vcmp.lt.f32.partialorder %v2263_v24, 0.0004427343  ;;  %v7080_v32 = vor.u32 %v8768_v29, %v7079_v28  ;;  %v7081_v33 = vld [vmem:[%s12808_s2 + $0x18] sm:$0xf0] }
 0x6db   :  { %v7084_v35 = vor.u32 %v8767_v30, %v7081_v33  ;;  %v8792_v24 = vld [vmem:[%s12808_s2 + $0xd4] sm:$0xf0] }
 0x6dc   :  { %v2262_v61 = vmul.f32 %v9180_v27, %v2261_v52  ;;  %v7196_v27 = vor.u32 %v8795_v22, %v7193_v25  ;;  %v7175_v52 = vld [vmem:[%s12808_s2 + $0xd0] sm:$0xf]  ;;  %v8782_v22 = vld [vmem:[%s12808_s2 + $0x84] sm:$0xf0]  ;;  %v8781_v25 = vld [vmem:[%s12808_s2 + $0x84] sm:$0xf] }
 0x6dd   :  { %2903 = vmatpush.bf16.msrb.mxu2 %v7084_v35  ;;  %v7176_v58 = vor.u32 %v8792_v24, %v7175_v52  ;;  %v7136_v29 = vor.u32 %v8782_v22, %v7135_v21  ;;  %v8820_v52 = vld [vmem:[%s12814_s8 + $0x38] sm:$0xff]  ;;  %v8818_v24 = vld [vmem:[%s12814_s8 + $0x28] sm:$0xff]  ;;  %v7375_v21 = vld [vmem:[%s12816_s10 + $0x60] sm:$0xf] }
 0x6de   :  { %v8842_v22 = vld [vmem:[%s12816_s10 + $0x64] sm:$0xf0] }
 0x6df   :  { %2886 = vmatpush.bf16.msrb.mxu1 %v7176_v58  ;;  %v8817_v58 = vld [vmem:[%s12814_s8 + $0x20] sm:$0xff] }
 0x6e0   :  { %v9182_v56 = vpop.eup %9181 }
 0x6e1   :  { %v2259_v40 = vmul.f32 0.6931472, %v9182_v56  ;;  %2904 = vmatpush.bf16.msrb.mxu2 %v7076_v51  ;;  %v7167_v56 = vld [vmem:[%s12808_s2 + $0xc0] sm:$0xf] }
 0x6e3   :  { %v2265_v1 = vsel %vm2264_vm7, %v2262_v61, %v2259_v40  ;;  %v8790_v40 = vld [vmem:[%s12808_s2 + $0xc4] sm:$0xf0]  ;;  %v8789_v61 = vld [vmem:[%s12808_s2 + $0xc4] sm:$0xf] }
 0x6e4   :  { %v2266_v46 = vsel %vm2253_vm9, %v2250_v15, %v2265_v1  ;;  %v8770_v15 = vld [vmem:[%s12808_s2 + $0x24] sm:$0xf0]  ;;  %v7168_v62 = vor.u32 %v8790_v40, %v7167_v56  ;;  %v7172_v26 = vor.u32 %v8789_v61, %v7169_v63  ;;  %v7159_v1 = vld [vmem:[%s12808_s2 + $0xb0] sm:$0xf]  ;;  %v8801_v56 = vld [vmem:[%s12810_s4 + $0x20] sm:$0xff] }
 0x6e5   :  { %v2268_v4 = vpack.c.bf16 %v2266_v46, %v2266_v46  ;;  %v7088_v17 = vor.u32 %v8770_v15, %v7087_v12  ;;  %v8788_v46 = vld [vmem:[%s12808_s2 + $0xb4] sm:$0xf0]  ;;  %v7153_v12 = vld [vmem:[%s12808_s2 + $0xa8] sm:$0xf0]  ;;  %3265 = vmatpush.bf16.msra.mxu2 %v8820_v52  ;;  %v8815_v40 = vld [vmem:[%s12814_s8 + $0x10] sm:$0xff] }
 0x6e6   :  { %2887 = vmatpush.bf16.msrb.mxu1 %v7168_v62  ;;  %v7156_v15 = vor.u32 %v8785_v8, %v7153_v12  ;;  %v8800_v61 = vld [vmem:[%s12810_s4 + $0x18] sm:$0xff]  ;;  %v8814_v62 = vld [vmem:[%s12814_s8 + $0x8] sm:$0xff]  ;;  %v7380_v8 = vor.u32 %v8841_v6, %v7377_v55  ;;  %v8797_v12 = vld [vmem:[%s12810_s4] sm:$0xff] }
 0x6e7   :  { %2418 = vmatmul.bf16.vlgmr.msrb.gmra.mxu3 %v2268_v4  ;;  %2638 = vmatmul.bf16.vlgmr.msra.gmra.mxu1 %v2268_v4  ;;  %v8836_v52 = vld [vmem:[%s12816_s10 + $0x34] sm:$0xf0] }
 0x6e8   :  { %2876 = vmatpush.bf16.msrb.mxu0 %v7088_v17  ;;  %2910 = vmatpush.bf16.msrb.mxu3 %v7196_v27  ;;  %v8784_v17 = vld [vmem:[%s12808_s2 + $0x94] sm:$0xf0]  ;;  %v7137_v27 = vld [vmem:[%s12808_s2 + $0x88] sm:$0xf0] }
 0x6e9   :  { %v7144_v19 = vor.u32 %v8784_v17, %v7143_v16  ;;  %v8844_v16 = vld [vmem:[%s12816_s10 + $0x74] sm:$0xf0] }
 0x6ec   :  { %2877 = vmatpush.bf16.msrb.mxu0 %v7080_v32  ;;  %2911 = vmatpush.bf16.msrb.mxu3 %v7188_v43  ;;  %v7140_v32 = vor.u32 %v8781_v25, %v7137_v27  ;;  %v8837_v27 = vld [vmem:[%s12816_s10 + $0x44] sm:$0xf] }
 0x6f0   :  { %2878 = vmatpush.bf16.msrb.mxu0 %v7072_v44  ;;  %2912 = vmatpush.bf16.msrb.mxu3 %v7180_v60  ;;  %v8816_v60 = vld [vmem:[%s12814_s8 + $0x18] sm:$0xff] }
 0x6f4   :  { %2913 = vmatpush.bf16.msrb.mxu3 %v7172_v26  ;;  %v8799_v26 = vld [vmem:[%s12810_s4 + $0x10] sm:$0xff] }
 0x6f7   :  { %2664 = vmatmul.bf16.vlgmr.msra.gmra.mxu3 %v2268_v4  ;;  %v7160_v4 = vor.u32 %v8788_v46, %v7159_v1  ;;  %v8813_v1 = vld [vmem:[%s12814_s8] sm:$0xff]  ;;  %v8843_v46 = vld [vmem:[%s12816_s10 + $0x74] sm:$0xf] }
 0x6f8   :  { %2914 = vmatpush.bf16.msrb.mxu3 %v7164_v7 }
 0x6f9   :  { %2888 = vmatpush.bf16.msrb.mxu1 %v7160_v4  ;;  %v7388_v4 = vor.u32 %v8843_v46, %v7385_v2  ;;  %v8832_v46 = vld [vmem:[%s12816_s10 + $0x14] sm:$0xf0] }
 0x6fc   :  { %2915 = vmatpush.bf16.msrb.mxu3 %v7156_v15  ;;  %v7383_v15 = vld [vmem:[%s12816_s10 + $0x70] sm:$0xf] }
 0x6fd   :  { %2889 = vmatpush.bf16.msrb.mxu1 %v7152_v9  ;;  %v7384_v17 = vor.u32 %v8844_v16, %v7383_v15 }
 0x700   :  { %2916 = vmatpush.bf16.msrb.mxu3 %v7148_v23  ;;  %v7376_v23 = vor.u32 %v8842_v22, %v7375_v21  ;;  %v8812_v21 = vld [vmem:[%s12812_s6 + $0x38] sm:$0xff] }
 0x701   :  { %2890 = vmatpush.bf16.msrb.mxu1 %v7144_v19  ;;  %v7369_v19 = vld [vmem:[%s12816_s10 + $0x58] sm:$0xf0] }
 0x702   :  { %v7372_v20 = vor.u32 %v8839_v18, %v7369_v19 }
 0x704   :  { %2917 = vmatpush.bf16.msrb.mxu3 %v7140_v32  ;;  %v8840_v32 = vld [vmem:[%s12816_s10 + $0x54] sm:$0xf0] }
 0x705   :  { %2891 = vmatpush.bf16.msrb.mxu1 %v7136_v29 }
 0x709   :  { %3108 = vmatpush.bf16.msra.mxu1 %v8812_v21  ;;  %v7439_v21 = vld [vmem:[%s12816_s10 + $0xe0] sm:$0xf] }
 0x764   :  { %v2639_v28 = vpop.f32.mrf.mxu1 }
 0x765   :  { %v2640_v30 = vadd.f32 %v2639_v28, %v10830_v10  ;;  %v11145_v10 = vld [vmem:[%s12815_s9] ss:$0 sm:$0xff]  ;;  %v7361_v28 = vld [vmem:[%s12816_s10 + $0x48] sm:$0xf0] }
 0x766   :  { %v7364_v29 = vor.u32 %v8837_v27, %v7361_v28 }
 0x767   :  { %v2669_v33 = vadd.f32 %v2640_v30, %v10618_v45  ;;  %v7367_v30 = vld [vmem:[%s12816_s10 + $0x50] sm:$0xf] }
 0x769   :  { %v11137_v35 = vadd.f32 %v2669_v33, %v10093_v48  ;;  %v7368_v33 = vor.u32 %v8840_v32, %v7367_v30 }
 0x76a   :  { %v2419_v36 = vpop.f32.mrf.mxu3 }
 0x76b   :  { %9183 = vtanh.f32 %v11137_v35  ;;  %v2420_v37 = vadd.f32 %v2419_v36, %v10816_v3  ;;  %v8835_v36 = vld [vmem:[%s12816_s10 + $0x34] sm:$0xf] }
 0x76c   :  { %v2641_v34 = vpop.f32.mrf.mxu1 }
 0x76d   :  { %v2423_v38 = vadd.f32 %v2420_v37, %v10624_v57  ;;  %v7353_v37 = vld [vmem:[%s12816_s10 + $0x38] sm:$0xf0] }
 0x76e   :  { %v7356_v34 = vor.u32 %v8835_v36, %v7353_v37 }
 0x76f   :  { %v11148_v45 = vadd.f32 %v11145_v10, %v2423_v38  ;;  %v7359_v38 = vld [vmem:[%s12816_s10 + $0x40] sm:$0xf] }
 0x771   :  { %v9184_v39 = vpop.eup %9183  ;;  %2674 = vst.msk [vmem:[#allocation2 + $0x18] sm:$0xff] %vm69_vm8, %v11148_v45 }
 0x772   :  { %v2421_v41 = vpop.f32.mrf.mxu3  ;;  %v2677_v42 = vpack.c.bf16 %v9184_v39, %v9184_v39  ;;  %v8838_v39 = vld [vmem:[%s12816_s10 + $0x44] sm:$0xf0] }
 0x774   :  { %2879 = vmatmul.bf16.vlgmr.msrb.gmra.mxu0 %v2677_v42  ;;  %2905 = vmatmul.bf16.vlgmr.msrb.gmra.mxu2 %v2677_v42  ;;  %v7360_v42 = vor.u32 %v8838_v39, %v7359_v38 }
 0x77a   :  { %v2665_v3 = vpop.f32.mrf.mxu3 }
 0x77b   :  { %v2666_v43 = vadd.f32 %v2665_v3, %v10832_v11  ;;  %v8819_v11 = vld [vmem:[%s12814_s8 + $0x30] sm:$0xff] }
 0x77c   :  { %3266 = vmatpush.bf16.msra.mxu2 %v8819_v11 }
 0x77d   :  { %v2670_v57 = vadd.f32 %v2666_v43, %v10631_v14  ;;  %v8804_v14 = vld [vmem:[%s12810_s4 + $0x38] sm:$0xff]  ;;  %v8833_v43 = vld [vmem:[%s12816_s10 + $0x24] sm:$0xf] }
 0x77e   :  { %3016 = vmatpush.bf16.msra.mxu0 %v8804_v14 }
 0x77f   :  { %v11155_v44 = vadd.f32 %v2670_v57, %v10115_v0  ;;  %v7345_v57 = vld [vmem:[%s12816_s10 + $0x28] sm:$0xf0] }
 0x780   :  { %3267 = vmatpush.bf16.msra.mxu2 %v8818_v24  ;;  %v8831_v24 = vld [vmem:[%s12816_s10 + $0x14] sm:$0xf] }
 0x781   :  { %9185 = vtanh.f32 %v11155_v44 }
 0x782   :  { %v2667_v49 = vpop.f32.mrf.mxu3  ;;  %3017 = vmatpush.bf16.msra.mxu0 %v8803_v53  ;;  %v7337_v53 = vld [vmem:[%s12816_s10 + $0x18] sm:$0xf0] }
 0x784   :  { %3268 = vmatpush.bf16.msra.mxu2 %v8817_v58  ;;  %v7340_v58 = vor.u32 %v8831_v24, %v7337_v53  ;;  %v7447_v24 = vld [vmem:[%s12816_s10 + $0xf0] sm:$0xf]  ;;  %v8860_v53 = vld [vmem:[%s12816_s10 + $0xf4] sm:$0xf0] }
 0x786   :  { %3018 = vmatpush.bf16.msra.mxu0 %v8802_v59  ;;  %v7343_v59 = vld [vmem:[%s12816_s10 + $0x20] sm:$0xf] }
 0x787   :  { %v9186_v50 = vpop.eup %9185 }
 0x788   :  { %v2678_v51 = vpack.c.bf16 %v9186_v50, %v9186_v50  ;;  %3269 = vmatpush.bf16.msra.mxu2 %v8816_v60  ;;  %v7348_v50 = vor.u32 %v8833_v43, %v7345_v57  ;;  %v8834_v60 = vld [vmem:[%s12816_s10 + $0x24] sm:$0xf0]  ;;  %v8811_v43 = vld [vmem:[%s12812_s6 + $0x30] sm:$0xff] }
 0x789   :  { %3109 = vmatpush.bf16.msra.mxu1 %v8811_v43  ;;  %v8810_v57 = vld [vmem:[%s12812_s6 + $0x28] sm:$0xff]  ;;  %v7407_v43 = vld [vmem:[%s12816_s10 + $0xa0] sm:$0xf] }
 0x78a   :  { %2892 = vmatmul.bf16.vlgmr.msrb.gmra.mxu1 %v2678_v51  ;;  %2918 = vmatmul.bf16.vlgmr.msrb.gmra.mxu3 %v2678_v51  ;;  %v7351_v51 = vld [vmem:[%s12816_s10 + $0x30] sm:$0xf] }
 0x78b   :  { %3019 = vmatpush.bf16.msra.mxu0 %v8801_v56  ;;  %v7352_v14 = vor.u32 %v8836_v52, %v7351_v51  ;;  %v8829_v56 = vld [vmem:[%s12816_s10 + $0x4] sm:$0xf]  ;;  %v8807_v51 = vld [vmem:[%s12812_s6 + $0x10] sm:$0xff]  ;;  %v8806_v52 = vld [vmem:[%s12812_s6 + $0x8] sm:$0xff] }
 0x78c   :  { %3270 = vmatpush.bf16.msra.mxu2 %v8815_v40 }
 0x78d   :  { %3110 = vmatpush.bf16.msra.mxu1 %v8810_v57  ;;  %v8850_v57 = vld [vmem:[%s12816_s10 + $0xa4] sm:$0xf0] }
 0x78f   :  { %3020 = vmatpush.bf16.msra.mxu0 %v8800_v61 }
 0x790   :  { %3271 = vmatpush.bf16.msra.mxu2 %v8814_v62  ;;  %v7344_v62 = vor.u32 %v8834_v60, %v7343_v59  ;;  %v7448_v59 = vor.u32 %v8860_v53, %v7447_v24  ;;  %v8855_v24 = vld [vmem:[%s12816_s10 + $0xd4] sm:$0xf] }
 0x793   :  { %3021 = vmatpush.bf16.msra.mxu0 %v8799_v26 }
 0x794   :  { %3272 = vmatpush.bf16.msra.mxu2 %v8813_v1  ;;  %v7335_v1 = vld [vmem:[%s12816_s10 + $0x10] sm:$0xf] }
 0x795   :  { %v7336_v6 = vor.u32 %v8832_v46, %v7335_v1 }
 0x797   :  { %3022 = vmatpush.bf16.msra.mxu0 %v8798_v5 }
 0x798   :  { %3511 = vmatpush.bf16.msrb.mxu2 %v7388_v4 }
 0x79b   :  { %3023 = vmatpush.bf16.msra.mxu0 %v8797_v12  ;;  %v8830_v12 = vld [vmem:[%s12816_s10 + $0x4] sm:$0xf0] }
 0x79c   :  { %3512 = vmatpush.bf16.msrb.mxu2 %v7380_v8 }
 0x79f   :  { %3485 = vmatpush.bf16.msrb.mxu0 %v7384_v17 }
 0x7a0   :  { %3513 = vmatpush.bf16.msrb.mxu2 %v7372_v20 }
 0x7a3   :  { %3486 = vmatpush.bf16.msrb.mxu0 %v7376_v23 }
 0x7a4   :  { %3514 = vmatpush.bf16.msrb.mxu2 %v7364_v29 }
 0x7a7   :  { %3487 = vmatpush.bf16.msrb.mxu0 %v7368_v33 }
 0x7a8   :  { %3515 = vmatpush.bf16.msrb.mxu2 %v7356_v34 }
 0x7ab   :  { %3488 = vmatpush.bf16.msrb.mxu0 %v7360_v42 }
 0x7ac   :  { %3516 = vmatpush.bf16.msrb.mxu2 %v7348_v50  ;;  %v8808_v50 = vld [vmem:[%s12812_s6 + $0x18] sm:$0xff] }
 0x7af   :  { %3489 = vmatpush.bf16.msrb.mxu0 %v7352_v14  ;;  %v8828_v14 = vld [vmem:[%s12814_s8 + $0x78] sm:$0xff] }
 0x7b0   :  { %3517 = vmatpush.bf16.msrb.mxu2 %v7340_v58  ;;  %3278 = vmatpush.bf16.msra.mxu3 %v8828_v14  ;;  %v8827_v58 = vld [vmem:[%s12814_s8 + $0x70] sm:$0xff]  ;;  %v8848_v14 = vld [vmem:[%s12816_s10 + $0x94] sm:$0xf0] }
 0x7b3   :  { %3490 = vmatpush.bf16.msrb.mxu0 %v7344_v62  ;;  %v8826_v62 = vld [vmem:[%s12814_s8 + $0x68] sm:$0xff] }
 0x7b4   :  { %3279 = vmatpush.bf16.msra.mxu3 %v8827_v58  ;;  %v7433_v58 = vld [vmem:[%s12816_s10 + $0xd8] sm:$0xf0] }
 0x7b7   :  { %3491 = vmatpush.bf16.msrb.mxu0 %v7336_v6 }
 0x7b8   :  { %3280 = vmatpush.bf16.msra.mxu3 %v8826_v62 }
 0x7f1   :  { %v2880_v63 = vpop.f32.mrf.mxu0 }
 0x7f2   :  { %v2881_v41 = vadd.f32 %v2880_v63, %v9605_v54  ;;  %v7329_v63 = vld [vmem:[%s12816_s10 + $0x8] sm:$0xf0] }
 0x7f3   :  { %v7332_v4 = vor.u32 %v8829_v56, %v7329_v63 }
 0x7f5   :  { %3518 = vmatpush.bf16.msrb.mxu2 %v7332_v4 }
 0x7f7   :  { %v2906_v7 = vpop.f32.mrf.mxu2 }
 0x7f8   :  { %v2907_v40 = vadd.f32 %v2906_v7, %v9593_v47 }
 0x7f9   :  { %v2882_v9 = vpop.f32.mrf.mxu0 }
 0x7fa   :  { %v7327_v9 = vld [vmem:[%s12816_s10] sm:$0xf] }
 0x7fb   :  { %v7328_v17 = vor.u32 %v8830_v12, %v7327_v9 }
 0x7fd   :  { %3492 = vmatpush.bf16.msrb.mxu0 %v7328_v17 }
 0x7ff   :  { %v2908_v25 = vpop.f32.mrf.mxu2 }
 0x807   :  { %v2893_v3 = vpop.f32.mrf.mxu1 }
 0x808   :  { %v2894_v49 = vadd.f32 %v2893_v3, %v2881_v41 }
 0x80a   :  { %v2925_v11 = vmin.f32 %v2894_v49, 20.0  ;;  %vm2923_vm11 = vcmp.gt.f32.partialorder %v2894_v49, 20.0 }
 0x80c   :  { %v2927_v61 = vmul.f32 1.442695, %v2925_v11  ;;  %v8805_v11 = vld [vmem:[%s12812_s6] sm:$0xff] }
 0x80d   :  { %v2919_v26 = vpop.f32.mrf.mxu3 }
 0x80e   :  { %9187 = vpow2.f32 %v2927_v61  ;;  %v2920_v2 = vadd.f32 %v2919_v26, %v2907_v40  ;;  %v8825_v26 = vld [vmem:[%s12814_s8 + $0x60] sm:$0xff] }
 0x80f   :  { %v2895_v5 = vpop.f32.mrf.mxu1  ;;  %3281 = vmatpush.bf16.msra.mxu3 %v8825_v26 }
 0x810   :  { %v2926_v7 = vmin.f32 %v2920_v2, 20.0  ;;  %vm2924_vm13 = vcmp.gt.f32.partialorder %v2920_v2, 20.0 }
 0x812   :  { %v2929_v55 = vmul.f32 1.442695, %v2926_v7 }
 0x814   :  { %v9188_v8 = vpop.eup %9187  ;;  %9189 = vpow2.f32 %v2929_v55 }
 0x815   :  { %v2931_v15 = vadd.f32 1.0, %v9188_v8  ;;  %v2921_v16 = vpop.f32.mrf.mxu3  ;;  %v2934_v18 = vmul.f32 -0.5, %v9188_v8  ;;  %v2937_v22 = vand.u32 2147483647, %v9188_v8 }
 0x817   :  { %9191 = vlog2.f32 %v2931_v15  ;;  %v2935_v20 = vadd.f32 1.0, %v2934_v18  ;;  %vm2938_vm10 = vcmp.lt.f32.partialorder %v2937_v22, 0.0004427343  ;;  %v8858_v22 = vld [vmem:[%s12816_s10 + $0xe4] sm:$0xf0] }
 0x819   :  { %v2936_v29 = vmul.f32 %v9188_v8, %v2935_v20  ;;  %v8824_v20 = vld [vmem:[%s12814_s8 + $0x58] sm:$0xff] }
 0x81a   :  { %v9190_v19 = vpop.eup %9189  ;;  %3282 = vmatpush.bf16.msra.mxu3 %v8824_v20 }
 0x81b   :  { %v2940_v23 = vadd.f32 1.0, %v9190_v19  ;;  %v2943_v25 = vmul.f32 -0.5, %v9190_v19  ;;  %v2946_v36 = vand.u32 2147483647, %v9190_v19 }
 0x81d   :  { %v9192_v27 = vpop.eup %9191  ;;  %9193 = vlog2.f32 %v2940_v23  ;;  %v2944_v32 = vadd.f32 1.0, %v2943_v25  ;;  %vm2947_vm12 = vcmp.lt.f32.partialorder %v2946_v36, 0.0004427343  ;;  %v7440_v23 = vor.u32 %v8858_v22, %v7439_v21  ;;  %v8823_v25 = vld [vmem:[%s12814_s8 + $0x50] sm:$0xff] }
 0x81e   :  { %v2933_v28 = vmul.f32 0.6931472, %v9192_v27  ;;  %v7431_v27 = vld [vmem:[%s12816_s10 + $0xd0] sm:$0xf]  ;;  %3283 = vmatpush.bf16.msra.mxu3 %v8823_v25  ;;  %v8875_v25 = vld [vmem:[%s12808_s2 + $0x74] sm:$0xf] }
 0x81f   :  { %v2945_v39 = vmul.f32 %v9190_v19, %v2944_v32  ;;  %v7423_v32 = vld [vmem:[%s12816_s10 + $0xc0] sm:$0xf]  ;;  %v7511_v22 = vld [vmem:[%s12808_s2 + $0x70] sm:$0xf] }
 0x820   :  { %v2939_v30 = vsel %vm2938_vm10, %v2936_v29, %v2933_v28  ;;  %v8856_v28 = vld [vmem:[%s12816_s10 + $0xd4] sm:$0xf0] }
 0x821   :  { %v2949_v33 = vsel %vm2923_vm11, %v2894_v49, %v2939_v30  ;;  %v8809_v49 = vld [vmem:[%s12812_s6 + $0x20] sm:$0xff]  ;;  %v7432_v29 = vor.u32 %v8856_v28, %v7431_v27  ;;  %v8822_v30 = vld [vmem:[%s12814_s8 + $0x48] sm:$0xff] }
 0x822   :  { %v3135_v37 = vpack.c.bf16 %v2949_v33, %v2949_v33  ;;  %3111 = vmatpush.bf16.msra.mxu1 %v8809_v49  ;;  %v8854_v33 = vld [vmem:[%s12816_s10 + $0xc4] sm:$0xf0]  ;;  %3284 = vmatpush.bf16.msra.mxu3 %v8822_v30  ;;  %v8857_v49 = vld [vmem:[%s12816_s10 + $0xe4] sm:$0xf]  ;;  %v7513_v30 = vld [vmem:[%s12808_s2 + $0x78] sm:$0xf0] }
 0x823   :  { %v9194_v34 = vpop.eup %9193  ;;  %v7424_v36 = vor.u32 %v8854_v33, %v7423_v32  ;;  %v7516_v32 = vor.u32 %v8875_v25, %v7513_v30  ;;  %v7503_v33 = vld [vmem:[%s12808_s2 + $0x60] sm:$0xf]  ;;  %v8890_v30 = vld [vmem:[%s12808_s2 + $0xe4] sm:$0xf0] }
 0x824   :  { %v2942_v38 = vmul.f32 0.6931472, %v9194_v34  ;;  %3273 = vmatmul.bf16.vlgmr.msra.gmra.mxu2 %v3135_v37  ;;  %v7415_v34 = vld [vmem:[%s12816_s10 + $0xb0] sm:$0xf] }
 0x825   :  { %3765 = vmatpush.bf16.msra.mxu2 %v7516_v32  ;;  %v8889_v32 = vld [vmem:[%s12808_s2 + $0xe4] sm:$0xf] }
 0x826   :  { %v2948_v41 = vsel %vm2947_vm12, %v2945_v39, %v2942_v38  ;;  %3112 = vmatpush.bf16.msra.mxu1 %v8808_v50  ;;  %v8852_v38 = vld [vmem:[%s12816_s10 + $0xb4] sm:$0xf0]  ;;  %v7408_v50 = vor.u32 %v8850_v57, %v7407_v43  ;;  %v7497_v43 = vld [vmem:[%s12808_s2 + $0x58] sm:$0xf0] }
 0x827   :  { %v2950_v42 = vsel %vm2924_vm13, %v2920_v2, %v2948_v41  ;;  %v7416_v39 = vor.u32 %v8852_v38, %v7415_v34  ;;  %v8859_v41 = vld [vmem:[%s12816_s10 + $0xf4] sm:$0xf]  ;;  %v7505_v38 = vld [vmem:[%s12808_s2 + $0x68] sm:$0xf0] }
 0x828   :  { %v2951_v3 = vpack.c.bf16 %v2950_v42, %v2950_v42  ;;  %v7449_v42 = vld [vmem:[%s12816_s10 + $0xf8] sm:$0xf0] }
 0x82a   :  { %3024 = vmatmul.bf16.vlgmr.msra.gmra.mxu0 %v2951_v3  ;;  %3113 = vmatpush.bf16.msra.mxu1 %v8807_v51  ;;  %v7452_v3 = vor.u32 %v8859_v41, %v7449_v42  ;;  %v7441_v51 = vld [vmem:[%s12816_s10 + $0xe8] sm:$0xf0]  ;;  %v7495_v41 = vld [vmem:[%s12808_s2 + $0x50] sm:$0xf]  ;;  %v8872_v42 = vld [vmem:[%s12808_s2 + $0x54] sm:$0xf0] }
 0x82e   :  { %3114 = vmatpush.bf16.msra.mxu1 %v8806_v52  ;;  %v7444_v52 = vor.u32 %v8857_v49, %v7441_v51 }
 0x832   :  { %3115 = vmatpush.bf16.msra.mxu1 %v8805_v11  ;;  %v7399_v11 = vld [vmem:[%s12816_s10 + $0x90] sm:$0xf] }
 0x833   :  { %v7400_v53 = vor.u32 %v8848_v14, %v7399_v11  ;;  %v8870_v11 = vld [vmem:[%s12808_s2 + $0x44] sm:$0xf0] }
 0x834   :  { %3519 = vmatmul.bf16.vlgmr.msrb.gmra.mxu2 %v3135_v37 }
 0x836   :  { %3498 = vmatpush.bf16.msrb.mxu1 %v7448_v59  ;;  %v7436_v59 = vor.u32 %v8855_v24, %v7433_v58  ;;  %v8869_v58 = vld [vmem:[%s12808_s2 + $0x44] sm:$0xf] }
 0x83a   :  { %3493 = vmatmul.bf16.vlgmr.msrb.gmra.mxu0 %v3135_v37  ;;  %3499 = vmatpush.bf16.msrb.mxu1 %v7440_v23  ;;  %v8821_v37 = vld [vmem:[%s12814_s8 + $0x40] sm:$0xff]  ;;  %v8876_v23 = vld [vmem:[%s12808_s2 + $0x74] sm:$0xf0] }
 0x83b   :  { %3285 = vmatpush.bf16.msra.mxu3 %v8821_v37  ;;  %v8873_v37 = vld [vmem:[%s12808_s2 + $0x64] sm:$0xf] }
 0x83e   :  { %3500 = vmatpush.bf16.msrb.mxu1 %v7432_v29  ;;  %v7512_v29 = vor.u32 %v8876_v23, %v7511_v22  ;;  %v8864_v22 = vld [vmem:[%s12808_s2 + $0x14] sm:$0xf0]  ;;  %v8863_v23 = vld [vmem:[%s12808_s2 + $0x14] sm:$0xf] }
 0x83f   :  { %3524 = vmatpush.bf16.msrb.mxu3 %v7452_v3  ;;  %v8871_v3 = vld [vmem:[%s12808_s2 + $0x54] sm:$0xf] }
 0x840   :  { %3739 = vmatpush.bf16.msra.mxu0 %v7512_v29  ;;  %v7500_v51 = vor.u32 %v8871_v3, %v7497_v43  ;;  %v7567_v29 = vld [vmem:[%s12808_s2 + $0xe0] sm:$0xf]  ;;  %v7559_v43 = vld [vmem:[%s12808_s2 + $0xd0] sm:$0xf] }
 0x842   :  { %3501 = vmatpush.bf16.msrb.mxu1 %v7424_v36  ;;  %v8874_v36 = vld [vmem:[%s12808_s2 + $0x64] sm:$0xf0] }
 0x843   :  { %3525 = vmatpush.bf16.msrb.mxu3 %v7444_v52  ;;  %v7504_v34 = vor.u32 %v8874_v36, %v7503_v33  ;;  %v7487_v52 = vld [vmem:[%s12808_s2 + $0x40] sm:$0xf]  ;;  %v7568_v33 = vor.u32 %v8890_v30, %v7567_v29  ;;  %v7569_v36 = vld [vmem:[%s12808_s2 + $0xe8] sm:$0xf0] }
 0x845   :  { %3740 = vmatpush.bf16.msra.mxu0 %v7504_v34  ;;  %v7455_v34 = vld [vmem:[%s12808_s2] sm:$0xf] }
 0x846   :  { %3502 = vmatpush.bf16.msrb.mxu1 %v7416_v39  ;;  %v7508_v39 = vor.u32 %v8873_v37, %v7505_v38  ;;  %v7572_v37 = vor.u32 %v8889_v32, %v7569_v36  ;;  %v8862_v38 = vld [vmem:[%s12808_s2 + $0x4] sm:$0xf0] }
 0x847   :  { %3526 = vmatpush.bf16.msrb.mxu3 %v7436_v59  ;;  %v7489_v59 = vld [vmem:[%s12808_s2 + $0x48] sm:$0xf0] }
 0x848   :  { %3766 = vmatpush.bf16.msra.mxu2 %v7508_v39  ;;  %v8861_v39 = vld [vmem:[%s12808_s2 + $0x4] sm:$0xf] }
 0x84a   :  { %3503 = vmatpush.bf16.msrb.mxu1 %v7408_v50  ;;  %v7496_v50 = vor.u32 %v8872_v42, %v7495_v41  ;;  %v7456_v41 = vor.u32 %v8862_v38, %v7455_v34  ;;  %v7457_v42 = vld [vmem:[%s12808_s2 + $0x8] sm:$0xf0] }
 0x84b   :  { %v7460_v3 = vor.u32 %v8861_v39, %v7457_v42  ;;  %v8914_v42 = vld [vmem:[%s12814_s8 + $0x28] sm:$0xff] }
 0x84c   :  { %3741 = vmatpush.bf16.msra.mxu0 %v7496_v50  ;;  %3767 = vmatpush.bf16.msra.mxu2 %v7500_v51  ;;  %v7561_v51 = vld [vmem:[%s12808_s2 + $0xd8] sm:$0xf0] }
 0x84e   :  { %3504 = vmatpush.bf16.msrb.mxu1 %v7400_v53 }
 0x8a7   :  { %v3025_v60 = vpop.f32.mrf.mxu0  ;;  %v11340_v56 = vpop.f32.mrf.mxu2 }
 0x8a8   :  { %v3026_v40 = vadd.f32 %v10821_v31, %v3025_v60  ;;  %v7391_v60 = vld [vmem:[%s12816_s10 + $0x80] sm:$0xf] }
 0x8aa   :  { %v3030_v61 = vmin.f32 %v3026_v40, 20.0  ;;  %vm3029_vm15 = vcmp.gt.f32.partialorder %v3026_v40, 20.0 }
 0x8ac   :  { %v3031_v63 = vmul.f32 1.442695, %v3030_v61  ;;  %v8853_v61 = vld [vmem:[%s12816_s10 + $0xc4] sm:$0xf] }
 0x8ae   :  { %9195 = vpow2.f32 %v3031_v63  ;;  %v7425_v63 = vld [vmem:[%s12816_s10 + $0xc8] sm:$0xf0] }
 0x8af   :  { %v3027_v1 = vpop.f32.mrf.mxu0  ;;  %v3276_v46 = vpop.f32.mrf.mxu2  ;;  %v7428_v26 = vor.u32 %v8853_v61, %v7425_v63 }
 0x8b0   :  { %v8851_v1 = vld [vmem:[%s12816_s10 + $0xb4] sm:$0xf]  ;;  %v7417_v46 = vld [vmem:[%s12816_s10 + $0xb8] sm:$0xf0] }
 0x8b1   :  { %3527 = vmatpush.bf16.msrb.mxu3 %v7428_v26  ;;  %v7479_v26 = vld [vmem:[%s12808_s2 + $0x30] sm:$0xf] }
 0x8b4   :  { %v9196_v2 = vpop.eup %9195 }
 0x8b5   :  { %v3033_v4 = vadd.f32 1.0, %v9196_v2  ;;  %v3036_v31 = vmul.f32 -0.5, %v9196_v2  ;;  %v3039_v55 = vand.u32 2147483647, %v9196_v2 }
 0x8b7   :  { %9197 = vlog2.f32 %v3033_v4  ;;  %v11349_v5 = vpop.f32.mrf.mxu0  ;;  %v11351_v7 = vpop.f32.mrf.mxu2  ;;  %v3037_v6 = vadd.f32 1.0, %v3036_v31  ;;  %vm3040_vm14 = vcmp.lt.f32.partialorder %v3039_v55, 0.0004427343  ;;  %v8849_v4 = vld [vmem:[%s12816_s10 + $0xa4] sm:$0xf] }
 0x8b8   :  { %v7409_v31 = vld [vmem:[%s12816_s10 + $0xa8] sm:$0xf0] }
 0x8b9   :  { %v3038_v12 = vmul.f32 %v9196_v2, %v3037_v6  ;;  %v7420_v2 = vor.u32 %v8851_v1, %v7417_v46  ;;  %v7412_v55 = vor.u32 %v8849_v4, %v7409_v31  ;;  %v8868_v1 = vld [vmem:[%s12808_s2 + $0x34] sm:$0xf0]  ;;  %v8867_v46 = vld [vmem:[%s12808_s2 + $0x34] sm:$0xf]  ;;  %v7481_v4 = vld [vmem:[%s12808_s2 + $0x38] sm:$0xf0] }
 0x8ba   :  { %v7484_v31 = vor.u32 %v8867_v46, %v7481_v4  ;;  %v8882_v46 = vld [vmem:[%s12808_s2 + $0xa4] sm:$0xf0] }
 0x8bb   :  { %3528 = vmatpush.bf16.msrb.mxu3 %v7420_v2  ;;  %v7480_v2 = vor.u32 %v8868_v1, %v7479_v26  ;;  %v7535_v1 = vld [vmem:[%s12808_s2 + $0xa0] sm:$0xf] }
 0x8bc   :  { %v7536_v4 = vor.u32 %v8882_v46, %v7535_v1  ;;  %v8893_v46 = vld [vmem:[%s12810_s4] sm:$0xff] }
 0x8bd   :  { %v9198_v8 = vpop.eup %9197 }
 0x8be   :  { %v3035_v9 = vmul.f32 0.6931472, %v9198_v8 }
 0x8bf   :  { %v3496_v15 = vpop.f32.mrf.mxu0  ;;  %v3522_v16 = vpop.f32.mrf.mxu2  ;;  %3529 = vmatpush.bf16.msrb.mxu3 %v7412_v55  ;;  %v8866_v55 = vld [vmem:[%s12808_s2 + $0x24] sm:$0xf0] }
 0x8c0   :  { %v3041_v17 = vsel %vm3040_vm14, %v3038_v12, %v3035_v9  ;;  %v8847_v9 = vld [vmem:[%s12816_s10 + $0x94] sm:$0xf]  ;;  %v7401_v12 = vld [vmem:[%s12816_s10 + $0x98] sm:$0xf0] }
 0x8c1   :  { %v3042_v18 = vsel %vm3029_vm15, %v3026_v40, %v3041_v17  ;;  %v8846_v40 = vld [vmem:[%s12816_s10 + $0x84] sm:$0xf0]  ;;  %v7404_v16 = vor.u32 %v8847_v9, %v7401_v12  ;;  %v7473_v12 = vld [vmem:[%s12808_s2 + $0x28] sm:$0xf0] }
 0x8c2   :  { %v3043_v19 = vpack.c.bf16 %v3042_v18, %v3042_v18  ;;  %v7392_v62 = vor.u32 %v8846_v40, %v7391_v60  ;;  %v8845_v18 = vld [vmem:[%s12816_s10 + $0x84] sm:$0xf]  ;;  %v7488_v60 = vor.u32 %v8870_v11, %v7487_v52  ;;  %v7551_v11 = vld [vmem:[%s12808_s2 + $0xc0] sm:$0xf] }
 0x8c3   :  { %3530 = vmatpush.bf16.msrb.mxu3 %v7404_v16  ;;  %v7575_v16 = vld [vmem:[%s12808_s2 + $0xf0] sm:$0xf] }
 0x8c4   :  { %3116 = vmatmul.bf16.vlgmr.msra.gmra.mxu1 %v3043_v19  ;;  %3742 = vmatpush.bf16.msra.mxu0 %v7488_v60  ;;  %v7543_v60 = vld [vmem:[%s12808_s2 + $0xb0] sm:$0xf] }
 0x8c5   :  { %3505 = vmatpush.bf16.msrb.mxu1 %v7392_v62  ;;  %v7492_v62 = vor.u32 %v8869_v58, %v7489_v59  ;;  %v7553_v58 = vld [vmem:[%s12808_s2 + $0xc8] sm:$0xf0] }
 0x8c7   :  { %3768 = vmatpush.bf16.msra.mxu2 %v7492_v62 }
 0x8c8   :  { %3743 = vmatpush.bf16.msra.mxu0 %v7480_v2  ;;  %v8881_v2 = vld [vmem:[%s12808_s2 + $0xa4] sm:$0xf] }
 0x8cb   :  { %3769 = vmatpush.bf16.msra.mxu2 %v7484_v31  ;;  %v7537_v31 = vld [vmem:[%s12808_s2 + $0xa8] sm:$0xf0] }
 0x941   :  { %v3117_v6 = vpop.f32.mrf.mxu1 }
 0x942   :  { %v3118_v8 = vadd.f32 %v10927_v13, %v3117_v6  ;;  %v7393_v13 = vld [vmem:[%s12816_s10 + $0x88] sm:$0xf0]  ;;  %v7471_v6 = vld [vmem:[%s12808_s2 + $0x20] sm:$0xf] }
 0x943   :  { %v7396_v20 = vor.u32 %v8845_v18, %v7393_v13  ;;  %v7472_v9 = vor.u32 %v8866_v55, %v7471_v6  ;;  %v8891_v18 = vld [vmem:[%s12808_s2 + $0xf4] sm:$0xf]  ;;  %v7540_v6 = vor.u32 %v8881_v2, %v7537_v31  ;;  %v7527_v55 = vld [vmem:[%s12808_s2 + $0x90] sm:$0xf] }
 0x944   :  { %v3122_v15 = vmin.f32 %v3118_v8, 20.0  ;;  %vm3121_vm1 = vcmp.gt.f32.partialorder %v3118_v8, 20.0  ;;  %v7767_v2 = vld [vmem:[%s12816_s10 + $0x70] sm:$0xf] }
 0x945   :  { %3531 = vmatpush.bf16.msrb.mxu3 %v7396_v20  ;;  %3744 = vmatpush.bf16.msra.mxu0 %v7472_v9  ;;  %v8879_v9 = vld [vmem:[%s12808_s2 + $0x94] sm:$0xf] }
 0x946   :  { %v3123_v17 = vmul.f32 1.442695, %v3122_v15 }
 0x948   :  { %9199 = vpow2.f32 %v3123_v17  ;;  %v8892_v17 = vld [vmem:[%s12808_s2 + $0xf4] sm:$0xf0] }
 0x949   :  { %v3119_v19 = vpop.f32.mrf.mxu1  ;;  %v7576_v13 = vor.u32 %v8892_v17, %v7575_v16 }
 0x94a   :  { %v7577_v19 = vld [vmem:[%s12808_s2 + $0xf8] sm:$0xf0] }
 0x94b   :  { %v7580_v20 = vor.u32 %v8891_v18, %v7577_v19  ;;  %3752 = vmatpush.bf16.msra.mxu1 %v7576_v13  ;;  %v7519_v13 = vld [vmem:[%s12808_s2 + $0x80] sm:$0xf]  ;;  %v8878_v19 = vld [vmem:[%s12808_s2 + $0x84] sm:$0xf0] }
 0x94e   :  { %v9200_v21 = vpop.eup %9199 }
 0x94f   :  { %v3125_v27 = vadd.f32 1.0, %v9200_v21  ;;  %v3128_v28 = vmul.f32 -0.5, %v9200_v21  ;;  %v3131_v49 = vand.u32 2147483647, %v9200_v21  ;;  %3753 = vmatpush.bf16.msra.mxu1 %v7568_v33 }
 0x951   :  { %9201 = vlog2.f32 %v3125_v27  ;;  %v3129_v57 = vadd.f32 1.0, %v3128_v28  ;;  %vm3132_vm0 = vcmp.lt.f32.partialorder %v3131_v49, 0.0004427343  ;;  %v7465_v27 = vld [vmem:[%s12808_s2 + $0x18] sm:$0xf0] }
 0x952   :  { %v7468_v28 = vor.u32 %v8863_v23, %v7465_v27  ;;  %v8887_v49 = vld [vmem:[%s12808_s2 + $0xd4] sm:$0xf] }
 0x953   :  { %v3130_v53 = vmul.f32 %v9200_v21, %v3129_v57  ;;  %v7463_v21 = vld [vmem:[%s12808_s2 + $0x10] sm:$0xf]  ;;  %v8888_v57 = vld [vmem:[%s12808_s2 + $0xd4] sm:$0xf0]  ;;  %v7564_v52 = vor.u32 %v8887_v49, %v7561_v51 }
 0x954   :  { %v7464_v25 = vor.u32 %v8864_v22, %v7463_v21  ;;  %v7560_v50 = vor.u32 %v8888_v57, %v7559_v43  ;;  %v7520_v21 = vor.u32 %v8878_v19, %v7519_v13  ;;  %v7521_v22 = vld [vmem:[%s12808_s2 + $0x88] sm:$0xf0]  ;;  %v8913_v43 = vld [vmem:[%s12814_s8 + $0x20] sm:$0xff]  ;;  %v8912_v49 = vld [vmem:[%s12814_s8 + $0x18] sm:$0xff] }
 0x955   :  { %v8898_v57 = vld [vmem:[%s12810_s4 + $0x28] sm:$0xff]  ;;  %v8911_v51 = vld [vmem:[%s12814_s8 + $0x10] sm:$0xff] }
 0x956   :  { %3745 = vmatpush.bf16.msra.mxu0 %v7464_v25  ;;  %3754 = vmatpush.bf16.msra.mxu1 %v7560_v50  ;;  %v8897_v50 = vld [vmem:[%s12810_s4 + $0x20] sm:$0xff]  ;;  %v7751_v19 = vld [vmem:[%s12816_s10 + $0x50] sm:$0xf] }
 0x957   :  { %v9202_v14 = vpop.eup %9201 }
 0x958   :  { %v3127_v24 = vmul.f32 0.6931472, %v9202_v14  ;;  %v8886_v14 = vld [vmem:[%s12808_s2 + $0xc4] sm:$0xf0] }
 0x95a   :  { %v3133_v40 = vsel %vm3132_vm0, %v3130_v53, %v3127_v24  ;;  %3746 = vmatpush.bf16.msra.mxu0 %v7456_v41  ;;  %v8885_v24 = vld [vmem:[%s12808_s2 + $0xc4] sm:$0xf]  ;;  %v7552_v53 = vor.u32 %v8886_v14, %v7551_v11  ;;  %v8916_v41 = vld [vmem:[%s12814_s8 + $0x38] sm:$0xff]  ;;  %v8910_v11 = vld [vmem:[%s12814_s8 + $0x8] sm:$0xff] }
 0x95b   :  { %v3134_v61 = vsel %vm3121_vm1, %v3118_v8, %v3133_v40  ;;  %v8865_v8 = vld [vmem:[%s12808_s2 + $0x24] sm:$0xf]  ;;  %v7556_v59 = vor.u32 %v8885_v24, %v7553_v58  ;;  %v8884_v40 = vld [vmem:[%s12808_s2 + $0xb4] sm:$0xf0]  ;;  %v8895_v24 = vld [vmem:[%s12810_s4 + $0x10] sm:$0xff] }
 0x95c   :  { %v3136_v63 = vpack.c.bf16 %v3134_v61, %v3134_v61  ;;  %v7476_v15 = vor.u32 %v8865_v8, %v7473_v12  ;;  %3755 = vmatpush.bf16.msra.mxu1 %v7552_v53  ;;  %v8883_v61 = vld [vmem:[%s12808_s2 + $0xb4] sm:$0xf]  ;;  %v7544_v62 = vor.u32 %v8884_v40, %v7543_v60  ;;  %v8880_v8 = vld [vmem:[%s12808_s2 + $0x94] sm:$0xf0]  ;;  %v8909_v53 = vld [vmem:[%s12814_s8] sm:$0xff] }
 0x95d   :  { %v7528_v12 = vor.u32 %v8880_v8, %v7527_v55  ;;  %v8939_v58 = vld [vmem:[%s12816_s10 + $0x74] sm:$0xf]  ;;  %v8894_v40 = vld [vmem:[%s12810_s4 + $0x8] sm:$0xff]  ;;  %v7753_v55 = vld [vmem:[%s12816_s10 + $0x58] sm:$0xf0] }
 0x95e   :  { %3286 = vmatmul.bf16.vlgmr.msra.gmra.mxu3 %v3136_v63  ;;  %3506 = vmatmul.bf16.vlgmr.msrb.gmra.mxu1 %v3136_v63 }
 0x95f   :  { %3770 = vmatpush.bf16.msra.mxu2 %v7476_v15  ;;  %3778 = vmatpush.bf16.msra.mxu3 %v7580_v20  ;;  %v7529_v15 = vld [vmem:[%s12808_s2 + $0x98] sm:$0xf0]  ;;  %v8877_v20 = vld [vmem:[%s12808_s2 + $0x84] sm:$0xf] }
 0x960   :  { %3756 = vmatpush.bf16.msra.mxu1 %v7544_v62  ;;  %v7532_v16 = vor.u32 %v8879_v9, %v7529_v15  ;;  %v7524_v23 = vor.u32 %v8877_v20, %v7521_v22  ;;  %v8937_v62 = vld [vmem:[%s12816_s10 + $0x64] sm:$0xf]  ;;  %v7759_v9 = vld [vmem:[%s12816_s10 + $0x60] sm:$0xf]  ;;  %v8936_v20 = vld [vmem:[%s12816_s10 + $0x54] sm:$0xf0] }
 0x961   :  { %v8931_v22 = vld [vmem:[%s12816_s10 + $0x34] sm:$0xf] }
 0x963   :  { %3771 = vmatpush.bf16.msra.mxu2 %v7468_v28  ;;  %3779 = vmatpush.bf16.msra.mxu3 %v7572_v37 }
 0x964   :  { %3757 = vmatpush.bf16.msra.mxu1 %v7536_v4  ;;  %v8940_v4 = vld [vmem:[%s12816_s10 + $0x74] sm:$0xf0] }
 0x965   :  { %v7768_v31 = vor.u32 %v8940_v4, %v7767_v2 }
 0x967   :  { %3772 = vmatpush.bf16.msra.mxu2 %v7460_v3  ;;  %3780 = vmatpush.bf16.msra.mxu3 %v7564_v52  ;;  %v8899_v3 = vld [vmem:[%s12810_s4 + $0x30] sm:$0xff]  ;;  %v8896_v52 = vld [vmem:[%s12810_s4 + $0x18] sm:$0xff] }
 0x968   :  { %3758 = vmatpush.bf16.msra.mxu1 %v7528_v12  ;;  %v8938_v12 = vld [vmem:[%s12816_s10 + $0x64] sm:$0xf0] }
 0x969   :  { %v7760_v15 = vor.u32 %v8938_v12, %v7759_v9 }
 0x96b   :  { %3781 = vmatpush.bf16.msra.mxu3 %v7556_v59  ;;  %4133 = vmatpush.bf16.msrb.mxu2 %v8916_v41  ;;  %v7769_v59 = vld [vmem:[%s12816_s10 + $0x78] sm:$0xf0]  ;;  %v8927_v41 = vld [vmem:[%s12816_s10 + $0x14] sm:$0xf] }
 0x96c   :  { %3759 = vmatpush.bf16.msra.mxu1 %v7520_v21  ;;  %v7772_v60 = vor.u32 %v8939_v58, %v7769_v59  ;;  %v7752_v21 = vor.u32 %v8936_v20, %v7751_v19 }
 0x96e   :  { %3532 = vmatmul.bf16.vlgmr.msrb.gmra.mxu3 %v3136_v63  ;;  %v7545_v63 = vld [vmem:[%s12808_s2 + $0xb8] sm:$0xf0] }
 0x96f   :  { %v7548_v26 = vor.u32 %v8883_v61, %v7545_v63  ;;  %v7761_v63 = vld [vmem:[%s12816_s10 + $0x68] sm:$0xf0] }
 0x971   :  { %3782 = vmatpush.bf16.msra.mxu3 %v7548_v26  ;;  %v7764_v26 = vor.u32 %v8937_v62, %v7761_v63  ;;  %v7711_v62 = vld [vmem:[%s12816_s10] sm:$0xf]  ;;  %v8926_v63 = vld [vmem:[%s12816_s10 + $0x4] sm:$0xf0] }
 0x975   :  { %3783 = vmatpush.bf16.msra.mxu3 %v7540_v6  ;;  %v8935_v6 = vld [vmem:[%s12816_s10 + $0x54] sm:$0xf] }
 0x976   :  { %v7756_v8 = vor.u32 %v8935_v6, %v7753_v55  ;;  %v8908_v6 = vld [vmem:[%s12812_s6 + $0x38] sm:$0xff] }
 0x977   :  { %3976 = vmatpush.bf16.msrb.mxu1 %v8908_v6  ;;  %v8954_v6 = vld [vmem:[%s12816_s10 + $0xe4] sm:$0xf0] }
 0x979   :  { %3784 = vmatpush.bf16.msra.mxu3 %v7532_v16 }
 0x97d   :  { %3785 = vmatpush.bf16.msra.mxu3 %v7524_v23 }
 0x9db   :  { %v3507_v17 = vpop.f32.mrf.mxu1 }
 0x9dc   :  { %v3508_v18 = vadd.f32 %v3507_v17, %v11349_v5  ;;  %v8933_v17 = vld [vmem:[%s12816_s10 + $0x44] sm:$0xf] }
 0x9de   :  { %v3537_v5 = vadd.f32 %v3508_v18, %v11137_v35  ;;  %v7745_v18 = vld [vmem:[%s12816_s10 + $0x48] sm:$0xf0] }
 0x9df   :  { %v7748_v13 = vor.u32 %v8933_v17, %v7745_v18 }
 0x9e0   :  { %v11651_v25 = vadd.f32 %v3537_v5, %v10093_v48  ;;  %v7737_v5 = vld [vmem:[%s12816_s10 + $0x38] sm:$0xf0] }
 0x9e1   :  { %v3287_v27 = vpop.f32.mrf.mxu3  ;;  %v7740_v23 = vor.u32 %v8931_v22, %v7737_v5 }
 0x9e2   :  { %9203 = vtanh.f32 %v11651_v25  ;;  %v3288_v28 = vadd.f32 %v3287_v27, %v11340_v56  ;;  %v7743_v27 = vld [vmem:[%s12816_s10 + $0x40] sm:$0xf] }
 0x9e3   :  { %v3509_v29 = vpop.f32.mrf.mxu1 }
 0x9e4   :  { %v3291_v30 = vadd.f32 %v3288_v28, %v11148_v45  ;;  %v8934_v28 = vld [vmem:[%s12816_s10 + $0x44] sm:$0xf0] }
 0x9e6   :  { %v11657_v32 = vadd.f32 %v11145_v10, %v3291_v30  ;;  %v7744_v30 = vor.u32 %v8934_v28, %v7743_v27 }
 0x9e8   :  { %v9204_v33 = vpop.eup %9203  ;;  %3542 = vst.msk [vmem:[#allocation2 + $0x20] sm:$0xff] %vm69_vm8, %v11657_v32 }
 0x9e9   :  { %v3545_v35 = vpack.c.bf16 %v9204_v33, %v9204_v33  ;;  %v3289_v36 = vpop.f32.mrf.mxu3 }
 0x9ea   :  { %v7729_v36 = vld [vmem:[%s12816_s10 + $0x28] sm:$0xf0] }
 0x9eb   :  { %3747 = vmatmul.bf16.vlgmr.msra.gmra.mxu0 %v3545_v35  ;;  %3773 = vmatmul.bf16.vlgmr.msra.gmra.mxu2 %v3545_v35  ;;  %v8929_v35 = vld [vmem:[%s12816_s10 + $0x24] sm:$0xf] }
 0x9f1   :  { %v3533_v37 = vpop.f32.mrf.mxu3 }
 0x9f2   :  { %v3534_v34 = vadd.f32 %v3533_v37, %v11351_v7  ;;  %v8915_v7 = vld [vmem:[%s12814_s8 + $0x30] sm:$0xff] }
 0x9f3   :  { %4134 = vmatpush.bf16.msrb.mxu2 %v8915_v7  ;;  %v7721_v7 = vld [vmem:[%s12816_s10 + $0x18] sm:$0xf0] }
 0x9f4   :  { %v3538_v38 = vadd.f32 %v3534_v34, %v11155_v44  ;;  %v8900_v44 = vld [vmem:[%s12810_s4 + $0x38] sm:$0xff]  ;;  %v7732_v34 = vor.u32 %v8929_v35, %v7729_v36  ;;  %v8903_v36 = vld [vmem:[%s12812_s6 + $0x10] sm:$0xff] }
 0x9f5   :  { %3884 = vmatpush.bf16.msrb.mxu0 %v8900_v44  ;;  %v7724_v44 = vor.u32 %v8927_v41, %v7721_v7  ;;  %v8904_v35 = vld [vmem:[%s12812_s6 + $0x18] sm:$0xff] }
 0x9f6   :  { %v11664_v56 = vadd.f32 %v3538_v38, %v10115_v0  ;;  %v7735_v38 = vld [vmem:[%s12816_s10 + $0x30] sm:$0xf] }
 0x9f7   :  { %4135 = vmatpush.bf16.msrb.mxu2 %v8914_v42  ;;  %v7727_v42 = vld [vmem:[%s12816_s10 + $0x20] sm:$0xf] }
 0x9f8   :  { %9205 = vtanh.f32 %v11664_v56 }
 0x9f9   :  { %v3535_v10 = vpop.f32.mrf.mxu3  ;;  %3885 = vmatpush.bf16.msrb.mxu0 %v8899_v3  ;;  %v8930_v3 = vld [vmem:[%s12816_s10 + $0x24] sm:$0xf0] }
 0x9fa   :  { %v8932_v10 = vld [vmem:[%s12816_s10 + $0x34] sm:$0xf0] }
 0x9fb   :  { %4136 = vmatpush.bf16.msrb.mxu2 %v8913_v43  ;;  %v8925_v43 = vld [vmem:[%s12816_s10 + $0x4] sm:$0xf] }
 0x9fd   :  { %3886 = vmatpush.bf16.msrb.mxu0 %v8898_v57 }
 0x9fe   :  { %v9206_v45 = vpop.eup %9205 }
 0x9ff   :  { %v3546_v39 = vpack.c.bf16 %v9206_v45, %v9206_v45  ;;  %4137 = vmatpush.bf16.msrb.mxu2 %v8912_v49 }
 0xa01   :  { %3760 = vmatmul.bf16.vlgmr.msra.gmra.mxu1 %v3546_v39  ;;  %3786 = vmatmul.bf16.vlgmr.msra.gmra.mxu3 %v3546_v39  ;;  %v7736_v39 = vor.u32 %v8932_v10, %v7735_v38  ;;  %v8924_v38 = vld [vmem:[%s12814_s8 + $0x78] sm:$0xff]  ;;  %v7831_v10 = vld [vmem:[%s12816_s10 + $0xf0] sm:$0xf] }
 0xa02   :  { %3887 = vmatpush.bf16.msrb.mxu0 %v8897_v50  ;;  %v7728_v50 = vor.u32 %v8930_v3, %v7727_v42  ;;  %4146 = vmatpush.bf16.msrb.mxu3 %v8924_v38  ;;  %v11854_v42 = vld [vmem:[%s12811_s5] ss:$0 sm:$0xff]  ;;  %v8951_v38 = vld [vmem:[%s12816_s10 + $0xd4] sm:$0xf] }
 0xa03   :  { %4138 = vmatpush.bf16.msrb.mxu2 %v8911_v51  ;;  %v7713_v51 = vld [vmem:[%s12816_s10 + $0x8] sm:$0xf0] }
 0xa06   :  { %3888 = vmatpush.bf16.msrb.mxu0 %v8896_v52 }
 0xa07   :  { %4139 = vmatpush.bf16.msrb.mxu2 %v8910_v11  ;;  %v7719_v11 = vld [vmem:[%s12816_s10 + $0x10] sm:$0xf] }
 0xa0a   :  { %3889 = vmatpush.bf16.msrb.mxu0 %v8895_v24 }
 0xa0b   :  { %4140 = vmatpush.bf16.msrb.mxu2 %v8909_v53  ;;  %v7716_v53 = vor.u32 %v8925_v43, %v7713_v51 }
 0xa0e   :  { %3890 = vmatpush.bf16.msrb.mxu0 %v8894_v40 }
 0xa0f   :  { %4379 = vmatpush.bf16.msra.mxu2 %v7772_v60 }
 0xa12   :  { %3891 = vmatpush.bf16.msrb.mxu0 %v8893_v46  ;;  %v7712_v46 = vor.u32 %v8926_v63, %v7711_v62 }
 0xa13   :  { %4380 = vmatpush.bf16.msra.mxu2 %v7764_v26 }
 0xa16   :  { %4353 = vmatpush.bf16.msra.mxu0 %v7768_v31 }
 0xa17   :  { %4381 = vmatpush.bf16.msra.mxu2 %v7756_v8 }
 0xa1a   :  { %4354 = vmatpush.bf16.msra.mxu0 %v7760_v15 }
 0xa1b   :  { %4382 = vmatpush.bf16.msra.mxu2 %v7748_v13 }
 0xa1e   :  { %4355 = vmatpush.bf16.msra.mxu0 %v7752_v21 }
 0xa1f   :  { %4383 = vmatpush.bf16.msra.mxu2 %v7740_v23 }
 0xa22   :  { %4356 = vmatpush.bf16.msra.mxu0 %v7744_v30  ;;  %v8906_v30 = vld [vmem:[%s12812_s6 + $0x28] sm:$0xff] }
 0xa23   :  { %4384 = vmatpush.bf16.msra.mxu2 %v7732_v34  ;;  %v8901_v34 = vld [vmem:[%s12812_s6] sm:$0xff] }
 0xa26   :  { %4357 = vmatpush.bf16.msra.mxu0 %v7736_v39  ;;  %v8923_v39 = vld [vmem:[%s12814_s8 + $0x70] sm:$0xff] }
 0xa27   :  { %4385 = vmatpush.bf16.msra.mxu2 %v7724_v44  ;;  %4147 = vmatpush.bf16.msrb.mxu3 %v8923_v39 }
 0xa2a   :  { %4358 = vmatpush.bf16.msra.mxu0 %v7728_v50  ;;  %v8921_v50 = vld [vmem:[%s12814_s8 + $0x60] sm:$0xff] }
 0xa2b   :  { %4386 = vmatpush.bf16.msra.mxu2 %v7716_v53 }
 0xa68   :  { %v3748_v14 = vpop.f32.mrf.mxu0 }
 0xa69   :  { %v3749_v29 = vadd.f32 %v3748_v14, %v9605_v54  ;;  %v8928_v14 = vld [vmem:[%s12816_s10 + $0x14] sm:$0xf0] }
 0xa6a   :  { %v7720_v60 = vor.u32 %v8928_v14, %v7719_v11 }
 0xa6c   :  { %4359 = vmatpush.bf16.msra.mxu0 %v7720_v60 }
 0xa6e   :  { %v3774_v61 = vpop.f32.mrf.mxu2 }
 0xa6f   :  { %v3775_v57 = vadd.f32 %v3774_v61, %v9593_v47 }
 0xa70   :  { %v3750_v1 = vpop.f32.mrf.mxu0  ;;  %4360 = vmatpush.bf16.msra.mxu0 %v7712_v46 }
 0xa76   :  { %v3776_v16 = vpop.f32.mrf.mxu2 }
 0xa7e   :  { %v3761_v33 = vpop.f32.mrf.mxu1 }
 0xa7f   :  { %v3762_v37 = vadd.f32 %v3761_v33, %v3749_v29  ;;  %v8907_v29 = vld [vmem:[%s12812_s6 + $0x30] sm:$0xff]  ;;  %v8905_v33 = vld [vmem:[%s12812_s6 + $0x20] sm:$0xff] }
 0xa80   :  { %3977 = vmatpush.bf16.msrb.mxu1 %v8907_v29  ;;  %v8946_v29 = vld [vmem:[%s12816_s10 + $0xa4] sm:$0xf0] }
 0xa81   :  { %v3793_v45 = vmin.f32 %v3762_v37, 20.0  ;;  %vm3791_vm3 = vcmp.gt.f32.partialorder %v3762_v37, 20.0 }
 0xa83   :  { %v3795_v49 = vmul.f32 1.442695, %v3793_v45  ;;  %v8956_v45 = vld [vmem:[%s12816_s10 + $0xf4] sm:$0xf0] }
 0xa84   :  { %v3787_v52 = vpop.f32.mrf.mxu3  ;;  %3978 = vmatpush.bf16.msrb.mxu1 %v8906_v30  ;;  %v7832_v41 = vor.u32 %v8956_v45, %v7831_v10  ;;  %v8953_v30 = vld [vmem:[%s12816_s10 + $0xe4] sm:$0xf]  ;;  %v7817_v45 = vld [vmem:[%s12816_s10 + $0xd8] sm:$0xf0] }
 0xa85   :  { %9207 = vpow2.f32 %v3795_v49  ;;  %v3788_v24 = vadd.f32 %v3787_v52, %v3775_v57  ;;  %v8922_v57 = vld [vmem:[%s12814_s8 + $0x68] sm:$0xff]  ;;  %v7820_v39 = vor.u32 %v8951_v38, %v7817_v45 }
 0xa86   :  { %v3763_v58 = vpop.f32.mrf.mxu1  ;;  %4148 = vmatpush.bf16.msrb.mxu3 %v8922_v57  ;;  %v7809_v57 = vld [vmem:[%s12816_s10 + $0xc8] sm:$0xf0] }
 0xa87   :  { %v3794_v59 = vmin.f32 %v3788_v24, 20.0  ;;  %vm3792_vm5 = vcmp.gt.f32.partialorder %v3788_v24, 20.0 }
 0xa88   :  { %3979 = vmatpush.bf16.msrb.mxu1 %v8905_v33 }
 0xa89   :  { %v3797_v40 = vmul.f32 1.442695, %v3794_v59 }
 0xa8a   :  { %4149 = vmatpush.bf16.msrb.mxu3 %v8921_v50  ;;  %v8947_v50 = vld [vmem:[%s12816_s10 + $0xb4] sm:$0xf] }
 0xa8b   :  { %v9208_v61 = vpop.eup %9207  ;;  %9209 = vpow2.f32 %v3797_v40 }
 0xa8c   :  { %v3799_v26 = vadd.f32 1.0, %v9208_v61  ;;  %v3789_v1 = vpop.f32.mrf.mxu3  ;;  %v3802_v2 = vmul.f32 -0.5, %v9208_v61  ;;  %v3805_v55 = vand.u32 2147483647, %v9208_v61  ;;  %3980 = vmatpush.bf16.msrb.mxu1 %v8904_v35  ;;  %v7825_v35 = vld [vmem:[%s12816_s10 + $0xe8] sm:$0xf0] }
 0xa8e   :  { %9211 = vlog2.f32 %v3799_v26  ;;  %v3803_v31 = vadd.f32 1.0, %v3802_v2  ;;  %vm3806_vm2 = vcmp.lt.f32.partialorder %v3805_v55, 0.0004427343 }
 0xa90   :  { %v3804_v16 = vmul.f32 %v9208_v61, %v3803_v31  ;;  %3981 = vmatpush.bf16.msrb.mxu1 %v8903_v36  ;;  %v7823_v31 = vld [vmem:[%s12816_s10 + $0xe0] sm:$0xf]  ;;  %v7828_v36 = vor.u32 %v8953_v30, %v7825_v35 }
 0xa91   :  { %v9210_v4 = vpop.eup %9209  ;;  %v7824_v55 = vor.u32 %v8954_v6, %v7823_v31 }
 0xa92   :  { %v3808_v8 = vadd.f32 1.0, %v9210_v4  ;;  %v3811_v9 = vmul.f32 -0.5, %v9210_v4  ;;  %v3814_v19 = vand.u32 2147483647, %v9210_v4 }
 0xa94   :  { %v9212_v12 = vpop.eup %9211  ;;  %9213 = vlog2.f32 %v3808_v8  ;;  %v3812_v18 = vadd.f32 1.0, %v3811_v9  ;;  %vm3815_vm4 = vcmp.lt.f32.partialorder %v3814_v19, 0.0004427343  ;;  %v8919_v8 = vld [vmem:[%s12814_s8 + $0x50] sm:$0xff]  ;;  %v8917_v19 = vld [vmem:[%s12814_s8 + $0x40] sm:$0xff] }
 0xa95   :  { %v3801_v15 = vmul.f32 0.6931472, %v9212_v12  ;;  %v7815_v9 = vld [vmem:[%s12816_s10 + $0xd0] sm:$0xf]  ;;  %v8952_v12 = vld [vmem:[%s12816_s10 + $0xd4] sm:$0xf0] }
 0xa96   :  { %v3813_v5 = vmul.f32 %v9210_v4, %v3812_v18  ;;  %v8920_v4 = vld [vmem:[%s12814_s8 + $0x58] sm:$0xff]  ;;  %v8950_v18 = vld [vmem:[%s12816_s10 + $0xc4] sm:$0xf0] }
 0xa97   :  { %v3807_v17 = vsel %vm3806_vm2, %v3804_v16, %v3801_v15  ;;  %4150 = vmatpush.bf16.msrb.mxu3 %v8920_v4  ;;  %v7816_v15 = vor.u32 %v8952_v12, %v7815_v9  ;;  %v8918_v16 = vld [vmem:[%s12814_s8 + $0x48] sm:$0xff]  ;;  %v8971_v9 = vld [vmem:[%s12808_s2 + $0x74] sm:$0xf] }
 0xa98   :  { %v3817_v13 = vsel %vm3791_vm3, %v3762_v37, %v3807_v17  ;;  %v8902_v37 = vld [vmem:[%s12812_s6 + $0x8] sm:$0xff]  ;;  %v7807_v17 = vld [vmem:[%s12816_s10 + $0xc0] sm:$0xf] }
 0xa99   :  { %v4003_v20 = vpack.c.bf16 %v3817_v13, %v3817_v13  ;;  %3982 = vmatpush.bf16.msrb.mxu1 %v8902_v37  ;;  %v7808_v13 = vor.u32 %v8950_v18, %v7807_v17  ;;  %v7783_v37 = vld [vmem:[%s12816_s10 + $0x90] sm:$0xf]  ;;  %v7897_v17 = vld [vmem:[%s12808_s2 + $0x78] sm:$0xf0] }
 0xa9a   :  { %v9214_v21 = vpop.eup %9213  ;;  %v7900_v18 = vor.u32 %v8971_v9, %v7897_v17  ;;  %v8959_v9 = vld [vmem:[%s12808_s2 + $0x14] sm:$0xf]  ;;  %v7951_v17 = vld [vmem:[%s12808_s2 + $0xe0] sm:$0xf] }
 0xa9b   :  { %v3810_v22 = vmul.f32 0.6931472, %v9214_v21  ;;  %4141 = vmatmul.bf16.vlgmr.msrb.gmra.mxu2 %v4003_v20  ;;  %4151 = vmatpush.bf16.msrb.mxu3 %v8919_v8  ;;  %v8948_v21 = vld [vmem:[%s12816_s10 + $0xb4] sm:$0xf0] }
 0xa9c   :  { %v8972_v8 = vld [vmem:[%s12808_s2 + $0x74] sm:$0xf0]  ;;  %4633 = vmatpush.bf16.msrb.mxu2 %v7900_v18  ;;  %v8986_v18 = vld [vmem:[%s12808_s2 + $0xe4] sm:$0xf0] }
 0xa9d   :  { %v3816_v23 = vsel %vm3815_vm4, %v3813_v5, %v3810_v22  ;;  %3983 = vmatpush.bf16.msrb.mxu1 %v8901_v34  ;;  %v8955_v5 = vld [vmem:[%s12816_s10 + $0xf4] sm:$0xf]  ;;  %v8944_v34 = vld [vmem:[%s12816_s10 + $0x94] sm:$0xf0] }
 0xa9e   :  { %v3818_v27 = vsel %vm3792_vm5, %v3788_v24, %v3816_v23  ;;  %v7833_v23 = vld [vmem:[%s12816_s10 + $0xf8] sm:$0xf0]  ;;  %v7784_v10 = vor.u32 %v8944_v34, %v7783_v37  ;;  %v7871_v37 = vld [vmem:[%s12808_s2 + $0x40] sm:$0xf]  ;;  %v8966_v34 = vld [vmem:[%s12808_s2 + $0x44] sm:$0xf0] }
 0xa9f   :  { %v3819_v28 = vpack.c.bf16 %v3818_v27, %v3818_v27  ;;  %4152 = vmatpush.bf16.msrb.mxu3 %v8918_v16  ;;  %v7836_v27 = vor.u32 %v8955_v5, %v7833_v23  ;;  %v7879_v23 = vld [vmem:[%s12808_s2 + $0x50] sm:$0xf] }
 0xaa1   :  { %3892 = vmatmul.bf16.vlgmr.msrb.gmra.mxu0 %v3819_v28  ;;  %4366 = vmatpush.bf16.msra.mxu1 %v7832_v41  ;;  %v7791_v28 = vld [vmem:[%s12816_s10 + $0xa0] sm:$0xf] }
 0xaa2   :  { %v7792_v33 = vor.u32 %v8946_v29, %v7791_v28  ;;  %v7775_v41 = vld [vmem:[%s12816_s10 + $0x80] sm:$0xf]  ;;  %v8967_v28 = vld [vmem:[%s12808_s2 + $0x54] sm:$0xf]  ;;  %v7881_v29 = vld [vmem:[%s12808_s2 + $0x58] sm:$0xf0] }
 0xaa3   :  { %4153 = vmatpush.bf16.msrb.mxu3 %v8917_v19  ;;  %v8970_v19 = vld [vmem:[%s12808_s2 + $0x64] sm:$0xf0] }
 0xaa5   :  { %4367 = vmatpush.bf16.msra.mxu1 %v7824_v55  ;;  %v7895_v55 = vld [vmem:[%s12808_s2 + $0x70] sm:$0xf] }
 0xaa6   :  { %v7896_v16 = vor.u32 %v8972_v8, %v7895_v55  ;;  %v7847_v55 = vld [vmem:[%s12808_s2 + $0x10] sm:$0xf]  ;;  %v8960_v8 = vld [vmem:[%s12808_s2 + $0x14] sm:$0xf0] }
 0xaa7   :  { %4392 = vmatpush.bf16.msra.mxu3 %v7836_v27  ;;  %v8968_v27 = vld [vmem:[%s12808_s2 + $0x54] sm:$0xf0] }
 0xaa8   :  { %4607 = vmatpush.bf16.msrb.mxu0 %v7896_v16  ;;  %v7880_v35 = vor.u32 %v8968_v27, %v7879_v23  ;;  %v8957_v23 = vld [vmem:[%s12808_s2 + $0x4] sm:$0xf] }
 0xaa9   :  { %4368 = vmatpush.bf16.msra.mxu1 %v7816_v15 }
 0xaab   :  { %4387 = vmatmul.bf16.vlgmr.msra.gmra.mxu2 %v4003_v20  ;;  %4393 = vmatpush.bf16.msra.mxu3 %v7828_v36  ;;  %v7884_v36 = vor.u32 %v8967_v28, %v7881_v29  ;;  %v7841_v28 = vld [vmem:[%s12808_s2 + $0x8] sm:$0xf0] }
 0xaac   :  { %v7844_v29 = vor.u32 %v8957_v23, %v7841_v28 }
 0xaad   :  { %4369 = vmatpush.bf16.msra.mxu1 %v7808_v13  ;;  %v7887_v13 = vld [vmem:[%s12808_s2 + $0x60] sm:$0xf] }
 0xaaf   :  { %4394 = vmatpush.bf16.msra.mxu3 %v7820_v39  ;;  %v8965_v39 = vld [vmem:[%s12808_s2 + $0x44] sm:$0xf] }
 0xab1   :  { %4361 = vmatmul.bf16.vlgmr.msra.gmra.mxu0 %v4003_v20  ;;  %v7799_v20 = vld [vmem:[%s12816_s10 + $0xb0] sm:$0xf] }
 0xab2   :  { %v7800_v22 = vor.u32 %v8948_v21, %v7799_v20  ;;  %v8969_v20 = vld [vmem:[%s12808_s2 + $0x64] sm:$0xf]  ;;  %v7888_v21 = vor.u32 %v8970_v19, %v7887_v13  ;;  %v7952_v19 = vor.u32 %v8986_v18, %v7951_v17 }
 0xab3   :  { %v8985_v13 = vld [vmem:[%s12808_s2 + $0xe4] sm:$0xf] }
 0xab4   :  { %4370 = vmatpush.bf16.msra.mxu1 %v7800_v22  ;;  %v7889_v22 = vld [vmem:[%s12808_s2 + $0x68] sm:$0xf0]  ;;  %4608 = vmatpush.bf16.msrb.mxu0 %v7888_v21 }
 0xab5   :  { %v7892_v5 = vor.u32 %v8969_v20, %v7889_v22  ;;  %v7953_v20 = vld [vmem:[%s12808_s2 + $0xe8] sm:$0xf0]  ;;  %v7839_v22 = vld [vmem:[%s12808_s2] sm:$0xf] }
 0xab6   :  { %v7956_v21 = vor.u32 %v8985_v13, %v7953_v20 }
 0xab7   :  { %4634 = vmatpush.bf16.msrb.mxu2 %v7892_v5  ;;  %v8958_v5 = vld [vmem:[%s12808_s2 + $0x4] sm:$0xf0] }
 0xab8   :  { %4371 = vmatpush.bf16.msra.mxu1 %v7792_v33  ;;  %4609 = vmatpush.bf16.msrb.mxu0 %v7880_v35  ;;  %v7840_v27 = vor.u32 %v8958_v5, %v7839_v22  ;;  %v8983_v35 = vld [vmem:[%s12808_s2 + $0xd4] sm:$0xf] }
 0xabb   :  { %4635 = vmatpush.bf16.msrb.mxu2 %v7884_v36 }
 0xabc   :  { %4372 = vmatpush.bf16.msra.mxu1 %v7784_v10 }
 0xb1e   :  { %v3893_v7 = vpop.f32.mrf.mxu0  ;;  %v11849_v44 = vpop.f32.mrf.mxu2 }
 0xb1f   :  { %v3894_v3 = vadd.f32 %v11854_v42, %v3893_v7  ;;  %v8942_v7 = vld [vmem:[%s12816_s10 + $0x84] sm:$0xf0] }
 0xb21   :  { %v3898_v43 = vmin.f32 %v3894_v3, 20.0  ;;  %vm3897_vm7 = vcmp.gt.f32.partialorder %v3894_v3, 20.0 }
 0xb23   :  { %v3899_v49 = vmul.f32 1.442695, %v3898_v43  ;;  %v7776_v43 = vor.u32 %v8942_v7, %v7775_v41  ;;  %v7873_v41 = vld [vmem:[%s12808_s2 + $0x48] sm:$0xf0]  ;;  %v7872_v7 = vor.u32 %v8966_v34, %v7871_v37  ;;  %v7945_v37 = vld [vmem:[%s12808_s2 + $0xd8] sm:$0xf0] }
 0xb24   :  { %v7948_v34 = vor.u32 %v8983_v35, %v7945_v37  ;;  %v8995_v35 = vld [vmem:[%s12810_s4 + $0x30] sm:$0xff]  ;;  %v8994_v37 = vld [vmem:[%s12810_s4 + $0x28] sm:$0xff] }
 0xb25   :  { %9215 = vpow2.f32 %v3899_v49  ;;  %4373 = vmatpush.bf16.msra.mxu1 %v7776_v43  ;;  %4610 = vmatpush.bf16.msrb.mxu0 %v7872_v7 }
 0xb26   :  { %v3895_v51 = vpop.f32.mrf.mxu0  ;;  %v4144_v52 = vpop.f32.mrf.mxu2 }
 0xb27   :  { %v7801_v51 = vld [vmem:[%s12816_s10 + $0xb8] sm:$0xf0] }
 0xb28   :  { %v7804_v52 = vor.u32 %v8947_v50, %v7801_v51  ;;  %v7863_v50 = vld [vmem:[%s12808_s2 + $0x30] sm:$0xf]  ;;  %v8964_v51 = vld [vmem:[%s12808_s2 + $0x34] sm:$0xf0] }
 0xb2b   :  { %v9216_v11 = vpop.eup %9215 }
 0xb2c   :  { %v3901_v14 = vadd.f32 1.0, %v9216_v11  ;;  %v3904_v24 = vmul.f32 -0.5, %v9216_v11  ;;  %v3907_v60 = vand.u32 2147483647, %v9216_v11 }
 0xb2e   :  { %9217 = vlog2.f32 %v3901_v14  ;;  %v11863_v53 = vpop.f32.mrf.mxu0  ;;  %v11865_v58 = vpop.f32.mrf.mxu2  ;;  %v3905_v59 = vadd.f32 1.0, %v3904_v24  ;;  %vm3908_vm6 = vcmp.lt.f32.partialorder %v3907_v60, 0.0004427343  ;;  %v7793_v14 = vld [vmem:[%s12816_s10 + $0xa8] sm:$0xf0] }
 0xb2f   :  { %v11960_v60 = vld [vmem:[%s12813_s7] ss:$0 sm:$0xff] }
 0xb30   :  { %v3906_v62 = vmul.f32 %v9216_v11, %v3905_v59  ;;  %v8945_v11 = vld [vmem:[%s12816_s10 + $0xa4] sm:$0xf] }
 0xb31   :  { %v7796_v59 = vor.u32 %v8945_v11, %v7793_v14  ;;  %v7864_v11 = vor.u32 %v8964_v51, %v7863_v50  ;;  %v7865_v14 = vld [vmem:[%s12808_s2 + $0x38] sm:$0xf0] }
 0xb32   :  { %v7929_v50 = vld [vmem:[%s12808_s2 + $0xb8] sm:$0xf0] }
 0xb33   :  { %4611 = vmatpush.bf16.msrb.mxu0 %v7864_v11  ;;  %v8978_v11 = vld [vmem:[%s12808_s2 + $0xa4] sm:$0xf0] }
 0xb34   :  { %v9218_v40 = vpop.eup %9217 }
 0xb35   :  { %v3903_v61 = vmul.f32 0.6931472, %v9218_v40 }
 0xb36   :  { %v4364_v63 = vpop.f32.mrf.mxu0  ;;  %v4390_v26 = vpop.f32.mrf.mxu2 }
 0xb37   :  { %v3909_v1 = vsel %vm3908_vm6, %v3906_v62, %v3903_v61  ;;  %v8943_v61 = vld [vmem:[%s12816_s10 + $0x94] sm:$0xf]  ;;  %v7785_v62 = vld [vmem:[%s12816_s10 + $0x98] sm:$0xf0] }
 0xb38   :  { %v3910_v46 = vsel %vm3897_vm7, %v3894_v3, %v3909_v1  ;;  %v8949_v3 = vld [vmem:[%s12816_s10 + $0xc4] sm:$0xf]  ;;  %v7788_v26 = vor.u32 %v8943_v61, %v7785_v62 }
 0xb39   :  { %v3911_v2 = vpack.c.bf16 %v3910_v46, %v3910_v46  ;;  %v7812_v49 = vor.u32 %v8949_v3, %v7809_v57  ;;  %v8941_v46 = vld [vmem:[%s12816_s10 + $0x84] sm:$0xf]  ;;  %v7876_v57 = vor.u32 %v8965_v39, %v7873_v41  ;;  %v7937_v41 = vld [vmem:[%s12808_s2 + $0xc8] sm:$0xf0] }
 0xb3a   :  { %v8961_v61 = vld [vmem:[%s12808_s2 + $0x24] sm:$0xf] }
 0xb3b   :  { %3984 = vmatmul.bf16.vlgmr.msrb.gmra.mxu1 %v3911_v2  ;;  %4395 = vmatpush.bf16.msra.mxu3 %v7812_v49  ;;  %v7777_v2 = vld [vmem:[%s12816_s10 + $0x88] sm:$0xf0] }
 0xb3c   :  { %v7780_v31 = vor.u32 %v8941_v46, %v7777_v2  ;;  %4636 = vmatpush.bf16.msrb.mxu2 %v7876_v57  ;;  %v8988_v46 = vld [vmem:[%s12808_s2 + $0xf4] sm:$0xf0]  ;;  %v8987_v2 = vld [vmem:[%s12808_s2 + $0xf4] sm:$0xf] }
 0xb3d   :  { %v8979_v57 = vld [vmem:[%s12808_s2 + $0xb4] sm:$0xf] }
 0xb3e   :  { %v7932_v51 = vor.u32 %v8979_v57, %v7929_v50  ;;  %v8153_v57 = vld [vmem:[%s12816_s10 + $0x78] sm:$0xf0]  ;;  %v8990_v50 = vld [vmem:[%s12810_s4 + $0x8] sm:$0xff] }
 0xb3f   :  { %4396 = vmatpush.bf16.msra.mxu3 %v7804_v52  ;;  %v8963_v52 = vld [vmem:[%s12808_s2 + $0x34] sm:$0xf] }
 0xb43   :  { %4397 = vmatpush.bf16.msra.mxu3 %v7796_v59  ;;  %v7855_v59 = vld [vmem:[%s12808_s2 + $0x20] sm:$0xf] }
 0xb47   :  { %4398 = vmatpush.bf16.msra.mxu3 %v7788_v26 }
 0xb4b   :  { %4399 = vmatpush.bf16.msra.mxu3 %v7780_v31  ;;  %v7961_v31 = vld [vmem:[%s12808_s2 + $0xf8] sm:$0xf0] }
 0xbb8   :  { %v3985_v24 = vpop.f32.mrf.mxu1 }
 0xbb9   :  { %v3986_v40 = vadd.f32 %v11960_v60, %v3985_v24  ;;  %v7868_v24 = vor.u32 %v8963_v52, %v7865_v14  ;;  %v7919_v52 = vld [vmem:[%s12808_s2 + $0xa0] sm:$0xf]  ;;  %v8977_v14 = vld [vmem:[%s12808_s2 + $0xa4] sm:$0xf] }
 0xbbb   :  { %v3990_v63 = vmin.f32 %v3986_v40, 20.0  ;;  %vm3989_vm10 = vcmp.gt.f32.partialorder %v3986_v40, 20.0  ;;  %4637 = vmatpush.bf16.msrb.mxu2 %v7868_v24  ;;  %v7920_v24 = vor.u32 %v8978_v11, %v7919_v52  ;;  %v9033_v52 = vld [vmem:[%s12816_s10 + $0x64] sm:$0xf]  ;;  %v8145_v11 = vld [vmem:[%s12816_s10 + $0x68] sm:$0xf0] }
 0xbbd   :  { %v3991_v1 = vmul.f32 1.442695, %v3990_v63  ;;  %v7857_v63 = vld [vmem:[%s12808_s2 + $0x28] sm:$0xf0] }
 0xbbe   :  { %v7860_v26 = vor.u32 %v8961_v61, %v7857_v63  ;;  %v7911_v61 = vld [vmem:[%s12808_s2 + $0x90] sm:$0xf]  ;;  %v8975_v63 = vld [vmem:[%s12808_s2 + $0x94] sm:$0xf] }
 0xbbf   :  { %9219 = vpow2.f32 %v3991_v1  ;;  %v7959_v1 = vld [vmem:[%s12808_s2 + $0xf0] sm:$0xf] }
 0xbc0   :  { %v3987_v4 = vpop.f32.mrf.mxu1  ;;  %4638 = vmatpush.bf16.msrb.mxu2 %v7860_v26 }
 0xbc1   :  { %v7960_v4 = vor.u32 %v8988_v46, %v7959_v1  ;;  %v7913_v1 = vld [vmem:[%s12808_s2 + $0x98] sm:$0xf0] }
 0xbc2   :  { %v7916_v46 = vor.u32 %v8975_v63, %v7913_v1  ;;  %v9031_v63 = vld [vmem:[%s12816_s10 + $0x54] sm:$0xf] }
 0xbc3   :  { %4620 = vmatpush.bf16.msrb.mxu1 %v7960_v4 }
 0xbc5   :  { %v9220_v6 = vpop.eup %9219 }
 0xbc6   :  { %v3993_v12 = vadd.f32 1.0, %v9220_v6  ;;  %v3996_v15 = vmul.f32 -0.5, %v9220_v6  ;;  %v3999_v33 = vand.u32 2147483647, %v9220_v6 }
 0xbc7   :  { %4621 = vmatpush.bf16.msrb.mxu1 %v7952_v19  ;;  %v12178_v19 = vld [vmem:[%s12815_s9] ss:$0 sm:$0xff] }
 0xbc8   :  { %9221 = vlog2.f32 %v3993_v12  ;;  %v3997_v30 = vadd.f32 1.0, %v3996_v15  ;;  %vm4000_vm9 = vcmp.lt.f32.partialorder %v3999_v33, 0.0004427343  ;;  %v7848_v12 = vor.u32 %v8960_v8, %v7847_v55  ;;  %v7849_v15 = vld [vmem:[%s12808_s2 + $0x18] sm:$0xf0] }
 0xbc9   :  { %v7852_v16 = vor.u32 %v8959_v9, %v7849_v15  ;;  %v8984_v33 = vld [vmem:[%s12808_s2 + $0xd4] sm:$0xf0]  ;;  %v8973_v55 = vld [vmem:[%s12808_s2 + $0x84] sm:$0xf]  ;;  %v7905_v9 = vld [vmem:[%s12808_s2 + $0x88] sm:$0xf0] }
 0xbca   :  { %v3998_v45 = vmul.f32 %v9220_v6, %v3997_v30  ;;  %v7964_v6 = vor.u32 %v8987_v2, %v7961_v31  ;;  %v7943_v30 = vld [vmem:[%s12808_s2 + $0xd0] sm:$0xf]  ;;  %v7903_v31 = vld [vmem:[%s12808_s2 + $0x80] sm:$0xf] }
 0xbcb   :  { %4639 = vmatpush.bf16.msrb.mxu2 %v7852_v16  ;;  %v7944_v36 = vor.u32 %v8984_v33, %v7943_v30  ;;  %v9012_v30 = vld [vmem:[%s12814_s8 + $0x38] sm:$0xff]  ;;  %v9010_v33 = vld [vmem:[%s12814_s8 + $0x28] sm:$0xff] }
 0xbcd   :  { %4622 = vmatpush.bf16.msrb.mxu1 %v7944_v36  ;;  %v9009_v36 = vld [vmem:[%s12814_s8 + $0x20] sm:$0xff] }
 0xbce   :  { %v9222_v38 = vpop.eup %9221 }
 0xbcf   :  { %v3995_v10 = vmul.f32 0.6931472, %v9222_v38  ;;  %4640 = vmatpush.bf16.msrb.mxu2 %v7844_v29  ;;  %v7935_v38 = vld [vmem:[%s12808_s2 + $0xc0] sm:$0xf] }
 0xbd1   :  { %v4001_v3 = vsel %vm4000_vm9, %v3998_v45, %v3995_v10  ;;  %v8982_v10 = vld [vmem:[%s12808_s2 + $0xc4] sm:$0xf0]  ;;  %v8981_v45 = vld [vmem:[%s12808_s2 + $0xc4] sm:$0xf] }
 0xbd2   :  { %v4002_v43 = vsel %vm3989_vm10, %v3986_v40, %v4001_v3  ;;  %v8962_v40 = vld [vmem:[%s12808_s2 + $0x24] sm:$0xf0]  ;;  %v7936_v39 = vor.u32 %v8982_v10, %v7935_v38  ;;  %v7940_v7 = vor.u32 %v8981_v45, %v7937_v41  ;;  %v7927_v3 = vld [vmem:[%s12808_s2 + $0xb0] sm:$0xf]  ;;  %v8993_v38 = vld [vmem:[%s12810_s4 + $0x20] sm:$0xff] }
 0xbd3   :  { %v4004_v49 = vpack.c.bf16 %v4002_v43, %v4002_v43  ;;  %v7856_v62 = vor.u32 %v8962_v40, %v7855_v59  ;;  %v8980_v43 = vld [vmem:[%s12808_s2 + $0xb4] sm:$0xf0]  ;;  %v7921_v59 = vld [vmem:[%s12808_s2 + $0xa8] sm:$0xf0]  ;;  %5001 = vmatpush.bf16.msra.mxu2 %v9012_v30  ;;  %v9007_v10 = vld [vmem:[%s12814_s8 + $0x10] sm:$0xff] }
 0xbd4   :  { %4623 = vmatpush.bf16.msrb.mxu1 %v7936_v39  ;;  %v7924_v40 = vor.u32 %v8977_v14, %v7921_v59  ;;  %v8992_v45 = vld [vmem:[%s12810_s4 + $0x18] sm:$0xff]  ;;  %v9006_v39 = vld [vmem:[%s12814_s8 + $0x8] sm:$0xff]  ;;  %v8148_v14 = vor.u32 %v9033_v52, %v8145_v11  ;;  %v8989_v59 = vld [vmem:[%s12810_s4] sm:$0xff] }
 0xbd5   :  { %4154 = vmatmul.bf16.vlgmr.msrb.gmra.mxu3 %v4004_v49  ;;  %4374 = vmatmul.bf16.vlgmr.msra.gmra.mxu1 %v4004_v49  ;;  %v9028_v30 = vld [vmem:[%s12816_s10 + $0x34] sm:$0xf0] }
 0xbd6   :  { %4612 = vmatpush.bf16.msrb.mxu0 %v7856_v62  ;;  %4646 = vmatpush.bf16.msrb.mxu3 %v7964_v6  ;;  %v8976_v62 = vld [vmem:[%s12808_s2 + $0x94] sm:$0xf0]  ;;  %v8974_v6 = vld [vmem:[%s12808_s2 + $0x84] sm:$0xf0] }
 0xbd7   :  { %v7912_v26 = vor.u32 %v8976_v62, %v7911_v61  ;;  %v7904_v8 = vor.u32 %v8974_v6, %v7903_v31  ;;  %v9036_v61 = vld [vmem:[%s12816_s10 + $0x74] sm:$0xf0]  ;;  %v9029_v6 = vld [vmem:[%s12816_s10 + $0x44] sm:$0xf] }
 0xbda   :  { %4613 = vmatpush.bf16.msrb.mxu0 %v7848_v12  ;;  %4647 = vmatpush.bf16.msrb.mxu3 %v7956_v21  ;;  %v7908_v12 = vor.u32 %v8973_v55, %v7905_v9  ;;  %v8129_v55 = vld [vmem:[%s12816_s10 + $0x48] sm:$0xf0]  ;;  %v8135_v9 = vld [vmem:[%s12816_s10 + $0x50] sm:$0xf] }
 0xbde   :  { %4614 = vmatpush.bf16.msrb.mxu0 %v7840_v27  ;;  %4648 = vmatpush.bf16.msrb.mxu3 %v7948_v34  ;;  %v9008_v34 = vld [vmem:[%s12814_s8 + $0x18] sm:$0xff] }
 0xbe2   :  { %4649 = vmatpush.bf16.msrb.mxu3 %v7940_v7  ;;  %v8991_v7 = vld [vmem:[%s12810_s4 + $0x10] sm:$0xff] }
 0xbe5   :  { %4400 = vmatmul.bf16.vlgmr.msra.gmra.mxu3 %v4004_v49  ;;  %v7928_v49 = vor.u32 %v8980_v43, %v7927_v3  ;;  %v9005_v3 = vld [vmem:[%s12814_s8] sm:$0xff]  ;;  %v9035_v43 = vld [vmem:[%s12816_s10 + $0x74] sm:$0xf] }
 0xbe6   :  { %4650 = vmatpush.bf16.msrb.mxu3 %v7932_v51 }
 0xbe7   :  { %4624 = vmatpush.bf16.msrb.mxu1 %v7928_v49  ;;  %v8156_v49 = vor.u32 %v9035_v43, %v8153_v57  ;;  %v9024_v43 = vld [vmem:[%s12816_s10 + $0x14] sm:$0xf0] }
 0xbea   :  { %4651 = vmatpush.bf16.msrb.mxu3 %v7924_v40  ;;  %v8151_v40 = vld [vmem:[%s12816_s10 + $0x70] sm:$0xf] }
 0xbeb   :  { %4625 = vmatpush.bf16.msrb.mxu1 %v7920_v24  ;;  %v8152_v62 = vor.u32 %v9036_v61, %v8151_v40 }
 0xbee   :  { %4652 = vmatpush.bf16.msrb.mxu3 %v7916_v46  ;;  %v8143_v46 = vld [vmem:[%s12816_s10 + $0x60] sm:$0xf] }
 0xbef   :  { %4626 = vmatpush.bf16.msrb.mxu1 %v7912_v26  ;;  %v8137_v26 = vld [vmem:[%s12816_s10 + $0x58] sm:$0xf0] }
 0xbf0   :  { %v8140_v1 = vor.u32 %v9031_v63, %v8137_v26 }
 0xbf2   :  { %4653 = vmatpush.bf16.msrb.mxu3 %v7908_v12 }
 0xbf3   :  { %4627 = vmatpush.bf16.msrb.mxu1 %v7904_v8  ;;  %v8132_v8 = vor.u32 %v9029_v6, %v8129_v55 }
 0xc52   :  { %v4375_v2 = vpop.f32.mrf.mxu1 }
 0xc53   :  { %v4376_v4 = vadd.f32 %v4375_v2, %v11863_v53  ;;  %v9034_v2 = vld [vmem:[%s12816_s10 + $0x64] sm:$0xf0] }
 0xc55   :  { %v4405_v53 = vadd.f32 %v4376_v4, %v11651_v25  ;;  %v8144_v4 = vor.u32 %v9034_v2, %v8143_v46  ;;  %v9004_v46 = vld [vmem:[%s12812_s6 + $0x38] sm:$0xff] }
 0xc56   :  { %4844 = vmatpush.bf16.msra.mxu1 %v9004_v46  ;;  %v8207_v46 = vld [vmem:[%s12816_s10 + $0xe0] sm:$0xf] }
 0xc57   :  { %v12170_v15 = vadd.f32 %v4405_v53, %v10093_v48  ;;  %v9032_v53 = vld [vmem:[%s12816_s10 + $0x54] sm:$0xf0] }
 0xc58   :  { %v4155_v16 = vpop.f32.mrf.mxu3  ;;  %v8136_v12 = vor.u32 %v9032_v53, %v8135_v9 }
 0xc59   :  { %9223 = vtanh.f32 %v12170_v15  ;;  %v4156_v17 = vadd.f32 %v4155_v16, %v11849_v44  ;;  %v9027_v16 = vld [vmem:[%s12816_s10 + $0x34] sm:$0xf] }
 0xc5a   :  { %v4377_v18 = vpop.f32.mrf.mxu1 }
 0xc5b   :  { %v4159_v13 = vadd.f32 %v4156_v17, %v11657_v32  ;;  %v8121_v17 = vld [vmem:[%s12816_s10 + $0x38] sm:$0xf0] }
 0xc5c   :  { %v8124_v18 = vor.u32 %v9027_v16, %v8121_v17 }
 0xc5d   :  { %v12181_v25 = vadd.f32 %v12178_v19, %v4159_v13  ;;  %v8127_v13 = vld [vmem:[%s12816_s10 + $0x40] sm:$0xf] }
 0xc5f   :  { %v9224_v20 = vpop.eup %9223  ;;  %4410 = vst.msk [vmem:[#allocation2 + $0x28] sm:$0xff] %vm69_vm8, %v12181_v25 }
 0xc60   :  { %v4413_v21 = vpack.c.bf16 %v9224_v20, %v9224_v20  ;;  %v4157_v22 = vpop.f32.mrf.mxu3  ;;  %v9030_v20 = vld [vmem:[%s12816_s10 + $0x44] sm:$0xf0] }
 0xc61   :  { %v8128_v22 = vor.u32 %v9030_v20, %v8127_v13 }
 0xc62   :  { %4615 = vmatmul.bf16.vlgmr.msrb.gmra.mxu0 %v4413_v21  ;;  %4641 = vmatmul.bf16.vlgmr.msrb.gmra.mxu2 %v4413_v21 }
 0xc68   :  { %v4401_v44 = vpop.f32.mrf.mxu3 }
 0xc69   :  { %v4402_v5 = vadd.f32 %v4401_v44, %v11865_v58  ;;  %v9011_v58 = vld [vmem:[%s12814_s8 + $0x30] sm:$0xff] }
 0xc6a   :  { %5002 = vmatpush.bf16.msra.mxu2 %v9011_v58 }
 0xc6b   :  { %v4406_v32 = vadd.f32 %v4402_v5, %v11664_v56  ;;  %v8996_v56 = vld [vmem:[%s12810_s4 + $0x38] sm:$0xff]  ;;  %v9025_v5 = vld [vmem:[%s12816_s10 + $0x24] sm:$0xf] }
 0xc6c   :  { %4752 = vmatpush.bf16.msra.mxu0 %v8996_v56 }
 0xc6d   :  { %v12188_v23 = vadd.f32 %v4406_v32, %v10115_v0  ;;  %v8113_v32 = vld [vmem:[%s12816_s10 + $0x28] sm:$0xf0] }
 0xc6e   :  { %5003 = vmatpush.bf16.msra.mxu2 %v9010_v33  ;;  %v9023_v33 = vld [vmem:[%s12816_s10 + $0x14] sm:$0xf] }
 0xc6f   :  { %9225 = vtanh.f32 %v12188_v23 }
 0xc70   :  { %v4403_v27 = vpop.f32.mrf.mxu3  ;;  %4753 = vmatpush.bf16.msra.mxu0 %v8995_v35  ;;  %v8105_v35 = vld [vmem:[%s12816_s10 + $0x18] sm:$0xf0] }
 0xc72   :  { %5004 = vmatpush.bf16.msra.mxu2 %v9009_v36  ;;  %v8108_v36 = vor.u32 %v9023_v33, %v8105_v35  ;;  %v8215_v33 = vld [vmem:[%s12816_s10 + $0xf0] sm:$0xf]  ;;  %v9052_v35 = vld [vmem:[%s12816_s10 + $0xf4] sm:$0xf0] }
 0xc74   :  { %4754 = vmatpush.bf16.msra.mxu0 %v8994_v37  ;;  %v8111_v37 = vld [vmem:[%s12816_s10 + $0x20] sm:$0xf] }
 0xc75   :  { %v9226_v28 = vpop.eup %9225 }
 0xc76   :  { %v4414_v29 = vpack.c.bf16 %v9226_v28, %v9226_v28  ;;  %5005 = vmatpush.bf16.msra.mxu2 %v9008_v34  ;;  %v8116_v28 = vor.u32 %v9025_v5, %v8113_v32  ;;  %v9026_v34 = vld [vmem:[%s12816_s10 + $0x24] sm:$0xf0]  ;;  %v9003_v5 = vld [vmem:[%s12812_s6 + $0x30] sm:$0xff] }
 0xc77   :  { %4845 = vmatpush.bf16.msra.mxu1 %v9003_v5  ;;  %v9002_v32 = vld [vmem:[%s12812_s6 + $0x28] sm:$0xff]  ;;  %v8175_v5 = vld [vmem:[%s12816_s10 + $0xa0] sm:$0xf] }
 0xc78   :  { %4628 = vmatmul.bf16.vlgmr.msrb.gmra.mxu1 %v4414_v29  ;;  %4654 = vmatmul.bf16.vlgmr.msrb.gmra.mxu3 %v4414_v29  ;;  %v8119_v29 = vld [vmem:[%s12816_s10 + $0x30] sm:$0xf] }
 0xc79   :  { %4755 = vmatpush.bf16.msra.mxu0 %v8993_v38  ;;  %v8120_v56 = vor.u32 %v9028_v30, %v8119_v29  ;;  %v9021_v38 = vld [vmem:[%s12816_s10 + $0x4] sm:$0xf]  ;;  %v8999_v29 = vld [vmem:[%s12812_s6 + $0x10] sm:$0xff]  ;;  %v8998_v30 = vld [vmem:[%s12812_s6 + $0x8] sm:$0xff] }
 0xc7a   :  { %5006 = vmatpush.bf16.msra.mxu2 %v9007_v10 }
 0xc7b   :  { %4846 = vmatpush.bf16.msra.mxu1 %v9002_v32  ;;  %v9042_v32 = vld [vmem:[%s12816_s10 + $0xa4] sm:$0xf0] }
 0xc7d   :  { %4756 = vmatpush.bf16.msra.mxu0 %v8992_v45 }
 0xc7e   :  { %5007 = vmatpush.bf16.msra.mxu2 %v9006_v39  ;;  %v8112_v39 = vor.u32 %v9026_v34, %v8111_v37  ;;  %v8216_v37 = vor.u32 %v9052_v35, %v8215_v33  ;;  %v9047_v33 = vld [vmem:[%s12816_s10 + $0xd4] sm:$0xf] }
 0xc81   :  { %4757 = vmatpush.bf16.msra.mxu0 %v8991_v7 }
 0xc82   :  { %5008 = vmatpush.bf16.msra.mxu2 %v9005_v3  ;;  %v8103_v3 = vld [vmem:[%s12816_s10 + $0x10] sm:$0xf] }
 0xc83   :  { %v8104_v52 = vor.u32 %v9024_v43, %v8103_v3 }
 0xc85   :  { %4758 = vmatpush.bf16.msra.mxu0 %v8990_v50 }
 0xc86   :  { %5247 = vmatpush.bf16.msrb.mxu2 %v8156_v49 }
 0xc89   :  { %4759 = vmatpush.bf16.msra.mxu0 %v8989_v59  ;;  %v9022_v59 = vld [vmem:[%s12816_s10 + $0x4] sm:$0xf0] }
 0xc8a   :  { %5248 = vmatpush.bf16.msrb.mxu2 %v8148_v14 }
 0xc8d   :  { %5221 = vmatpush.bf16.msrb.mxu0 %v8152_v62 }
 0xc8e   :  { %5249 = vmatpush.bf16.msrb.mxu2 %v8140_v1 }
 0xc91   :  { %5222 = vmatpush.bf16.msrb.mxu0 %v8144_v4 }
 0xc92   :  { %5250 = vmatpush.bf16.msrb.mxu2 %v8132_v8 }
 0xc95   :  { %5223 = vmatpush.bf16.msrb.mxu0 %v8136_v12 }
 0xc96   :  { %5251 = vmatpush.bf16.msrb.mxu2 %v8124_v18 }
 0xc99   :  { %5224 = vmatpush.bf16.msrb.mxu0 %v8128_v22 }
 0xc9a   :  { %5252 = vmatpush.bf16.msrb.mxu2 %v8116_v28  ;;  %v9000_v28 = vld [vmem:[%s12812_s6 + $0x18] sm:$0xff] }
 0xc9d   :  { %5225 = vmatpush.bf16.msrb.mxu0 %v8120_v56  ;;  %v9020_v56 = vld [vmem:[%s12814_s8 + $0x78] sm:$0xff] }
 0xc9e   :  { %5253 = vmatpush.bf16.msrb.mxu2 %v8108_v36  ;;  %5014 = vmatpush.bf16.msra.mxu3 %v9020_v56  ;;  %v9019_v36 = vld [vmem:[%s12814_s8 + $0x70] sm:$0xff]  ;;  %v9040_v56 = vld [vmem:[%s12816_s10 + $0x94] sm:$0xf0] }
 0xca1   :  { %5226 = vmatpush.bf16.msrb.mxu0 %v8112_v39  ;;  %v9018_v39 = vld [vmem:[%s12814_s8 + $0x68] sm:$0xff] }
 0xca2   :  { %5015 = vmatpush.bf16.msra.mxu3 %v9019_v36  ;;  %v8201_v36 = vld [vmem:[%s12816_s10 + $0xd8] sm:$0xf0] }
 0xca5   :  { %5227 = vmatpush.bf16.msrb.mxu0 %v8104_v52 }
 0xca6   :  { %5016 = vmatpush.bf16.msra.mxu3 %v9018_v39 }
 0xcdf   :  { %v4616_v41 = vpop.f32.mrf.mxu0 }
 0xce0   :  { %v4617_v21 = vadd.f32 %v4616_v41, %v9605_v54  ;;  %v8097_v41 = vld [vmem:[%s12816_s10 + $0x8] sm:$0xf0] }
 0xce1   :  { %v8100_v49 = vor.u32 %v9021_v38, %v8097_v41 }
 0xce3   :  { %5254 = vmatpush.bf16.msrb.mxu2 %v8100_v49 }
 0xce5   :  { %v4642_v51 = vpop.f32.mrf.mxu2 }
 0xce6   :  { %v4643_v10 = vadd.f32 %v4642_v51, %v9593_v47 }
 0xce7   :  { %v4618_v24 = vpop.f32.mrf.mxu0 }
 0xce8   :  { %v8095_v24 = vld [vmem:[%s12816_s10] sm:$0xf] }
 0xce9   :  { %v8096_v62 = vor.u32 %v9022_v59, %v8095_v24 }
 0xceb   :  { %5228 = vmatpush.bf16.msrb.mxu0 %v8096_v62 }
 0xced   :  { %v4644_v31 = vpop.f32.mrf.mxu2 }
 0xcf5   :  { %v4629_v44 = vpop.f32.mrf.mxu1 }
 0xcf6   :  { %v4630_v27 = vadd.f32 %v4629_v44, %v4617_v21 }
 0xcf8   :  { %v4661_v58 = vmin.f32 %v4630_v27, 20.0  ;;  %vm4659_vm12 = vcmp.gt.f32.partialorder %v4630_v27, 20.0 }
 0xcfa   :  { %v4663_v45 = vmul.f32 1.442695, %v4661_v58  ;;  %v8997_v58 = vld [vmem:[%s12812_s6] sm:$0xff] }
 0xcfb   :  { %v4655_v7 = vpop.f32.mrf.mxu3 }
 0xcfc   :  { %9227 = vpow2.f32 %v4663_v45  ;;  %v4656_v57 = vadd.f32 %v4655_v7, %v4643_v10  ;;  %v9017_v7 = vld [vmem:[%s12814_s8 + $0x60] sm:$0xff] }
 0xcfd   :  { %v4631_v50 = vpop.f32.mrf.mxu1  ;;  %5017 = vmatpush.bf16.msra.mxu3 %v9017_v7 }
 0xcfe   :  { %v4662_v51 = vmin.f32 %v4656_v57, 20.0  ;;  %vm4660_vm14 = vcmp.gt.f32.partialorder %v4656_v57, 20.0 }
 0xd00   :  { %v4665_v11 = vmul.f32 1.442695, %v4662_v51 }
 0xd02   :  { %v9228_v14 = vpop.eup %9227  ;;  %9229 = vpow2.f32 %v4665_v11 }
 0xd03   :  { %v4667_v40 = vadd.f32 1.0, %v9228_v14  ;;  %v4657_v61 = vpop.f32.mrf.mxu3  ;;  %v4670_v63 = vmul.f32 -0.5, %v9228_v14  ;;  %v4673_v2 = vand.u32 2147483647, %v9228_v14 }
 0xd05   :  { %9231 = vlog2.f32 %v4667_v40  ;;  %v4671_v1 = vadd.f32 1.0, %v4670_v63  ;;  %vm4674_vm11 = vcmp.lt.f32.partialorder %v4673_v2, 0.0004427343  ;;  %v9050_v2 = vld [vmem:[%s12816_s10 + $0xe4] sm:$0xf0] }
 0xd07   :  { %v4672_v8 = vmul.f32 %v9228_v14, %v4671_v1  ;;  %v9016_v1 = vld [vmem:[%s12814_s8 + $0x58] sm:$0xff] }
 0xd08   :  { %v9230_v26 = vpop.eup %9229  ;;  %5018 = vmatpush.bf16.msra.mxu3 %v9016_v1 }
 0xd09   :  { %v4676_v4 = vadd.f32 1.0, %v9230_v26  ;;  %v4679_v31 = vmul.f32 -0.5, %v9230_v26  ;;  %v4682_v16 = vand.u32 2147483647, %v9230_v26 }
 0xd0b   :  { %v9232_v6 = vpop.eup %9231  ;;  %9233 = vlog2.f32 %v4676_v4  ;;  %v4680_v53 = vadd.f32 1.0, %v4679_v31  ;;  %vm4683_vm13 = vcmp.lt.f32.partialorder %v4682_v16, 0.0004427343  ;;  %v8208_v4 = vor.u32 %v9050_v2, %v8207_v46  ;;  %v9015_v31 = vld [vmem:[%s12814_s8 + $0x50] sm:$0xff] }
 0xd0c   :  { %v4669_v55 = vmul.f32 0.6931472, %v9232_v6  ;;  %v8199_v6 = vld [vmem:[%s12816_s10 + $0xd0] sm:$0xf]  ;;  %5019 = vmatpush.bf16.msra.mxu3 %v9015_v31  ;;  %v9067_v31 = vld [vmem:[%s12808_s2 + $0x74] sm:$0xf] }
 0xd0d   :  { %v4681_v20 = vmul.f32 %v9230_v26, %v4680_v53  ;;  %v8191_v53 = vld [vmem:[%s12816_s10 + $0xc0] sm:$0xf]  ;;  %v8279_v2 = vld [vmem:[%s12808_s2 + $0x70] sm:$0xf] }
 0xd0e   :  { %v4675_v9 = vsel %vm4674_vm11, %v4672_v8, %v4669_v55  ;;  %v9048_v55 = vld [vmem:[%s12816_s10 + $0xd4] sm:$0xf0] }
 0xd0f   :  { %v4685_v12 = vsel %vm4659_vm12, %v4630_v27, %v4675_v9  ;;  %v9001_v27 = vld [vmem:[%s12812_s6 + $0x20] sm:$0xff]  ;;  %v8200_v8 = vor.u32 %v9048_v55, %v8199_v6  ;;  %v9014_v9 = vld [vmem:[%s12814_s8 + $0x48] sm:$0xff] }
 0xd10   :  { %v4871_v17 = vpack.c.bf16 %v4685_v12, %v4685_v12  ;;  %4847 = vmatpush.bf16.msra.mxu1 %v9001_v27  ;;  %v9046_v12 = vld [vmem:[%s12816_s10 + $0xc4] sm:$0xf0]  ;;  %5020 = vmatpush.bf16.msra.mxu3 %v9014_v9  ;;  %v9049_v27 = vld [vmem:[%s12816_s10 + $0xe4] sm:$0xf]  ;;  %v8281_v9 = vld [vmem:[%s12808_s2 + $0x78] sm:$0xf0] }
 0xd11   :  { %v9234_v18 = vpop.eup %9233  ;;  %v8192_v16 = vor.u32 %v9046_v12, %v8191_v53  ;;  %v8284_v53 = vor.u32 %v9067_v31, %v8281_v9  ;;  %v8271_v12 = vld [vmem:[%s12808_s2 + $0x60] sm:$0xf]  ;;  %v9082_v9 = vld [vmem:[%s12808_s2 + $0xe4] sm:$0xf0] }
 0xd12   :  { %v4678_v13 = vmul.f32 0.6931472, %v9234_v18  ;;  %5009 = vmatmul.bf16.vlgmr.msra.gmra.mxu2 %v4871_v17  ;;  %v8183_v18 = vld [vmem:[%s12816_s10 + $0xb0] sm:$0xf] }
 0xd13   :  { %5501 = vmatpush.bf16.msra.mxu2 %v8284_v53  ;;  %v9081_v53 = vld [vmem:[%s12808_s2 + $0xe4] sm:$0xf] }
 0xd14   :  { %v4684_v21 = vsel %vm4683_vm13, %v4681_v20, %v4678_v13  ;;  %4848 = vmatpush.bf16.msra.mxu1 %v9000_v28  ;;  %v9044_v13 = vld [vmem:[%s12816_s10 + $0xb4] sm:$0xf0]  ;;  %v8176_v28 = vor.u32 %v9042_v32, %v8175_v5  ;;  %v8265_v5 = vld [vmem:[%s12808_s2 + $0x58] sm:$0xf0] }
 0xd15   :  { %v4686_v22 = vsel %vm4660_vm14, %v4656_v57, %v4684_v21  ;;  %v8184_v20 = vor.u32 %v9044_v13, %v8183_v18  ;;  %v9051_v21 = vld [vmem:[%s12816_s10 + $0xf4] sm:$0xf]  ;;  %v8273_v13 = vld [vmem:[%s12808_s2 + $0x68] sm:$0xf0] }
 0xd16   :  { %v4687_v44 = vpack.c.bf16 %v4686_v22, %v4686_v22  ;;  %v8217_v22 = vld [vmem:[%s12816_s10 + $0xf8] sm:$0xf0] }
 0xd18   :  { %4760 = vmatmul.bf16.vlgmr.msra.gmra.mxu0 %v4687_v44  ;;  %4849 = vmatpush.bf16.msra.mxu1 %v8999_v29  ;;  %v8220_v44 = vor.u32 %v9051_v21, %v8217_v22  ;;  %v8209_v29 = vld [vmem:[%s12816_s10 + $0xe8] sm:$0xf0]  ;;  %v8263_v21 = vld [vmem:[%s12808_s2 + $0x50] sm:$0xf]  ;;  %v9064_v22 = vld [vmem:[%s12808_s2 + $0x54] sm:$0xf0] }
 0xd1c   :  { %4850 = vmatpush.bf16.msra.mxu1 %v8998_v30  ;;  %v8212_v30 = vor.u32 %v9049_v27, %v8209_v29 }
 0xd20   :  { %4851 = vmatpush.bf16.msra.mxu1 %v8997_v58  ;;  %v8167_v58 = vld [vmem:[%s12816_s10 + $0x90] sm:$0xf] }
 0xd21   :  { %v8168_v35 = vor.u32 %v9040_v56, %v8167_v58  ;;  %v9062_v58 = vld [vmem:[%s12808_s2 + $0x44] sm:$0xf0] }
 0xd22   :  { %5255 = vmatmul.bf16.vlgmr.msrb.gmra.mxu2 %v4871_v17 }
 0xd24   :  { %5234 = vmatpush.bf16.msrb.mxu1 %v8216_v37  ;;  %v8204_v37 = vor.u32 %v9047_v33, %v8201_v36  ;;  %v9061_v36 = vld [vmem:[%s12808_s2 + $0x44] sm:$0xf] }
 0xd28   :  { %5229 = vmatmul.bf16.vlgmr.msrb.gmra.mxu0 %v4871_v17  ;;  %5235 = vmatpush.bf16.msrb.mxu1 %v8208_v4  ;;  %v9013_v17 = vld [vmem:[%s12814_s8 + $0x40] sm:$0xff]  ;;  %v9068_v4 = vld [vmem:[%s12808_s2 + $0x74] sm:$0xf0] }
 0xd29   :  { %5021 = vmatpush.bf16.msra.mxu3 %v9013_v17  ;;  %v9065_v17 = vld [vmem:[%s12808_s2 + $0x64] sm:$0xf] }
 0xd2c   :  { %5236 = vmatpush.bf16.msrb.mxu1 %v8200_v8  ;;  %v8280_v8 = vor.u32 %v9068_v4, %v8279_v2  ;;  %v9056_v2 = vld [vmem:[%s12808_s2 + $0x14] sm:$0xf0]  ;;  %v9055_v4 = vld [vmem:[%s12808_s2 + $0x14] sm:$0xf] }
 0xd2d   :  { %5260 = vmatpush.bf16.msrb.mxu3 %v8220_v44  ;;  %v9063_v44 = vld [vmem:[%s12808_s2 + $0x54] sm:$0xf] }
 0xd2e   :  { %5475 = vmatpush.bf16.msra.mxu0 %v8280_v8  ;;  %v8268_v29 = vor.u32 %v9063_v44, %v8265_v5  ;;  %v8335_v8 = vld [vmem:[%s12808_s2 + $0xe0] sm:$0xf]  ;;  %v8327_v5 = vld [vmem:[%s12808_s2 + $0xd0] sm:$0xf] }
 0xd30   :  { %5237 = vmatpush.bf16.msrb.mxu1 %v8192_v16  ;;  %v9066_v16 = vld [vmem:[%s12808_s2 + $0x64] sm:$0xf0] }
 0xd31   :  { %5261 = vmatpush.bf16.msrb.mxu3 %v8212_v30  ;;  %v8272_v18 = vor.u32 %v9066_v16, %v8271_v12  ;;  %v8255_v30 = vld [vmem:[%s12808_s2 + $0x40] sm:$0xf]  ;;  %v8336_v12 = vor.u32 %v9082_v9, %v8335_v8  ;;  %v8337_v16 = vld [vmem:[%s12808_s2 + $0xe8] sm:$0xf0] }
 0xd33   :  { %5476 = vmatpush.bf16.msra.mxu0 %v8272_v18  ;;  %v8223_v18 = vld [vmem:[%s12808_s2] sm:$0xf] }
 0xd34   :  { %5238 = vmatpush.bf16.msrb.mxu1 %v8184_v20  ;;  %v8276_v20 = vor.u32 %v9065_v17, %v8273_v13  ;;  %v8340_v17 = vor.u32 %v9081_v53, %v8337_v16  ;;  %v9054_v13 = vld [vmem:[%s12808_s2 + $0x4] sm:$0xf0] }
 0xd35   :  { %5262 = vmatpush.bf16.msrb.mxu3 %v8204_v37  ;;  %v8257_v37 = vld [vmem:[%s12808_s2 + $0x48] sm:$0xf0] }
 0xd36   :  { %5502 = vmatpush.bf16.msra.mxu2 %v8276_v20  ;;  %v9053_v20 = vld [vmem:[%s12808_s2 + $0x4] sm:$0xf] }
 0xd38   :  { %5239 = vmatpush.bf16.msrb.mxu1 %v8176_v28  ;;  %v8264_v28 = vor.u32 %v9064_v22, %v8263_v21  ;;  %v8224_v21 = vor.u32 %v9054_v13, %v8223_v18  ;;  %v8225_v22 = vld [vmem:[%s12808_s2 + $0x8] sm:$0xf0] }
 0xd39   :  { %v8228_v44 = vor.u32 %v9053_v20, %v8225_v22  ;;  %v9108_v20 = vld [vmem:[%s12814_s8 + $0x38] sm:$0xff]  ;;  %v9105_v22 = vld [vmem:[%s12814_s8 + $0x20] sm:$0xff] }
 0xd3a   :  { %5477 = vmatpush.bf16.msra.mxu0 %v8264_v28  ;;  %5503 = vmatpush.bf16.msra.mxu2 %v8268_v29  ;;  %v8329_v29 = vld [vmem:[%s12808_s2 + $0xd8] sm:$0xf0] }
 0xd3c   :  { %5240 = vmatpush.bf16.msrb.mxu1 %v8168_v35 }
 0xd95   :  { %v4761_v34 = vpop.f32.mrf.mxu0  ;;  %v12373_v38 = vpop.f32.mrf.mxu2 }
 0xd96   :  { %v4762_v10 = vadd.f32 %v11854_v42, %v4761_v34  ;;  %v8159_v34 = vld [vmem:[%s12816_s10 + $0x80] sm:$0xf] }
 0xd98   :  { %v4766_v45 = vmin.f32 %v4762_v10, 20.0  ;;  %vm4765_vm0 = vcmp.gt.f32.partialorder %v4762_v10, 20.0 }
 0xd9a   :  { %v4767_v41 = vmul.f32 1.442695, %v4766_v45  ;;  %v9045_v45 = vld [vmem:[%s12816_s10 + $0xc4] sm:$0xf] }
 0xd9c   :  { %9235 = vpow2.f32 %v4767_v41  ;;  %v8193_v41 = vld [vmem:[%s12816_s10 + $0xc8] sm:$0xf0] }
 0xd9d   :  { %v4763_v3 = vpop.f32.mrf.mxu0  ;;  %v5012_v43 = vpop.f32.mrf.mxu2  ;;  %v8196_v7 = vor.u32 %v9045_v45, %v8193_v41 }
 0xd9e   :  { %v9043_v3 = vld [vmem:[%s12816_s10 + $0xb4] sm:$0xf]  ;;  %v8185_v43 = vld [vmem:[%s12816_s10 + $0xb8] sm:$0xf0] }
 0xd9f   :  { %5263 = vmatpush.bf16.msrb.mxu3 %v8196_v7  ;;  %v8247_v7 = vld [vmem:[%s12808_s2 + $0x30] sm:$0xf] }
 0xda2   :  { %v9236_v57 = vpop.eup %9235 }
 0xda3   :  { %v4769_v49 = vadd.f32 1.0, %v9236_v57  ;;  %v4772_v42 = vmul.f32 -0.5, %v9236_v57  ;;  %v4775_v11 = vand.u32 2147483647, %v9236_v57 }
 0xda5   :  { %9237 = vlog2.f32 %v4769_v49  ;;  %v12382_v50 = vpop.f32.mrf.mxu0  ;;  %v12384_v51 = vpop.f32.mrf.mxu2  ;;  %v4773_v52 = vadd.f32 1.0, %v4772_v42  ;;  %vm4776_vm15 = vcmp.lt.f32.partialorder %v4775_v11, 0.0004427343  ;;  %v9041_v49 = vld [vmem:[%s12816_s10 + $0xa4] sm:$0xf] }
 0xda6   :  { %v8177_v42 = vld [vmem:[%s12816_s10 + $0xa8] sm:$0xf0] }
 0xda7   :  { %v4774_v59 = vmul.f32 %v9236_v57, %v4773_v52  ;;  %v8188_v57 = vor.u32 %v9043_v3, %v8185_v43  ;;  %v8180_v11 = vor.u32 %v9041_v49, %v8177_v42  ;;  %v9060_v3 = vld [vmem:[%s12808_s2 + $0x34] sm:$0xf0]  ;;  %v9059_v43 = vld [vmem:[%s12808_s2 + $0x34] sm:$0xf]  ;;  %v8249_v49 = vld [vmem:[%s12808_s2 + $0x38] sm:$0xf0] }
 0xda8   :  { %v8252_v42 = vor.u32 %v9059_v43, %v8249_v49  ;;  %v9074_v43 = vld [vmem:[%s12808_s2 + $0xa4] sm:$0xf0] }
 0xda9   :  { %5264 = vmatpush.bf16.msrb.mxu3 %v8188_v57  ;;  %v8248_v57 = vor.u32 %v9060_v3, %v8247_v7  ;;  %v8303_v3 = vld [vmem:[%s12808_s2 + $0xa0] sm:$0xf] }
 0xdaa   :  { %v8304_v49 = vor.u32 %v9074_v43, %v8303_v3 }
 0xdab   :  { %v9238_v14 = vpop.eup %9237 }
 0xdac   :  { %v4771_v24 = vmul.f32 0.6931472, %v9238_v14 }
 0xdad   :  { %v5232_v40 = vpop.f32.mrf.mxu0  ;;  %v5258_v61 = vpop.f32.mrf.mxu2  ;;  %5265 = vmatpush.bf16.msrb.mxu3 %v8180_v11  ;;  %v9058_v11 = vld [vmem:[%s12808_s2 + $0x24] sm:$0xf0] }
 0xdae   :  { %v4777_v62 = vsel %vm4776_vm15, %v4774_v59, %v4771_v24  ;;  %v9039_v24 = vld [vmem:[%s12816_s10 + $0x94] sm:$0xf]  ;;  %v8169_v59 = vld [vmem:[%s12816_s10 + $0x98] sm:$0xf0] }
 0xdaf   :  { %v4778_v63 = vsel %vm4765_vm0, %v4762_v10, %v4777_v62  ;;  %v9038_v10 = vld [vmem:[%s12816_s10 + $0x84] sm:$0xf0]  ;;  %v8172_v61 = vor.u32 %v9039_v24, %v8169_v59  ;;  %v8241_v59 = vld [vmem:[%s12808_s2 + $0x28] sm:$0xf0] }
 0xdb0   :  { %v4779_v26 = vpack.c.bf16 %v4778_v63, %v4778_v63  ;;  %v8160_v39 = vor.u32 %v9038_v10, %v8159_v34  ;;  %v9037_v63 = vld [vmem:[%s12816_s10 + $0x84] sm:$0xf]  ;;  %v8256_v34 = vor.u32 %v9062_v58, %v8255_v30  ;;  %v8319_v58 = vld [vmem:[%s12808_s2 + $0xc0] sm:$0xf] }
 0xdb1   :  { %5266 = vmatpush.bf16.msrb.mxu3 %v8172_v61  ;;  %v8343_v61 = vld [vmem:[%s12808_s2 + $0xf0] sm:$0xf] }
 0xdb2   :  { %4852 = vmatmul.bf16.vlgmr.msra.gmra.mxu1 %v4779_v26  ;;  %5478 = vmatpush.bf16.msra.mxu0 %v8256_v34  ;;  %v8311_v34 = vld [vmem:[%s12808_s2 + $0xb0] sm:$0xf] }
 0xdb3   :  { %5241 = vmatpush.bf16.msrb.mxu1 %v8160_v39  ;;  %v8260_v39 = vor.u32 %v9061_v36, %v8257_v37  ;;  %v8321_v36 = vld [vmem:[%s12808_s2 + $0xc8] sm:$0xf0] }
 0xdb5   :  { %5504 = vmatpush.bf16.msra.mxu2 %v8260_v39 }
 0xdb6   :  { %5479 = vmatpush.bf16.msra.mxu0 %v8248_v57  ;;  %v9073_v57 = vld [vmem:[%s12808_s2 + $0xa4] sm:$0xf] }
 0xdb9   :  { %5505 = vmatpush.bf16.msra.mxu2 %v8252_v42  ;;  %v8305_v42 = vld [vmem:[%s12808_s2 + $0xa8] sm:$0xf0] }
 0xe2f   :  { %v4853_v52 = vpop.f32.mrf.mxu1 }
 0xe30   :  { %v4854_v14 = vadd.f32 %v11960_v60, %v4853_v52  ;;  %v8161_v60 = vld [vmem:[%s12816_s10 + $0x88] sm:$0xf0]  ;;  %v8239_v52 = vld [vmem:[%s12808_s2 + $0x20] sm:$0xf] }
 0xe31   :  { %v8164_v1 = vor.u32 %v9037_v63, %v8161_v60  ;;  %v8240_v24 = vor.u32 %v9058_v11, %v8239_v52  ;;  %v9083_v63 = vld [vmem:[%s12808_s2 + $0xf4] sm:$0xf]  ;;  %v8308_v52 = vor.u32 %v9073_v57, %v8305_v42  ;;  %v8295_v11 = vld [vmem:[%s12808_s2 + $0x90] sm:$0xf] }
 0xe32   :  { %v4858_v40 = vmin.f32 %v4854_v14, 20.0  ;;  %vm4857_vm2 = vcmp.gt.f32.partialorder %v4854_v14, 20.0 }
 0xe33   :  { %5267 = vmatpush.bf16.msrb.mxu3 %v8164_v1  ;;  %5480 = vmatpush.bf16.msra.mxu0 %v8240_v24  ;;  %v9071_v24 = vld [vmem:[%s12808_s2 + $0x94] sm:$0xf] }
 0xe34   :  { %v4859_v62 = vmul.f32 1.442695, %v4858_v40 }
 0xe36   :  { %9239 = vpow2.f32 %v4859_v62  ;;  %v9084_v62 = vld [vmem:[%s12808_s2 + $0xf4] sm:$0xf0] }
 0xe37   :  { %v4855_v26 = vpop.f32.mrf.mxu1  ;;  %v8344_v60 = vor.u32 %v9084_v62, %v8343_v61 }
 0xe38   :  { %v8345_v26 = vld [vmem:[%s12808_s2 + $0xf8] sm:$0xf0] }
 0xe39   :  { %v8348_v1 = vor.u32 %v9083_v63, %v8345_v26  ;;  %5488 = vmatpush.bf16.msra.mxu1 %v8344_v60  ;;  %v8287_v60 = vld [vmem:[%s12808_s2 + $0x80] sm:$0xf]  ;;  %v9070_v26 = vld [vmem:[%s12808_s2 + $0x84] sm:$0xf0] }
 0xe3c   :  { %v9240_v46 = vpop.eup %9239 }
 0xe3d   :  { %v4861_v6 = vadd.f32 1.0, %v9240_v46  ;;  %v4864_v55 = vmul.f32 -0.5, %v9240_v46  ;;  %v4867_v27 = vand.u32 2147483647, %v9240_v46  ;;  %5489 = vmatpush.bf16.msra.mxu1 %v8336_v12 }
 0xe3f   :  { %9241 = vlog2.f32 %v4861_v6  ;;  %v4865_v32 = vadd.f32 1.0, %v4864_v55  ;;  %vm4868_vm1 = vcmp.lt.f32.partialorder %v4867_v27, 0.0004427343  ;;  %v8233_v6 = vld [vmem:[%s12808_s2 + $0x18] sm:$0xf0] }
 0xe40   :  { %v8236_v55 = vor.u32 %v9055_v4, %v8233_v6  ;;  %v9079_v27 = vld [vmem:[%s12808_s2 + $0xd4] sm:$0xf] }
 0xe41   :  { %v4866_v35 = vmul.f32 %v9240_v46, %v4865_v32  ;;  %v8231_v46 = vld [vmem:[%s12808_s2 + $0x10] sm:$0xf]  ;;  %v9080_v32 = vld [vmem:[%s12808_s2 + $0xd4] sm:$0xf0]  ;;  %v8332_v30 = vor.u32 %v9079_v27, %v8329_v29  ;;  %v9089_v27 = vld [vmem:[%s12810_s4 + $0x20] sm:$0xff] }
 0xe42   :  { %v8232_v31 = vor.u32 %v9056_v2, %v8231_v46  ;;  %v8328_v28 = vor.u32 %v9080_v32, %v8327_v5  ;;  %v8288_v46 = vor.u32 %v9070_v26, %v8287_v60  ;;  %v8289_v2 = vld [vmem:[%s12808_s2 + $0x88] sm:$0xf0]  ;;  %v9104_v32 = vld [vmem:[%s12814_s8 + $0x18] sm:$0xff]  ;;  %v9103_v29 = vld [vmem:[%s12814_s8 + $0x10] sm:$0xff] }
 0xe43   :  { %v9090_v5 = vld [vmem:[%s12810_s4 + $0x28] sm:$0xff] }
 0xe44   :  { %5481 = vmatpush.bf16.msra.mxu0 %v8232_v31  ;;  %5490 = vmatpush.bf16.msra.mxu1 %v8328_v28 }
 0xe45   :  { %v9242_v56 = vpop.eup %9241 }
 0xe46   :  { %v4863_v33 = vmul.f32 0.6931472, %v9242_v56  ;;  %v9078_v56 = vld [vmem:[%s12808_s2 + $0xc4] sm:$0xf0] }
 0xe48   :  { %v4869_v10 = vsel %vm4868_vm1, %v4866_v35, %v4863_v33  ;;  %5482 = vmatpush.bf16.msra.mxu0 %v8224_v21  ;;  %v9077_v33 = vld [vmem:[%s12808_s2 + $0xc4] sm:$0xf]  ;;  %v8320_v35 = vor.u32 %v9078_v56, %v8319_v58  ;;  %v9107_v21 = vld [vmem:[%s12814_s8 + $0x30] sm:$0xff]  ;;  %v9088_v58 = vld [vmem:[%s12810_s4 + $0x18] sm:$0xff] }
 0xe49   :  { %v4870_v45 = vsel %vm4857_vm2, %v4854_v14, %v4869_v10  ;;  %v9057_v14 = vld [vmem:[%s12808_s2 + $0x24] sm:$0xf]  ;;  %v8324_v37 = vor.u32 %v9077_v33, %v8321_v36  ;;  %v9076_v10 = vld [vmem:[%s12808_s2 + $0xb4] sm:$0xf0]  ;;  %v9102_v56 = vld [vmem:[%s12814_s8 + $0x8] sm:$0xff] }
 0xe4a   :  { %v4872_v41 = vpack.c.bf16 %v4870_v45, %v4870_v45  ;;  %v8244_v40 = vor.u32 %v9057_v14, %v8241_v59  ;;  %5491 = vmatpush.bf16.msra.mxu1 %v8320_v35  ;;  %v9075_v45 = vld [vmem:[%s12808_s2 + $0xb4] sm:$0xf]  ;;  %v8312_v39 = vor.u32 %v9076_v10, %v8311_v34  ;;  %v9072_v14 = vld [vmem:[%s12808_s2 + $0x94] sm:$0xf0]  ;;  %v9101_v36 = vld [vmem:[%s12814_s8] sm:$0xff] }
 0xe4b   :  { %v8296_v59 = vor.u32 %v9072_v14, %v8295_v11  ;;  %v9087_v33 = vld [vmem:[%s12810_s4 + $0x10] sm:$0xff]  ;;  %v9085_v10 = vld [vmem:[%s12810_s4] sm:$0xff] }
 0xe4c   :  { %5022 = vmatmul.bf16.vlgmr.msra.gmra.mxu3 %v4872_v41  ;;  %5242 = vmatmul.bf16.vlgmr.msrb.gmra.mxu1 %v4872_v41 }
 0xe4d   :  { %5506 = vmatpush.bf16.msra.mxu2 %v8244_v40  ;;  %5514 = vmatpush.bf16.msra.mxu3 %v8348_v1  ;;  %v8297_v40 = vld [vmem:[%s12808_s2 + $0x98] sm:$0xf0]  ;;  %v9069_v1 = vld [vmem:[%s12808_s2 + $0x84] sm:$0xf] }
 0xe4e   :  { %5492 = vmatpush.bf16.msra.mxu1 %v8312_v39  ;;  %v8300_v61 = vor.u32 %v9071_v24, %v8297_v40  ;;  %v8292_v4 = vor.u32 %v9069_v1, %v8289_v2 }
 0xe51   :  { %5507 = vmatpush.bf16.msra.mxu2 %v8236_v55  ;;  %5515 = vmatpush.bf16.msra.mxu3 %v8340_v17 }
 0xe52   :  { %5493 = vmatpush.bf16.msra.mxu1 %v8304_v49 }
 0xe55   :  { %5508 = vmatpush.bf16.msra.mxu2 %v8228_v44  ;;  %5516 = vmatpush.bf16.msra.mxu3 %v8332_v30 }
 0xe56   :  { %5494 = vmatpush.bf16.msra.mxu1 %v8296_v59 }
 0xe59   :  { %5517 = vmatpush.bf16.msra.mxu3 %v8324_v37  ;;  %5869 = vmatpush.bf16.msrb.mxu2 %v9108_v20  ;;  %v9086_v37 = vld [vmem:[%s12810_s4 + $0x8] sm:$0xff] }
 0xe5a   :  { %5495 = vmatpush.bf16.msra.mxu1 %v8288_v46 }
 0xe5c   :  { %5268 = vmatmul.bf16.vlgmr.msrb.gmra.mxu3 %v4872_v41  ;;  %v8313_v41 = vld [vmem:[%s12808_s2 + $0xb8] sm:$0xf0] }
 0xe5d   :  { %v8316_v7 = vor.u32 %v9075_v45, %v8313_v41  ;;  %5870 = vmatpush.bf16.msrb.mxu2 %v9107_v21 }
 0xe5f   :  { %5518 = vmatpush.bf16.msra.mxu3 %v8316_v7  ;;  %v9100_v7 = vld [vmem:[%s12812_s6 + $0x38] sm:$0xff] }
 0xe60   :  { %5712 = vmatpush.bf16.msrb.mxu1 %v9100_v7  ;;  %v9110_v7 = vld [vmem:[%s12814_s8 + $0x48] sm:$0xff] }
 0xe63   :  { %5519 = vmatpush.bf16.msra.mxu3 %v8308_v52 }
 0xe67   :  { %5520 = vmatpush.bf16.msra.mxu3 %v8300_v61 }
 0xe6b   :  { %5521 = vmatpush.bf16.msra.mxu3 %v8292_v4 }
 0xec9   :  { %v5243_v62 = vpop.f32.mrf.mxu1 }
 0xeca   :  { %v5244_v63 = vadd.f32 %v5243_v62, %v12382_v50 }
 0xecc   :  { %v5273_v50 = vadd.f32 %v5244_v63, %v12170_v15 }
 0xece   :  { %v5275_v31 = vadd.f32 %v5273_v50, %v10093_v48 }
 0xecf   :  { %v5023_v6 = vpop.f32.mrf.mxu3 }
 0xed0   :  { %9243 = vtanh.f32 %v5275_v31  ;;  %v5024_v55 = vadd.f32 %v5023_v6, %v12373_v38 }
 0xed1   :  { %v5245_v8 = vpop.f32.mrf.mxu1 }
 0xed2   :  { %v5027_v9 = vadd.f32 %v5024_v55, %v12181_v25 }
 0xed4   :  { %v12687_v53 = vadd.f32 %v12178_v19, %v5027_v9 }
 0xed6   :  { %v9244_v12 = vpop.eup %9243  ;;  %5278 = vst.msk [vmem:[#allocation2 + $0x30] sm:$0xff] %vm69_vm8, %v12687_v53 }
 0xed7   :  { %v5281_v15 = vpack.c.bf16 %v9244_v12, %v9244_v12  ;;  %v5025_v16 = vpop.f32.mrf.mxu3 }
 0xed8   :  { %v9099_v16 = vld [vmem:[%s12812_s6 + $0x30] sm:$0xff] }
 0xed9   :  { %5483 = vmatmul.bf16.vlgmr.msra.gmra.mxu0 %v5281_v15  ;;  %5509 = vmatmul.bf16.vlgmr.msra.gmra.mxu2 %v5281_v15 }
 0xeda   :  { %5713 = vmatpush.bf16.msrb.mxu1 %v9099_v16 }
 0xedf   :  { %v5269_v48 = vpop.f32.mrf.mxu3 }
 0xee0   :  { %v5270_v17 = vadd.f32 %v5269_v48, %v12384_v51  ;;  %v9091_v51 = vld [vmem:[%s12810_s4 + $0x30] sm:$0xff]  ;;  %v9098_v48 = vld [vmem:[%s12812_s6 + $0x28] sm:$0xff] }
 0xee1   :  { %5714 = vmatpush.bf16.msrb.mxu1 %v9098_v48 }
 0xee2   :  { %v5274_v18 = vadd.f32 %v5270_v17, %v12188_v23  ;;  %v9106_v23 = vld [vmem:[%s12814_s8 + $0x28] sm:$0xff]  ;;  %v9097_v17 = vld [vmem:[%s12812_s6 + $0x20] sm:$0xff] }
 0xee3   :  { %5871 = vmatpush.bf16.msrb.mxu2 %v9106_v23 }
 0xee4   :  { %v5276_v38 = vadd.f32 %v5274_v18, %v10115_v0  ;;  %v9092_v0 = vld [vmem:[%s12810_s4 + $0x38] sm:$0xff] }
 0xee5   :  { %5620 = vmatpush.bf16.msrb.mxu0 %v9092_v0  ;;  %5715 = vmatpush.bf16.msrb.mxu1 %v9097_v17  ;;  %v9096_v18 = vld [vmem:[%s12812_s6 + $0x18] sm:$0xff]  ;;  %v9271_v0 = vld [vmem:[%s12811_s5] ss:$0 sm:$0xff] }
 0xee6   :  { %9245 = vtanh.f32 %v5276_v38  ;;  %v9095_v38 = vld [vmem:[%s12812_s6 + $0x10] sm:$0xff] }
 0xee7   :  { %v5271_v25 = vpop.f32.mrf.mxu3  ;;  %5872 = vmatpush.bf16.msrb.mxu2 %v9105_v22 }
 0xee8   :  { %v9094_v25 = vld [vmem:[%s12812_s6 + $0x8] sm:$0xff] }
 0xee9   :  { %5621 = vmatpush.bf16.msrb.mxu0 %v9091_v51  ;;  %5716 = vmatpush.bf16.msrb.mxu1 %v9096_v18 }
 0xeeb   :  { %5873 = vmatpush.bf16.msrb.mxu2 %v9104_v32 }
 0xeec   :  { %v9246_v13 = vpop.eup %9245 }
 0xeed   :  { %v5282_v19 = vpack.c.bf16 %v9246_v13, %v9246_v13  ;;  %5622 = vmatpush.bf16.msrb.mxu0 %v9090_v5  ;;  %5717 = vmatpush.bf16.msrb.mxu1 %v9095_v38  ;;  %v9093_v13 = vld [vmem:[%s12812_s6] sm:$0xff] }
 0xeef   :  { %5496 = vmatmul.bf16.vlgmr.msra.gmra.mxu1 %v5282_v19  ;;  %5522 = vmatmul.bf16.vlgmr.msra.gmra.mxu3 %v5282_v19  ;;  %v9116_v19 = vld [vmem:[%s12814_s8 + $0x78] sm:$0xff] }
 0xef0   :  { %5874 = vmatpush.bf16.msrb.mxu2 %v9103_v29  ;;  %5882 = vmatpush.bf16.msrb.mxu3 %v9116_v19 }
 0xef1   :  { %5623 = vmatpush.bf16.msrb.mxu0 %v9089_v27  ;;  %5718 = vmatpush.bf16.msrb.mxu1 %v9094_v25 }
 0xef4   :  { %5875 = vmatpush.bf16.msrb.mxu2 %v9102_v56 }
 0xef5   :  { %5624 = vmatpush.bf16.msrb.mxu0 %v9088_v58  ;;  %5719 = vmatpush.bf16.msrb.mxu1 %v9093_v13 }
 0xef8   :  { %5876 = vmatpush.bf16.msrb.mxu2 %v9101_v36 }
 0xef9   :  { %5625 = vmatpush.bf16.msrb.mxu0 %v9087_v33 }
 0xefd   :  { %5626 = vmatpush.bf16.msrb.mxu0 %v9086_v37 }
 0xf01   :  { %5627 = vmatpush.bf16.msrb.mxu0 %v9085_v10  ;;  %v9114_v10 = vld [vmem:[%s12814_s8 + $0x68] sm:$0xff] }
 0xf56   :  { %v5484_v44 = vpop.f32.mrf.mxu0 }
 0xf57   :  { %v5485_v34 = vadd.f32 %v5484_v44, %v9605_v54 }
 0xf5c   :  { %v5510_v28 = vpop.f32.mrf.mxu2 }
 0xf5d   :  { %v5511_v3 = vadd.f32 %v5510_v28, %v9593_v47 }
 0xf5e   :  { %v5486_v30 = vpop.f32.mrf.mxu0 }
 0xf64   :  { %v5512_v35 = vpop.f32.mrf.mxu2 }
 0xf6c   :  { %v5497_v45 = vpop.f32.mrf.mxu1 }
 0xf6d   :  { %v5498_v39 = vadd.f32 %v5497_v45, %v5485_v34  ;;  %v9115_v34 = vld [vmem:[%s12814_s8 + $0x70] sm:$0xff]  ;;  %v9113_v45 = vld [vmem:[%s12814_s8 + $0x60] sm:$0xff] }
 0xf6e   :  { %5883 = vmatpush.bf16.msrb.mxu3 %v9115_v34 }
 0xf6f   :  { %v5529_v41 = vmin.f32 %v5498_v39, 20.0  ;;  %vm5527_vm4 = vcmp.gt.f32.partialorder %v5498_v39, 20.0 }
 0xf71   :  { %v5531_v43 = vmul.f32 1.442695, %v5529_v41  ;;  %v9111_v41 = vld [vmem:[%s12814_s8 + $0x50] sm:$0xff] }
 0xf72   :  { %v5523_v57 = vpop.f32.mrf.mxu3  ;;  %5884 = vmatpush.bf16.msrb.mxu3 %v9114_v10 }
 0xf73   :  { %9247 = vpow2.f32 %v5531_v43  ;;  %v5524_v49 = vadd.f32 %v5523_v57, %v5511_v3  ;;  %v9109_v3 = vld [vmem:[%s12814_s8 + $0x40] sm:$0xff] }
 0xf74   :  { %v5499_v54 = vpop.f32.mrf.mxu1  ;;  %v9272_v57 = vld [vmem:[%s12813_s7] ss:$0 sm:$0xff]  ;;  %s9300_s7 = smov [#allocation2]  }
 0xf75   :  { %v5530_v42 = vmin.f32 %v5524_v49, 20.0  ;;  %vm5528_vm6 = vcmp.gt.f32.partialorder %v5524_v49, 20.0 }
 0xf76   :  { %5885 = vmatpush.bf16.msrb.mxu3 %v9113_v45 }
 0xf77   :  { %v5533_v52 = vmul.f32 1.442695, %v5530_v42 }
 0xf79   :  { %v9248_v11 = vpop.eup %9247  ;;  %9249 = vpow2.f32 %v5533_v52 }
 0xf7a   :  { %v5535_v14 = vadd.f32 1.0, %v9248_v11  ;;  %v5525_v24 = vpop.f32.mrf.mxu3  ;;  %v5538_v59 = vmul.f32 -0.5, %v9248_v11  ;;  %v5541_v62 = vand.u32 2147483647, %v9248_v11 }
 0xf7c   :  { %9251 = vlog2.f32 %v5535_v14  ;;  %v5539_v61 = vadd.f32 1.0, %v5538_v59  ;;  %vm5542_vm3 = vcmp.lt.f32.partialorder %v5541_v62, 0.0004427343 }
 0xf7e   :  { %v5540_v1 = vmul.f32 %v9248_v11, %v5539_v61 }
 0xf7f   :  { %v9250_v40 = vpop.eup %9249 }
 0xf80   :  { %v5544_v63 = vadd.f32 1.0, %v9250_v40  ;;  %v5547_v60 = vmul.f32 -0.5, %v9250_v40  ;;  %v5550_v4 = vand.u32 2147483647, %v9250_v40 }
 0xf82   :  { %v9252_v47 = vpop.eup %9251  ;;  %9253 = vlog2.f32 %v5544_v63  ;;  %v5548_v2 = vadd.f32 1.0, %v5547_v60  ;;  %vm5551_vm5 = vcmp.lt.f32.partialorder %v5550_v4, 0.0004427343 }
 0xf83   :  { %v5537_v26 = vmul.f32 0.6931472, %v9252_v47 }
 0xf84   :  { %v5549_v8 = vmul.f32 %v9250_v40, %v5548_v2 }
 0xf85   :  { %v5543_v46 = vsel %vm5542_vm3, %v5540_v1, %v5537_v26 }
 0xf86   :  { %v5553_v50 = vsel %vm5527_vm4, %v5498_v39, %v5543_v46  ;;  %v9112_v39 = vld [vmem:[%s12814_s8 + $0x58] sm:$0xff]  ;;  %s5903_s8 = sshll.u32 %s9300_s7, 4  ;;  %s5904_s8 = int_to_ptr.vmem [resolvable:$true] %s5903_s8 }
 0xf87   :  { %v5739_v31 = vpack.c.bf16 %v5553_v50, %v5553_v50  ;;  %5886 = vmatpush.bf16.msrb.mxu3 %v9112_v39  ;;  %v9273_v50 = vld [vmem:[%s12815_s9] ss:$0 sm:$0xff] }
 0xf88   :  { %v9254_v6 = vpop.eup %9253 }
 0xf89   :  { %v5546_v55 = vmul.f32 0.6931472, %v9254_v6  ;;  %5877 = vmatmul.bf16.vlgmr.msrb.gmra.mxu2 %v5739_v31 }
 0xf8b   :  { %v5552_v9 = vsel %vm5551_vm5, %v5549_v8, %v5546_v55  ;;  %5887 = vmatpush.bf16.msrb.mxu3 %v9111_v41 }
 0xf8c   :  { %v5554_v12 = vsel %vm5528_vm6, %v5524_v49, %v5552_v9 }
 0xf8d   :  { %v5555_v15 = vpack.c.bf16 %v5554_v12, %v5554_v12 }
 0xf8f   :  { %5628 = vmatmul.bf16.vlgmr.msrb.gmra.mxu0 %v5555_v15  ;;  %5888 = vmatpush.bf16.msrb.mxu3 %v9110_v7 }
 0xf93   :  { %5889 = vmatpush.bf16.msrb.mxu3 %v9109_v3 }
0x100c   :  { %v5629_v20 = vpop.f32.mrf.mxu0  ;;  %v5878_v21 = vpop.f32.mrf.mxu2 }
0x100d   :  { %v5630_v23 = vadd.f32 %v9271_v0, %v5629_v20 }
0x100f   :  { %v5634_v51 = vmin.f32 %v5630_v23, 20.0  ;;  %vm5633_vm9 = vcmp.gt.f32.partialorder %v5630_v23, 20.0 }
0x1011   :  { %v5635_v22 = vmul.f32 1.442695, %v5634_v51 }
0x1013   :  { %9255 = vpow2.f32 %v5635_v22 }
0x1014   :  { %v5631_v44 = vpop.f32.mrf.mxu0  ;;  %v5880_v5 = vpop.f32.mrf.mxu2 }
0x1019   :  { %v9256_v32 = vpop.eup %9255 }
0x101a   :  { %v5637_v27 = vadd.f32 1.0, %v9256_v32  ;;  %v5640_v28 = vmul.f32 -0.5, %v9256_v32  ;;  %v5643_v30 = vand.u32 2147483647, %v9256_v32 }
0x101c   :  { %9257 = vlog2.f32 %v5637_v27  ;;  %v5641_v29 = vadd.f32 1.0, %v5640_v28  ;;  %vm5644_vm7 = vcmp.lt.f32.partialorder %v5643_v30, 0.0004427343 }
0x101e   :  { %v5642_v33 = vmul.f32 %v9256_v32, %v5641_v29 }
0x1022   :  { %v9258_v58 = vpop.eup %9257 }
0x1023   :  { %v5639_v56 = vmul.f32 0.6931472, %v9258_v58 }
0x1025   :  { %v5645_v35 = vsel %vm5644_vm7, %v5642_v33, %v5639_v56 }
0x1026   :  { %v5646_v36 = vsel %vm5633_vm9, %v5630_v23, %v5645_v35 }
0x1027   :  { %v5647_v37 = vpack.c.bf16 %v5646_v36, %v5646_v36 }
0x1029   :  { %5720 = vmatmul.bf16.vlgmr.msrb.gmra.mxu1 %v5647_v37 }
0x10a6   :  { %v5721_v43 = vpop.f32.mrf.mxu1 }
0x10a7   :  { %v5722_v49 = vadd.f32 %v9272_v57, %v5721_v43 }
0x10a9   :  { %v5726_v54 = vmin.f32 %v5722_v49, 20.0  ;;  %vm5725_vm11 = vcmp.gt.f32.partialorder %v5722_v49, 20.0 }
0x10ab   :  { %v5727_v42 = vmul.f32 1.442695, %v5726_v54 }
0x10ad   :  { %9259 = vpow2.f32 %v5727_v42 }
0x10ae   :  { %v5723_v52 = vpop.f32.mrf.mxu1 }
0x10b3   :  { %v9260_v11 = vpop.eup %9259 }
0x10b4   :  { %v5729_v14 = vadd.f32 1.0, %v9260_v11  ;;  %v5732_v24 = vmul.f32 -0.5, %v9260_v11  ;;  %v5735_v40 = vand.u32 2147483647, %v9260_v11 }
0x10b6   :  { %9261 = vlog2.f32 %v5729_v14  ;;  %v5733_v59 = vadd.f32 1.0, %v5732_v24  ;;  %vm5736_vm10 = vcmp.lt.f32.partialorder %v5735_v40, 0.0004427343 }
0x10b8   :  { %v5734_v63 = vmul.f32 %v9260_v11, %v5733_v59 }
0x10bc   :  { %v9262_v61 = vpop.eup %9261 }
0x10bd   :  { %v5731_v62 = vmul.f32 0.6931472, %v9262_v61 }
0x10bf   :  { %v5737_v60 = vsel %vm5736_vm10, %v5734_v63, %v5731_v62 }
0x10c0   :  { %v5738_v47 = vsel %vm5725_vm11, %v5722_v49, %v5737_v60 }
0x10c1   :  { %v5740_v26 = vpack.c.bf16 %v5738_v47, %v5738_v47 }
0x10c3   :  { %5890 = vmatmul.bf16.vlgmr.msrb.gmra.mxu3 %v5740_v26 }
0x1146   :  { %v5891_v1 = vpop.f32.mrf.mxu3 }
0x1147   :  { %v5892_v46 = vadd.f32 %v5891_v1, %v5878_v21 }
0x1149   :  { %v5895_v2 = vadd.f32 %v5892_v46, %v12687_v53 }
0x114b   :  { %v5896_v4 = vadd.f32 %v9273_v50, %v5895_v2 }
0x114d   :  { %5898 = vst.msk [vmem:[#allocation2 + $0x38] sm:$0xff] %vm69_vm8, %v5896_v4 }
0x114e   :  { %v5893_v31 = vpop.f32.mrf.mxu3  ;;  %5911 = dma.vmem_to_hbm [thread:$0]  %s5904_s8, 1024, %s5906_s30, [#allocation3], %s9301_s3, %s9301_s3, %s9302_s15  }
0x114f   :  { %9298 = dma.done.wait [#allocation3], 1024  }
0x1150   :  { %9299 = vsyncadd [#allocation3], 4294966272 }
0x1151   :  { %5916 = vsyncpa [#allocation3], 1 }

</bundles_post_ra>
